<compile_context>
chip_gen: v6e
topology: v6e:2x2x1
jax: 0.10.0
libtpu: 0.0.40
codegen_flags: <defaults>
</compile_context>

<pallas_src>
import math
from functools import partial

import jax
import jax.numpy as jnp
import numpy as np
from jax.experimental import pallas as pl
from jax.experimental.pallas import tpu as pltpu


def _ffm_double_kernel(
    x_ref, ep_ref,
    wy0_ref, by0_ref, wig0_ref, big0_ref, wt0_ref, bt0_ref, wog0_ref, bog0_ref,
    ga0_ref, gb0_ref, wm0_ref, bm0_ref,
    wy1_ref, by1_ref, wig1_ref, big1_ref, wt1_ref, bt1_ref, wog1_ref, bog1_ref,
    ga1_ref, gb1_ref, wm1_ref, bm1_ref,
    out_ref, s0_ref, s1_ref,
    *, n_half, seq_len, bb,
):
    two_n = 2 * n_half
    rows = bb * seq_len
    ep = ep_ref[...]                       # (mem, 2N) f32: [broadcast | zeros]

    def stage(inp_rows, wy, by, wig, big, wt, bt, wog, bog, ga, gb, wm, bm,
              s_ref):
        lhs = inp_rows.astype(jnp.bfloat16)                      # bf16 MXU LHS
        # pre-Linear split into 4 independent matmuls (no lane slicing).
        y = jnp.dot(lhs, wy, preferred_element_type=jnp.float32) + by
        in_g = jax.nn.sigmoid(
            jnp.dot(lhs, wig, preferred_element_type=jnp.float32) + big)
        thru = jnp.dot(lhs, wt, preferred_element_type=jnp.float32) + bt
        out_g = jax.nn.sigmoid(
            jnp.dot(lhs, wog, preferred_element_type=jnp.float32) + bog)
        yg = y * in_g                                            # (R, mem) f32

        # broadcast each memory channel over ctx_half freqs into packed
        # [re | 0] layout (f32 matmul, contraction depth = mem; MXU has slack).
        yb = jnp.dot(yg, ep, preferred_element_type=jnp.float32)  # (R, 2N)
        yb3 = yb.reshape(bb, seq_len, two_n)

        # FFM complex exponential-decay recurrence; state packed [re | im]
        # across 2N = 128 lanes (one vreg), cross term via one XLU lane-roll
        # per step. Each timestep is written straight into the lane-dense
        # state output block.
        s = yb3[:, 0, :]                                         # (bb, 2N)
        s_ref[:, pl.ds(0, 1), :] = s.reshape(bb, 1, two_n)
        for t in range(1, seq_len):
            s = ga * s + gb * pltpu.roll(s, n_half, 1) + yb3[:, t, :]
            s_ref[:, pl.ds(t, 1), :] = s.reshape(bb, 1, two_n)

        # mix Linear on packed state: one 2N-deep matmul == re-mix + im-mix.
        s_seq = s_ref[...].reshape(rows, two_n).astype(jnp.bfloat16)
        z = jnp.dot(s_seq, wm, preferred_element_type=jnp.float32) + bm
        # LayerNorm (no affine, eps=1e-5, biased variance) + gated residual.
        mu = jnp.mean(z, axis=-1, keepdims=True)
        var = jnp.mean(jnp.square(z - mu), axis=-1, keepdims=True)
        zn = (z - mu) * jax.lax.rsqrt(var + 1e-5)
        # zn*g + thru*(1-g)  ==  thru + (zn - thru)*g  (one fewer multiply)
        return thru + (zn - thru) * out_g

    x_rows = x_ref[...].reshape(rows, -1)                        # (bb*T, F)
    out0 = stage(x_rows,
                 wy0_ref[...], by0_ref[...], wig0_ref[...], big0_ref[...],
                 wt0_ref[...], bt0_ref[...], wog0_ref[...], bog0_ref[...],
                 ga0_ref[...], gb0_ref[...], wm0_ref[...], bm0_ref[...],
                 s0_ref)
    out1 = stage(out0,
                 wy1_ref[...], by1_ref[...], wig1_ref[...], big1_ref[...],
                 wt1_ref[...], bt1_ref[...], wog1_ref[...], bog1_ref[...],
                 ga1_ref[...], gb1_ref[...], wm1_ref[...], bm1_ref[...],
                 s1_ref)
    out_ref[...] = out1.reshape(bb, seq_len, -1)


def ffm_double_forward(x, params, *, mem, hid, out_dim, ctx_half, bb=8):
    B, T, F = x.shape
    N = mem * ctx_half
    two_n = 2 * N
    assert B % bb == 0, "batch must be divisible by the batch block bb"

    bfc = lambda a: a.astype(jnp.bfloat16)
    # packed broadcast matrix: yb[:, j*ctx_half+k] = y[:, j] (re half), 0 (im)
    ep = jnp.concatenate(
        [jnp.repeat(jnp.eye(mem, dtype=jnp.float32), ctx_half, axis=1),
         jnp.zeros((mem, N), jnp.float32)], axis=1)              # (mem, 2N)
    # packed complex-decay coefficients:  n = gA*s + gB*roll(s, N) + y_pack
    ga = jnp.concatenate([params["gre"], params["gre"]], axis=1)  # (1, 2N)
    gb = jnp.concatenate([-params["gim"], params["gim"]], axis=1)  # (1, 2N)
    wm0 = bfc(jnp.concatenate([params["wm0re"], params["wm0im"]], axis=0))
    wm1 = bfc(jnp.concatenate([params["wm1re"], params["wm1im"]], axis=0))

    args = (
        x, ep,
        bfc(params["wy0"]), params["by0"], bfc(params["wig0"]), params["big0"],
        bfc(params["wt0"]), params["bt0"], bfc(params["wog0"]), params["bog0"],
        ga, gb, wm0, params["bm0"],
        bfc(params["wy1"]), params["by1"], bfc(params["wig1"]), params["big1"],
        bfc(params["wt1"]), params["bt1"], bfc(params["wog1"]), params["bog1"],
        ga, gb, wm1, params["bm1"],
    )

    def full(a):
        nd = a.ndim
        return pl.BlockSpec(a.shape, lambda b, _nd=nd: (0,) * _nd)

    in_specs = ([pl.BlockSpec((bb, T, F), lambda b: (b, 0, 0))]
                + [full(a) for a in args[1:]])

    out_shape = (
        jax.ShapeDtypeStruct((B, T, out_dim), jnp.float32),
        jax.ShapeDtypeStruct((B, T, two_n), jnp.float32),   # state0 [re | im]
        jax.ShapeDtypeStruct((B, T, two_n), jnp.float32),   # state1 [re | im]
    )
    out_specs = (
        pl.BlockSpec((bb, T, out_dim), lambda b: (b, 0, 0)),
        pl.BlockSpec((bb, T, two_n), lambda b: (b, 0, 0)),
        pl.BlockSpec((bb, T, two_n), lambda b: (b, 0, 0)),
    )
    grid_spec = pltpu.PrefetchScalarGridSpec(
        num_scalar_prefetch=0, grid=(B // bb,),
        in_specs=in_specs, out_specs=out_specs)

    kernel = partial(_ffm_double_kernel, n_half=N, seq_len=T, bb=bb)
    out1, s0, s1 = pl.pallas_call(
        kernel,
        out_shape=out_shape,
        grid_spec=grid_spec,
        compiler_params=pltpu.CompilerParams(
            dimension_semantics=("parallel",),
            vmem_limit_bytes=32 * 1024 * 1024),
    )(*args)

    state0 = jax.lax.complex(s0[..., :N], s0[..., N:]).reshape(B, T, mem, ctx_half)
    state1 = jax.lax.complex(s1[..., :N], s1[..., N:]).reshape(B, T, mem, ctx_half)
    return out1, (state0, state1)


def init_params(key, input_size, hidden_size, memory_size, output_size,
                context_size, min_period=1.0, max_period=1024.0):
    assert hidden_size == output_size, \
        "the PyTorch module's pre1 split requires hidden_size == output_size"
    ctx_half = context_size // 2
    N = memory_size * ctx_half
    keys = jax.random.split(key, 4)

    def linear(k, fan_in, fan_out):
        kw, kb = jax.random.split(k)
        bound = 1.0 / math.sqrt(fan_in)
        w = jax.random.uniform(kw, (fan_in, fan_out), jnp.float32, -bound, bound)
        b = jax.random.uniform(kb, (1, fan_out), jnp.float32, -bound, bound)
        return w, b

    def split_pre(w, b, mem, width):
        # module column order: [y (mem) | thru (width) | in_gate (mem) | out_gate (width)]
        cols = np.cumsum([0, mem, width, mem, width])
        ws = [w[:, cols[i]:cols[i + 1]] for i in range(4)]
        bs = [b[:, cols[i]:cols[i + 1]] for i in range(4)]
        return ws, bs

    wp0, bp0 = linear(keys[0], input_size, 2 * memory_size + 2 * hidden_size)
    wp1, bp1 = linear(keys[1], hidden_size, 2 * memory_size + 2 * output_size)
    (wy0, wt0, wig0, wog0), (by0, bt0, big0, bog0) = split_pre(
        wp0, bp0, memory_size, hidden_size)
    (wy1, wt1, wig1, wog1), (by1, bt1, big1, bog1) = split_pre(
        wp1, bp1, memory_size, output_size)

    # mix weights generated in the view_as_real(...).flatten(2) column order
    # (j, k, [re, im]) and split into re/im matrices of shape (N, out).
    wm0_full, bm0 = linear(keys[2], memory_size * context_size, hidden_size)
    wm1_full, bm1 = linear(keys[3], memory_size * context_size, output_size)
    wm0 = wm0_full.reshape(memory_size, ctx_half, 2, hidden_size)
    wm1 = wm1_full.reshape(memory_size, ctx_half, 2, output_size)
    wm0re = wm0[:, :, 0, :].reshape(N, hidden_size)
    wm0im = wm0[:, :, 1, :].reshape(N, hidden_size)
    wm1re = wm1[:, :, 0, :].reshape(N, output_size)
    wm1im = wm1[:, :, 1, :].reshape(N, output_size)

    # OuterLaplaceAggregation decay/frequency params (deterministic):
    # gamma[j, k] = exp(-|a_j|) * (cos(w_k) + i*sin(w_k)), w_k = 2*pi/period_k
    a = jnp.linspace(5e-3, 0.25, memory_size)
    omega = 2.0 * math.pi / jnp.linspace(min_period, max_period, ctx_half)
    decay = jnp.exp(-jnp.abs(a))[:, None]
    gre = (decay * jnp.cos(omega)[None, :]).reshape(1, N).astype(jnp.float32)
    gim = (decay * jnp.sin(omega)[None, :]).reshape(1, N).astype(jnp.float32)

    return dict(
        wy0=wy0, by0=by0, wig0=wig0, big0=big0, wt0=wt0, bt0=bt0,
        wog0=wog0, bog0=bog0,
        wy1=wy1, by1=by1, wig1=wig1, big1=big1, wt1=wt1, bt1=bt1,
        wog1=wog1, bog1=bog1,
        wm0re=wm0re, wm0im=wm0im, bm0=bm0,
        wm1re=wm1re, wm1im=wm1im, bm1=bm1,
        gre=gre, gim=gim)


def ffm_double_ref(x, p, *, mem, ctx_half):
    """Pure-JAX (f32, HIGHEST precision) reference mirroring the PyTorch forward."""
    B, T, F = x.shape
    N = mem * ctx_half
    hp = jax.lax.Precision.HIGHEST
    g2r = p["gre"].reshape(mem, ctx_half)
    g2i = p["gim"].reshape(mem, ctx_half)

    def stage(inp, wy, by, wig, big, wt, bt, wog, bog, wmre, wmim, bm):
        y = jnp.einsum("btf,fp->btp", inp, wy, precision=hp) + by
        in_g = jax.nn.sigmoid(jnp.einsum("btf,fp->btp", inp, wig, precision=hp) + big)
        thru = jnp.einsum("btf,fp->btp", inp, wt, precision=hp) + bt
        out_g = jax.nn.sigmoid(jnp.einsum("btf,fp->btp", inp, wog, precision=hp) + bog)
        yg = y * in_g

        def step(carry, yt):
            sr, si = carry
            nr = g2r * sr - g2i * si + yt[..., None]
            ni = g2r * si + g2i * sr
            return (nr, ni), (nr, ni)

        init = (jnp.zeros((B, mem, ctx_half)), jnp.zeros((B, mem, ctx_half)))
        _, (Sr, Si) = jax.lax.scan(step, init, jnp.swapaxes(yg, 0, 1))
        Sr = jnp.swapaxes(Sr, 0, 1).reshape(B, T, N)
        Si = jnp.swapaxes(Si, 0, 1).reshape(B, T, N)
        z = (jnp.einsum("btn,no->bto", Sr, wmre, precision=hp)
             + jnp.einsum("btn,no->bto", Si, wmim, precision=hp) + bm)
        mu = z.mean(-1, keepdims=True)
        var = ((z - mu) ** 2).mean(-1, keepdims=True)
        zn = (z - mu) / jnp.sqrt(var + 1e-5)
        return zn * out_g + thru * (1.0 - out_g), Sr, Si

    out0, s0r, s0i = stage(x, p["wy0"], p["by0"], p["wig0"], p["big0"],
                           p["wt0"], p["bt0"], p["wog0"], p["bog0"],
                           p["wm0re"], p["wm0im"], p["bm0"])
    out1, s1r, s1i = stage(out0, p["wy1"], p["by1"], p["wig1"], p["big1"],
                           p["wt1"], p["bt1"], p["wog1"], p["bog1"],
                           p["wm1re"], p["wm1im"], p["bm1"])
    return out1, s0r, s0i, s1r, s1i


if __name__ == "__main__":
    B, T = 16, 8
    bb = 8                     # batch block -> grid of 2 parallel steps
    input_size = 32
    hidden_size = 32
    output_size = 32           # must equal hidden_size (see note at top)
    memory_size = 8
    context_size = 16
    ctx_half = context_size // 2

    key = jax.random.PRNGKey(0)
    kx, kp = jax.random.split(key)
    x = jax.random.normal(kx, (B, T, input_size), jnp.float32)
    params = init_params(kp, input_size, hidden_size, memory_size,
                         output_size, context_size)

    out1, (state0, state1) = ffm_double_forward(
        x, params, mem=memory_size, hid=hidden_size,
        out_dim=output_size, ctx_half=ctx_half, bb=bb)
    out1 = jax.block_until_ready(out1)
    jax.block_until_ready((state0, state1))

    # sanity check against the pure-JAX f32 reference (kernel uses bf16 MXU).
    ref_out1, r0r, r0i, r1r, r1i = ffm_double_ref(
        x, params, mem=memory_size, ctx_half=ctx_half)
    np.testing.assert_allclose(np.asarray(out1), np.asarray(ref_out1),
                               rtol=5e-2, atol=5e-2)
    np.testing.assert_allclose(
        np.asarray(jnp.real(state0)).reshape(B, T, -1), np.asarray(r0r),
        rtol=5e-2, atol=5e-2)
    np.testing.assert_allclose(
        np.asarray(jnp.imag(state1)).reshape(B, T, -1), np.asarray(r1i),
        rtol=5e-2, atol=5e-2)

    print("KERNEL_OK")
</pallas_src>

<mosaic_0001>
module attributes {stable_mosaic.version = 11 : i64} {
  func.func @_ffm_double_kernel(%arg0: i32, %arg1: memref<8x8x32xf32, #tpu.memory_space<vmem>>, %arg2: memref<8x128xf32, #tpu.memory_space<vmem>>, %arg3: memref<32x8xbf16, #tpu.memory_space<vmem>>, %arg4: memref<1x8xf32, #tpu.memory_space<vmem>>, %arg5: memref<32x8xbf16, #tpu.memory_space<vmem>>, %arg6: memref<1x8xf32, #tpu.memory_space<vmem>>, %arg7: memref<32x32xbf16, #tpu.memory_space<vmem>>, %arg8: memref<1x32xf32, #tpu.memory_space<vmem>>, %arg9: memref<32x32xbf16, #tpu.memory_space<vmem>>, %arg10: memref<1x32xf32, #tpu.memory_space<vmem>>, %arg11: memref<1x128xf32, #tpu.memory_space<vmem>>, %arg12: memref<1x128xf32, #tpu.memory_space<vmem>>, %arg13: memref<128x32xbf16, #tpu.memory_space<vmem>>, %arg14: memref<1x32xf32, #tpu.memory_space<vmem>>, %arg15: memref<32x8xbf16, #tpu.memory_space<vmem>>, %arg16: memref<1x8xf32, #tpu.memory_space<vmem>>, %arg17: memref<32x8xbf16, #tpu.memory_space<vmem>>, %arg18: memref<1x8xf32, #tpu.memory_space<vmem>>, %arg19: memref<32x32xbf16, #tpu.memory_space<vmem>>, %arg20: memref<1x32xf32, #tpu.memory_space<vmem>>, %arg21: memref<32x32xbf16, #tpu.memory_space<vmem>>, %arg22: memref<1x32xf32, #tpu.memory_space<vmem>>, %arg23: memref<1x128xf32, #tpu.memory_space<vmem>>, %arg24: memref<1x128xf32, #tpu.memory_space<vmem>>, %arg25: memref<128x32xbf16, #tpu.memory_space<vmem>>, %arg26: memref<1x32xf32, #tpu.memory_space<vmem>>, %arg27: memref<8x8x32xf32, #tpu.memory_space<vmem>>, %arg28: memref<8x8x128xf32, #tpu.memory_space<vmem>>, %arg29: memref<8x8x128xf32, #tpu.memory_space<vmem>>) attributes {dimension_semantics = [#tpu.dimension_semantics<parallel>], iteration_bounds = array<i64: 2>, scalar_prefetch = 0 : i64, scratch_operands = 0 : i64, tpu.core_type = #tpu.core_type<tc>, window_params = [{transform_indices = @transform_0, window_bounds = array<i64: 8, 8, 32>}, {pipeline_mode = #tpu.pipeline_mode<synchronous>, transform_indices = @transform_1, window_bounds = array<i64: 8, 128>}, {pipeline_mode = #tpu.pipeline_mode<synchronous>, transform_indices = @transform_2, window_bounds = array<i64: 32, 8>}, {pipeline_mode = #tpu.pipeline_mode<synchronous>, transform_indices = @transform_3, window_bounds = array<i64: 1, 8>}, {pipeline_mode = #tpu.pipeline_mode<synchronous>, transform_indices = @transform_4, window_bounds = array<i64: 32, 8>}, {pipeline_mode = #tpu.pipeline_mode<synchronous>, transform_indices = @transform_5, window_bounds = array<i64: 1, 8>}, {pipeline_mode = #tpu.pipeline_mode<synchronous>, transform_indices = @transform_6, window_bounds = array<i64: 32, 32>}, {pipeline_mode = #tpu.pipeline_mode<synchronous>, transform_indices = @transform_7, window_bounds = array<i64: 1, 32>}, {pipeline_mode = #tpu.pipeline_mode<synchronous>, transform_indices = @transform_8, window_bounds = array<i64: 32, 32>}, {pipeline_mode = #tpu.pipeline_mode<synchronous>, transform_indices = @transform_9, window_bounds = array<i64: 1, 32>}, {pipeline_mode = #tpu.pipeline_mode<synchronous>, transform_indices = @transform_10, window_bounds = array<i64: 1, 128>}, {pipeline_mode = #tpu.pipeline_mode<synchronous>, transform_indices = @transform_11, window_bounds = array<i64: 1, 128>}, {pipeline_mode = #tpu.pipeline_mode<synchronous>, transform_indices = @transform_12, window_bounds = array<i64: 128, 32>}, {pipeline_mode = #tpu.pipeline_mode<synchronous>, transform_indices = @transform_13, window_bounds = array<i64: 1, 32>}, {pipeline_mode = #tpu.pipeline_mode<synchronous>, transform_indices = @transform_14, window_bounds = array<i64: 32, 8>}, {pipeline_mode = #tpu.pipeline_mode<synchronous>, transform_indices = @transform_15, window_bounds = array<i64: 1, 8>}, {pipeline_mode = #tpu.pipeline_mode<synchronous>, transform_indices = @transform_16, window_bounds = array<i64: 32, 8>}, {pipeline_mode = #tpu.pipeline_mode<synchronous>, transform_indices = @transform_17, window_bounds = array<i64: 1, 8>}, {pipeline_mode = #tpu.pipeline_mode<synchronous>, transform_indices = @transform_18, window_bounds = array<i64: 32, 32>}, {pipeline_mode = #tpu.pipeline_mode<synchronous>, transform_indices = @transform_19, window_bounds = array<i64: 1, 32>}, {pipeline_mode = #tpu.pipeline_mode<synchronous>, transform_indices = @transform_20, window_bounds = array<i64: 32, 32>}, {pipeline_mode = #tpu.pipeline_mode<synchronous>, transform_indices = @transform_21, window_bounds = array<i64: 1, 32>}, {pipeline_mode = #tpu.pipeline_mode<synchronous>, transform_indices = @transform_22, window_bounds = array<i64: 1, 128>}, {pipeline_mode = #tpu.pipeline_mode<synchronous>, transform_indices = @transform_23, window_bounds = array<i64: 1, 128>}, {pipeline_mode = #tpu.pipeline_mode<synchronous>, transform_indices = @transform_24, window_bounds = array<i64: 128, 32>}, {pipeline_mode = #tpu.pipeline_mode<synchronous>, transform_indices = @transform_25, window_bounds = array<i64: 1, 32>}, {transform_indices = @transform_26, window_bounds = array<i64: 8, 8, 32>}, {transform_indices = @transform_27, window_bounds = array<i64: 8, 8, 128>}, {transform_indices = @transform_28, window_bounds = array<i64: 8, 8, 128>}]} {
    %c0 = arith.constant 0 : index
    %c0_0 = arith.constant 0 : index
    %0 = vector.load %arg2[%c0, %c0_0] : memref<8x128xf32, #tpu.memory_space<vmem>>, vector<8x128xf32>
    %c0_1 = arith.constant 0 : index
    %c0_2 = arith.constant 0 : index
    %c0_3 = arith.constant 0 : index
    %1 = vector.load %arg1[%c0_1, %c0_2, %c0_3] : memref<8x8x32xf32, #tpu.memory_space<vmem>>, vector<8x8x32xf32>
    %2 = vector.shape_cast %1 : vector<8x8x32xf32> to vector<64x32xf32>
    %c0_4 = arith.constant 0 : index
    %c0_5 = arith.constant 0 : index
    %3 = vector.load %arg3[%c0_4, %c0_5] : memref<32x8xbf16, #tpu.memory_space<vmem>>, vector<32x8xbf16>
    %c0_6 = arith.constant 0 : index
    %c0_7 = arith.constant 0 : index
    %4 = vector.load %arg4[%c0_6, %c0_7] : memref<1x8xf32, #tpu.memory_space<vmem>>, vector<1x8xf32>
    %c0_8 = arith.constant 0 : index
    %c0_9 = arith.constant 0 : index
    %5 = vector.load %arg5[%c0_8, %c0_9] : memref<32x8xbf16, #tpu.memory_space<vmem>>, vector<32x8xbf16>
    %c0_10 = arith.constant 0 : index
    %c0_11 = arith.constant 0 : index
    %6 = vector.load %arg6[%c0_10, %c0_11] : memref<1x8xf32, #tpu.memory_space<vmem>>, vector<1x8xf32>
    %c0_12 = arith.constant 0 : index
    %c0_13 = arith.constant 0 : index
    %7 = vector.load %arg7[%c0_12, %c0_13] : memref<32x32xbf16, #tpu.memory_space<vmem>>, vector<32x32xbf16>
    %c0_14 = arith.constant 0 : index
    %c0_15 = arith.constant 0 : index
    %8 = vector.load %arg8[%c0_14, %c0_15] : memref<1x32xf32, #tpu.memory_space<vmem>>, vector<1x32xf32>
    %c0_16 = arith.constant 0 : index
    %c0_17 = arith.constant 0 : index
    %9 = vector.load %arg9[%c0_16, %c0_17] : memref<32x32xbf16, #tpu.memory_space<vmem>>, vector<32x32xbf16>
    %c0_18 = arith.constant 0 : index
    %c0_19 = arith.constant 0 : index
    %10 = vector.load %arg10[%c0_18, %c0_19] : memref<1x32xf32, #tpu.memory_space<vmem>>, vector<1x32xf32>
    %c0_20 = arith.constant 0 : index
    %c0_21 = arith.constant 0 : index
    %11 = vector.load %arg11[%c0_20, %c0_21] : memref<1x128xf32, #tpu.memory_space<vmem>>, vector<1x128xf32>
    %c0_22 = arith.constant 0 : index
    %c0_23 = arith.constant 0 : index
    %12 = vector.load %arg12[%c0_22, %c0_23] : memref<1x128xf32, #tpu.memory_space<vmem>>, vector<1x128xf32>
    %c0_24 = arith.constant 0 : index
    %c0_25 = arith.constant 0 : index
    %13 = vector.load %arg13[%c0_24, %c0_25] : memref<128x32xbf16, #tpu.memory_space<vmem>>, vector<128x32xbf16>
    %c0_26 = arith.constant 0 : index
    %c0_27 = arith.constant 0 : index
    %14 = vector.load %arg14[%c0_26, %c0_27] : memref<1x32xf32, #tpu.memory_space<vmem>>, vector<1x32xf32>
    %15 = arith.truncf %2 : vector<64x32xf32> to vector<64x32xbf16>
    %cst = arith.constant dense<0.000000e+00> : vector<64x8xf32>
    %16 = tpu.matmul %15, %3, %cst {dimension_numbers = #tpu.dot_dimension_numbers<[1], [0], [0], [1], [0, 0, 1, 1], [], []>} : vector<64x32xbf16>, vector<32x8xbf16>, vector<64x8xf32> -> vector<64x8xf32>
    %17 = vector.broadcast %4 : vector<1x8xf32> to vector<64x8xf32>
    %18 = arith.addf %16, %17 : vector<64x8xf32>
    %cst_28 = arith.constant dense<0.000000e+00> : vector<64x8xf32>
    %19 = tpu.matmul %15, %5, %cst_28 {dimension_numbers = #tpu.dot_dimension_numbers<[1], [0], [0], [1], [0, 0, 1, 1], [], []>} : vector<64x32xbf16>, vector<32x8xbf16>, vector<64x8xf32> -> vector<64x8xf32>
    %20 = vector.broadcast %6 : vector<1x8xf32> to vector<64x8xf32>
    %21 = arith.addf %19, %20 : vector<64x8xf32>
    %22 = arith.negf %21 : vector<64x8xf32>
    %23 = math.exp %22 : vector<64x8xf32>
    %cst_29 = arith.constant 1.000000e+00 : f32
    %24 = vector.broadcast %cst_29 : f32 to vector<64x8xf32>
    %25 = arith.addf %24, %23 : vector<64x8xf32>
    %26 = arith.divf %24, %25 : vector<64x8xf32>
    %cst_30 = arith.constant dense<0.000000e+00> : vector<64x32xf32>
    %27 = tpu.matmul %15, %7, %cst_30 {dimension_numbers = #tpu.dot_dimension_numbers<[1], [0], [0], [1], [0, 0, 1, 1], [], []>} : vector<64x32xbf16>, vector<32x32xbf16>, vector<64x32xf32> -> vector<64x32xf32>
    %28 = vector.broadcast %8 : vector<1x32xf32> to vector<64x32xf32>
    %29 = arith.addf %27, %28 : vector<64x32xf32>
    %cst_31 = arith.constant dense<0.000000e+00> : vector<64x32xf32>
    %30 = tpu.matmul %15, %9, %cst_31 {dimension_numbers = #tpu.dot_dimension_numbers<[1], [0], [0], [1], [0, 0, 1, 1], [], []>} : vector<64x32xbf16>, vector<32x32xbf16>, vector<64x32xf32> -> vector<64x32xf32>
    %31 = vector.broadcast %10 : vector<1x32xf32> to vector<64x32xf32>
    %32 = arith.addf %30, %31 : vector<64x32xf32>
    %33 = arith.negf %32 : vector<64x32xf32>
    %34 = math.exp %33 : vector<64x32xf32>
    %cst_32 = arith.constant 1.000000e+00 : f32
    %35 = vector.broadcast %cst_32 : f32 to vector<64x32xf32>
    %36 = arith.addf %35, %34 : vector<64x32xf32>
    %37 = arith.divf %35, %36 : vector<64x32xf32>
    %38 = arith.mulf %18, %26 : vector<64x8xf32>
    %cst_33 = arith.constant dense<0.000000e+00> : vector<64x128xf32>
    %39 = tpu.matmul %38, %0, %cst_33 {dimension_numbers = #tpu.dot_dimension_numbers<[1], [0], [0], [1], [0, 0, 1, 1], [], []>} : vector<64x8xf32>, vector<8x128xf32>, vector<64x128xf32> -> vector<64x128xf32>
    %40 = vector.shape_cast %39 : vector<64x128xf32> to vector<8x8x128xf32>
    %41 = vector.extract_strided_slice %40 {offsets = [0, 0, 0], sizes = [8, 1, 128], strides = [1, 1, 1]} : vector<8x8x128xf32> to vector<8x1x128xf32>
    %42 = vector.shape_cast %41 : vector<8x1x128xf32> to vector<8x128xf32>
    %43 = vector.shape_cast %42 : vector<8x128xf32> to vector<8x1x128xf32>
    %c0_34 = arith.constant 0 : index
    %c0_35 = arith.constant 0 : index
    %c0_36 = arith.constant 0 : index
    %44 = vector.load %arg28[%c0_34, %c0_35, %c0_36] : memref<8x8x128xf32, #tpu.memory_space<vmem>>, vector<8x1x128xf32>
    tpu.vector_store %arg28[%c0_34, %c0_35, %c0_36], %43 {strides = array<i32>} : memref<8x8x128xf32, #tpu.memory_space<vmem>>, vector<8x1x128xf32>,
    %45 = vector.broadcast %11 : vector<1x128xf32> to vector<8x128xf32>
    %46 = arith.mulf %45, %42 : vector<8x128xf32>
    %c64_i32 = arith.constant 64 : i32
    %47 = tpu.dynamic_rotate %42 by %c64_i32 dim 1 : vector<8x128xf32>, i32 -> vector<8x128xf32>
    %48 = vector.broadcast %12 : vector<1x128xf32> to vector<8x128xf32>
    %49 = arith.mulf %48, %47 : vector<8x128xf32>
    %50 = arith.addf %46, %49 : vector<8x128xf32>
    %51 = vector.extract_strided_slice %40 {offsets = [0, 1, 0], sizes = [8, 1, 128], strides = [1, 1, 1]} : vector<8x8x128xf32> to vector<8x1x128xf32>
    %52 = vector.shape_cast %51 : vector<8x1x128xf32> to vector<8x128xf32>
    %53 = arith.addf %50, %52 : vector<8x128xf32>
    %54 = vector.shape_cast %53 : vector<8x128xf32> to vector<8x1x128xf32>
    %c0_37 = arith.constant 0 : index
    %c1 = arith.constant 1 : index
    %c0_38 = arith.constant 0 : index
    %55 = vector.load %arg28[%c0_37, %c1, %c0_38] : memref<8x8x128xf32, #tpu.memory_space<vmem>>, vector<8x1x128xf32>
    tpu.vector_store %arg28[%c0_37, %c1, %c0_38], %54 {strides = array<i32>} : memref<8x8x128xf32, #tpu.memory_space<vmem>>, vector<8x1x128xf32>,
    %56 = vector.broadcast %11 : vector<1x128xf32> to vector<8x128xf32>
    %57 = arith.mulf %56, %53 : vector<8x128xf32>
    %c64_i32_39 = arith.constant 64 : i32
    %58 = tpu.dynamic_rotate %53 by %c64_i32_39 dim 1 : vector<8x128xf32>, i32 -> vector<8x128xf32>
    %59 = vector.broadcast %12 : vector<1x128xf32> to vector<8x128xf32>
    %60 = arith.mulf %59, %58 : vector<8x128xf32>
    %61 = arith.addf %57, %60 : vector<8x128xf32>
    %62 = vector.extract_strided_slice %40 {offsets = [0, 2, 0], sizes = [8, 1, 128], strides = [1, 1, 1]} : vector<8x8x128xf32> to vector<8x1x128xf32>
    %63 = vector.shape_cast %62 : vector<8x1x128xf32> to vector<8x128xf32>
    %64 = arith.addf %61, %63 : vector<8x128xf32>
    %65 = vector.shape_cast %64 : vector<8x128xf32> to vector<8x1x128xf32>
    %c0_40 = arith.constant 0 : index
    %c2 = arith.constant 2 : index
    %c0_41 = arith.constant 0 : index
    %66 = vector.load %arg28[%c0_40, %c2, %c0_41] : memref<8x8x128xf32, #tpu.memory_space<vmem>>, vector<8x1x128xf32>
    tpu.vector_store %arg28[%c0_40, %c2, %c0_41], %65 {strides = array<i32>} : memref<8x8x128xf32, #tpu.memory_space<vmem>>, vector<8x1x128xf32>,
    %67 = vector.broadcast %11 : vector<1x128xf32> to vector<8x128xf32>
    %68 = arith.mulf %67, %64 : vector<8x128xf32>
    %c64_i32_42 = arith.constant 64 : i32
    %69 = tpu.dynamic_rotate %64 by %c64_i32_42 dim 1 : vector<8x128xf32>, i32 -> vector<8x128xf32>
    %70 = vector.broadcast %12 : vector<1x128xf32> to vector<8x128xf32>
    %71 = arith.mulf %70, %69 : vector<8x128xf32>
    %72 = arith.addf %68, %71 : vector<8x128xf32>
    %73 = vector.extract_strided_slice %40 {offsets = [0, 3, 0], sizes = [8, 1, 128], strides = [1, 1, 1]} : vector<8x8x128xf32> to vector<8x1x128xf32>
    %74 = vector.shape_cast %73 : vector<8x1x128xf32> to vector<8x128xf32>
    %75 = arith.addf %72, %74 : vector<8x128xf32>
    %76 = vector.shape_cast %75 : vector<8x128xf32> to vector<8x1x128xf32>
    %c0_43 = arith.constant 0 : index
    %c3 = arith.constant 3 : index
    %c0_44 = arith.constant 0 : index
    %77 = vector.load %arg28[%c0_43, %c3, %c0_44] : memref<8x8x128xf32, #tpu.memory_space<vmem>>, vector<8x1x128xf32>
    tpu.vector_store %arg28[%c0_43, %c3, %c0_44], %76 {strides = array<i32>} : memref<8x8x128xf32, #tpu.memory_space<vmem>>, vector<8x1x128xf32>,
    %78 = vector.broadcast %11 : vector<1x128xf32> to vector<8x128xf32>
    %79 = arith.mulf %78, %75 : vector<8x128xf32>
    %c64_i32_45 = arith.constant 64 : i32
    %80 = tpu.dynamic_rotate %75 by %c64_i32_45 dim 1 : vector<8x128xf32>, i32 -> vector<8x128xf32>
    %81 = vector.broadcast %12 : vector<1x128xf32> to vector<8x128xf32>
    %82 = arith.mulf %81, %80 : vector<8x128xf32>
    %83 = arith.addf %79, %82 : vector<8x128xf32>
    %84 = vector.extract_strided_slice %40 {offsets = [0, 4, 0], sizes = [8, 1, 128], strides = [1, 1, 1]} : vector<8x8x128xf32> to vector<8x1x128xf32>
    %85 = vector.shape_cast %84 : vector<8x1x128xf32> to vector<8x128xf32>
    %86 = arith.addf %83, %85 : vector<8x128xf32>
    %87 = vector.shape_cast %86 : vector<8x128xf32> to vector<8x1x128xf32>
    %c0_46 = arith.constant 0 : index
    %c4 = arith.constant 4 : index
    %c0_47 = arith.constant 0 : index
    %88 = vector.load %arg28[%c0_46, %c4, %c0_47] : memref<8x8x128xf32, #tpu.memory_space<vmem>>, vector<8x1x128xf32>
    tpu.vector_store %arg28[%c0_46, %c4, %c0_47], %87 {strides = array<i32>} : memref<8x8x128xf32, #tpu.memory_space<vmem>>, vector<8x1x128xf32>,
    %89 = vector.broadcast %11 : vector<1x128xf32> to vector<8x128xf32>
    %90 = arith.mulf %89, %86 : vector<8x128xf32>
    %c64_i32_48 = arith.constant 64 : i32
    %91 = tpu.dynamic_rotate %86 by %c64_i32_48 dim 1 : vector<8x128xf32>, i32 -> vector<8x128xf32>
    %92 = vector.broadcast %12 : vector<1x128xf32> to vector<8x128xf32>
    %93 = arith.mulf %92, %91 : vector<8x128xf32>
    %94 = arith.addf %90, %93 : vector<8x128xf32>
    %95 = vector.extract_strided_slice %40 {offsets = [0, 5, 0], sizes = [8, 1, 128], strides = [1, 1, 1]} : vector<8x8x128xf32> to vector<8x1x128xf32>
    %96 = vector.shape_cast %95 : vector<8x1x128xf32> to vector<8x128xf32>
    %97 = arith.addf %94, %96 : vector<8x128xf32>
    %98 = vector.shape_cast %97 : vector<8x128xf32> to vector<8x1x128xf32>
    %c0_49 = arith.constant 0 : index
    %c5 = arith.constant 5 : index
    %c0_50 = arith.constant 0 : index
    %99 = vector.load %arg28[%c0_49, %c5, %c0_50] : memref<8x8x128xf32, #tpu.memory_space<vmem>>, vector<8x1x128xf32>
    tpu.vector_store %arg28[%c0_49, %c5, %c0_50], %98 {strides = array<i32>} : memref<8x8x128xf32, #tpu.memory_space<vmem>>, vector<8x1x128xf32>,
    %100 = vector.broadcast %11 : vector<1x128xf32> to vector<8x128xf32>
    %101 = arith.mulf %100, %97 : vector<8x128xf32>
    %c64_i32_51 = arith.constant 64 : i32
    %102 = tpu.dynamic_rotate %97 by %c64_i32_51 dim 1 : vector<8x128xf32>, i32 -> vector<8x128xf32>
    %103 = vector.broadcast %12 : vector<1x128xf32> to vector<8x128xf32>
    %104 = arith.mulf %103, %102 : vector<8x128xf32>
    %105 = arith.addf %101, %104 : vector<8x128xf32>
    %106 = vector.extract_strided_slice %40 {offsets = [0, 6, 0], sizes = [8, 1, 128], strides = [1, 1, 1]} : vector<8x8x128xf32> to vector<8x1x128xf32>
    %107 = vector.shape_cast %106 : vector<8x1x128xf32> to vector<8x128xf32>
    %108 = arith.addf %105, %107 : vector<8x128xf32>
    %109 = vector.shape_cast %108 : vector<8x128xf32> to vector<8x1x128xf32>
    %c0_52 = arith.constant 0 : index
    %c6 = arith.constant 6 : index
    %c0_53 = arith.constant 0 : index
    %110 = vector.load %arg28[%c0_52, %c6, %c0_53] : memref<8x8x128xf32, #tpu.memory_space<vmem>>, vector<8x1x128xf32>
    tpu.vector_store %arg28[%c0_52, %c6, %c0_53], %109 {strides = array<i32>} : memref<8x8x128xf32, #tpu.memory_space<vmem>>, vector<8x1x128xf32>,
    %111 = vector.broadcast %11 : vector<1x128xf32> to vector<8x128xf32>
    %112 = arith.mulf %111, %108 : vector<8x128xf32>
    %c64_i32_54 = arith.constant 64 : i32
    %113 = tpu.dynamic_rotate %108 by %c64_i32_54 dim 1 : vector<8x128xf32>, i32 -> vector<8x128xf32>
    %114 = vector.broadcast %12 : vector<1x128xf32> to vector<8x128xf32>
    %115 = arith.mulf %114, %113 : vector<8x128xf32>
    %116 = arith.addf %112, %115 : vector<8x128xf32>
    %117 = vector.extract_strided_slice %40 {offsets = [0, 7, 0], sizes = [8, 1, 128], strides = [1, 1, 1]} : vector<8x8x128xf32> to vector<8x1x128xf32>
    %118 = vector.shape_cast %117 : vector<8x1x128xf32> to vector<8x128xf32>
    %119 = arith.addf %116, %118 : vector<8x128xf32>
    %120 = vector.shape_cast %119 : vector<8x128xf32> to vector<8x1x128xf32>
    %c0_55 = arith.constant 0 : index
    %c7 = arith.constant 7 : index
    %c0_56 = arith.constant 0 : index
    %121 = vector.load %arg28[%c0_55, %c7, %c0_56] : memref<8x8x128xf32, #tpu.memory_space<vmem>>, vector<8x1x128xf32>
    tpu.vector_store %arg28[%c0_55, %c7, %c0_56], %120 {strides = array<i32>} : memref<8x8x128xf32, #tpu.memory_space<vmem>>, vector<8x1x128xf32>,
    %c0_57 = arith.constant 0 : index
    %c0_58 = arith.constant 0 : index
    %c0_59 = arith.constant 0 : index
    %122 = vector.load %arg28[%c0_57, %c0_58, %c0_59] : memref<8x8x128xf32, #tpu.memory_space<vmem>>, vector<8x8x128xf32>
    %123 = vector.shape_cast %122 : vector<8x8x128xf32> to vector<64x128xf32>
    %124 = arith.truncf %123 : vector<64x128xf32> to vector<64x128xbf16>
    %cst_60 = arith.constant dense<0.000000e+00> : vector<64x32xf32>
    %125 = tpu.matmul %124, %13, %cst_60 {dimension_numbers = #tpu.dot_dimension_numbers<[1], [0], [0], [1], [0, 0, 1, 1], [], []>} : vector<64x128xbf16>, vector<128x32xbf16>, vector<64x32xf32> -> vector<64x32xf32>
    %126 = vector.broadcast %14 : vector<1x32xf32> to vector<64x32xf32>
    %127 = arith.addf %125, %126 : vector<64x32xf32>
    %cst_61 = arith.constant dense<0.000000e+00> : vector<64xf32>
    %128 = vector.multi_reduction <add>, %127, %cst_61 [1] : vector<64x32xf32> to vector<64xf32>
    %129 = vector.shape_cast %128 : vector<64xf32> to vector<64x1xf32>
    %cst_62 = arith.constant 3.200000e+01 : f32
    %130 = vector.broadcast %cst_62 : f32 to vector<64x1xf32>
    %131 = arith.divf %129, %130 : vector<64x1xf32>
    %132 = vector.broadcast %131 : vector<64x1xf32> to vector<64x32xf32>
    %133 = arith.subf %127, %132 : vector<64x32xf32>
    %134 = arith.mulf %133, %133 : vector<64x32xf32>
    %cst_63 = arith.constant dense<0.000000e+00> : vector<64xf32>
    %135 = vector.multi_reduction <add>, %134, %cst_63 [1] : vector<64x32xf32> to vector<64xf32>
    %136 = vector.shape_cast %135 : vector<64xf32> to vector<64x1xf32>
    %cst_64 = arith.constant 3.200000e+01 : f32
    %137 = vector.broadcast %cst_64 : f32 to vector<64x1xf32>
    %138 = arith.divf %136, %137 : vector<64x1xf32>
    %139 = vector.broadcast %131 : vector<64x1xf32> to vector<64x32xf32>
    %140 = arith.subf %127, %139 : vector<64x32xf32>
    %cst_65 = arith.constant 9.99999974E-6 : f32
    %141 = vector.broadcast %cst_65 : f32 to vector<64x1xf32>
    %142 = arith.addf %138, %141 : vector<64x1xf32>
    %143 = math.rsqrt %142 : vector<64x1xf32>
    %144 = vector.broadcast %143 : vector<64x1xf32> to vector<64x32xf32>
    %145 = arith.mulf %140, %144 : vector<64x32xf32>
    %146 = arith.subf %145, %29 : vector<64x32xf32>
    %147 = arith.mulf %146, %37 : vector<64x32xf32>
    %148 = arith.addf %29, %147 : vector<64x32xf32>
    %c0_66 = arith.constant 0 : index
    %c0_67 = arith.constant 0 : index
    %149 = vector.load %arg15[%c0_66, %c0_67] : memref<32x8xbf16, #tpu.memory_space<vmem>>, vector<32x8xbf16>
    %c0_68 = arith.constant 0 : index
    %c0_69 = arith.constant 0 : index
    %150 = vector.load %arg16[%c0_68, %c0_69] : memref<1x8xf32, #tpu.memory_space<vmem>>, vector<1x8xf32>
    %c0_70 = arith.constant 0 : index
    %c0_71 = arith.constant 0 : index
    %151 = vector.load %arg17[%c0_70, %c0_71] : memref<32x8xbf16, #tpu.memory_space<vmem>>, vector<32x8xbf16>
    %c0_72 = arith.constant 0 : index
    %c0_73 = arith.constant 0 : index
    %152 = vector.load %arg18[%c0_72, %c0_73] : memref<1x8xf32, #tpu.memory_space<vmem>>, vector<1x8xf32>
    %c0_74 = arith.constant 0 : index
    %c0_75 = arith.constant 0 : index
    %153 = vector.load %arg19[%c0_74, %c0_75] : memref<32x32xbf16, #tpu.memory_space<vmem>>, vector<32x32xbf16>
    %c0_76 = arith.constant 0 : index
    %c0_77 = arith.constant 0 : index
    %154 = vector.load %arg20[%c0_76, %c0_77] : memref<1x32xf32, #tpu.memory_space<vmem>>, vector<1x32xf32>
    %c0_78 = arith.constant 0 : index
    %c0_79 = arith.constant 0 : index
    %155 = vector.load %arg21[%c0_78, %c0_79] : memref<32x32xbf16, #tpu.memory_space<vmem>>, vector<32x32xbf16>
    %c0_80 = arith.constant 0 : index
    %c0_81 = arith.constant 0 : index
    %156 = vector.load %arg22[%c0_80, %c0_81] : memref<1x32xf32, #tpu.memory_space<vmem>>, vector<1x32xf32>
    %c0_82 = arith.constant 0 : index
    %c0_83 = arith.constant 0 : index
    %157 = vector.load %arg23[%c0_82, %c0_83] : memref<1x128xf32, #tpu.memory_space<vmem>>, vector<1x128xf32>
    %c0_84 = arith.constant 0 : index
    %c0_85 = arith.constant 0 : index
    %158 = vector.load %arg24[%c0_84, %c0_85] : memref<1x128xf32, #tpu.memory_space<vmem>>, vector<1x128xf32>
    %c0_86 = arith.constant 0 : index
    %c0_87 = arith.constant 0 : index
    %159 = vector.load %arg25[%c0_86, %c0_87] : memref<128x32xbf16, #tpu.memory_space<vmem>>, vector<128x32xbf16>
    %c0_88 = arith.constant 0 : index
    %c0_89 = arith.constant 0 : index
    %160 = vector.load %arg26[%c0_88, %c0_89] : memref<1x32xf32, #tpu.memory_space<vmem>>, vector<1x32xf32>
    %161 = arith.truncf %148 : vector<64x32xf32> to vector<64x32xbf16>
    %cst_90 = arith.constant dense<0.000000e+00> : vector<64x8xf32>
    %162 = tpu.matmul %161, %149, %cst_90 {dimension_numbers = #tpu.dot_dimension_numbers<[1], [0], [0], [1], [0, 0, 1, 1], [], []>} : vector<64x32xbf16>, vector<32x8xbf16>, vector<64x8xf32> -> vector<64x8xf32>
    %163 = vector.broadcast %150 : vector<1x8xf32> to vector<64x8xf32>
    %164 = arith.addf %162, %163 : vector<64x8xf32>
    %cst_91 = arith.constant dense<0.000000e+00> : vector<64x8xf32>
    %165 = tpu.matmul %161, %151, %cst_91 {dimension_numbers = #tpu.dot_dimension_numbers<[1], [0], [0], [1], [0, 0, 1, 1], [], []>} : vector<64x32xbf16>, vector<32x8xbf16>, vector<64x8xf32> -> vector<64x8xf32>
    %166 = vector.broadcast %152 : vector<1x8xf32> to vector<64x8xf32>
    %167 = arith.addf %165, %166 : vector<64x8xf32>
    %168 = arith.negf %167 : vector<64x8xf32>
    %169 = math.exp %168 : vector<64x8xf32>
    %cst_92 = arith.constant 1.000000e+00 : f32
    %170 = vector.broadcast %cst_92 : f32 to vector<64x8xf32>
    %171 = arith.addf %170, %169 : vector<64x8xf32>
    %172 = arith.divf %170, %171 : vector<64x8xf32>
    %cst_93 = arith.constant dense<0.000000e+00> : vector<64x32xf32>
    %173 = tpu.matmul %161, %153, %cst_93 {dimension_numbers = #tpu.dot_dimension_numbers<[1], [0], [0], [1], [0, 0, 1, 1], [], []>} : vector<64x32xbf16>, vector<32x32xbf16>, vector<64x32xf32> -> vector<64x32xf32>
    %174 = vector.broadcast %154 : vector<1x32xf32> to vector<64x32xf32>
    %175 = arith.addf %173, %174 : vector<64x32xf32>
    %cst_94 = arith.constant dense<0.000000e+00> : vector<64x32xf32>
    %176 = tpu.matmul %161, %155, %cst_94 {dimension_numbers = #tpu.dot_dimension_numbers<[1], [0], [0], [1], [0, 0, 1, 1], [], []>} : vector<64x32xbf16>, vector<32x32xbf16>, vector<64x32xf32> -> vector<64x32xf32>
    %177 = vector.broadcast %156 : vector<1x32xf32> to vector<64x32xf32>
    %178 = arith.addf %176, %177 : vector<64x32xf32>
    %179 = arith.negf %178 : vector<64x32xf32>
    %180 = math.exp %179 : vector<64x32xf32>
    %cst_95 = arith.constant 1.000000e+00 : f32
    %181 = vector.broadcast %cst_95 : f32 to vector<64x32xf32>
    %182 = arith.addf %181, %180 : vector<64x32xf32>
    %183 = arith.divf %181, %182 : vector<64x32xf32>
    %184 = arith.mulf %164, %172 : vector<64x8xf32>
    %cst_96 = arith.constant dense<0.000000e+00> : vector<64x128xf32>
    %185 = tpu.matmul %184, %0, %cst_96 {dimension_numbers = #tpu.dot_dimension_numbers<[1], [0], [0], [1], [0, 0, 1, 1], [], []>} : vector<64x8xf32>, vector<8x128xf32>, vector<64x128xf32> -> vector<64x128xf32>
    %186 = vector.shape_cast %185 : vector<64x128xf32> to vector<8x8x128xf32>
    %187 = vector.extract_strided_slice %186 {offsets = [0, 0, 0], sizes = [8, 1, 128], strides = [1, 1, 1]} : vector<8x8x128xf32> to vector<8x1x128xf32>
    %188 = vector.shape_cast %187 : vector<8x1x128xf32> to vector<8x128xf32>
    %189 = vector.shape_cast %188 : vector<8x128xf32> to vector<8x1x128xf32>
    %c0_97 = arith.constant 0 : index
    %c0_98 = arith.constant 0 : index
    %c0_99 = arith.constant 0 : index
    %190 = vector.load %arg29[%c0_97, %c0_98, %c0_99] : memref<8x8x128xf32, #tpu.memory_space<vmem>>, vector<8x1x128xf32>
    tpu.vector_store %arg29[%c0_97, %c0_98, %c0_99], %189 {strides = array<i32>} : memref<8x8x128xf32, #tpu.memory_space<vmem>>, vector<8x1x128xf32>,
    %191 = vector.broadcast %157 : vector<1x128xf32> to vector<8x128xf32>
    %192 = arith.mulf %191, %188 : vector<8x128xf32>
    %c64_i32_100 = arith.constant 64 : i32
    %193 = tpu.dynamic_rotate %188 by %c64_i32_100 dim 1 : vector<8x128xf32>, i32 -> vector<8x128xf32>
    %194 = vector.broadcast %158 : vector<1x128xf32> to vector<8x128xf32>
    %195 = arith.mulf %194, %193 : vector<8x128xf32>
    %196 = arith.addf %192, %195 : vector<8x128xf32>
    %197 = vector.extract_strided_slice %186 {offsets = [0, 1, 0], sizes = [8, 1, 128], strides = [1, 1, 1]} : vector<8x8x128xf32> to vector<8x1x128xf32>
    %198 = vector.shape_cast %197 : vector<8x1x128xf32> to vector<8x128xf32>
    %199 = arith.addf %196, %198 : vector<8x128xf32>
    %200 = vector.shape_cast %199 : vector<8x128xf32> to vector<8x1x128xf32>
    %c0_101 = arith.constant 0 : index
    %c1_102 = arith.constant 1 : index
    %c0_103 = arith.constant 0 : index
    %201 = vector.load %arg29[%c0_101, %c1_102, %c0_103] : memref<8x8x128xf32, #tpu.memory_space<vmem>>, vector<8x1x128xf32>
    tpu.vector_store %arg29[%c0_101, %c1_102, %c0_103], %200 {strides = array<i32>} : memref<8x8x128xf32, #tpu.memory_space<vmem>>, vector<8x1x128xf32>,
    %202 = vector.broadcast %157 : vector<1x128xf32> to vector<8x128xf32>
    %203 = arith.mulf %202, %199 : vector<8x128xf32>
    %c64_i32_104 = arith.constant 64 : i32
    %204 = tpu.dynamic_rotate %199 by %c64_i32_104 dim 1 : vector<8x128xf32>, i32 -> vector<8x128xf32>
    %205 = vector.broadcast %158 : vector<1x128xf32> to vector<8x128xf32>
    %206 = arith.mulf %205, %204 : vector<8x128xf32>
    %207 = arith.addf %203, %206 : vector<8x128xf32>
    %208 = vector.extract_strided_slice %186 {offsets = [0, 2, 0], sizes = [8, 1, 128], strides = [1, 1, 1]} : vector<8x8x128xf32> to vector<8x1x128xf32>
    %209 = vector.shape_cast %208 : vector<8x1x128xf32> to vector<8x128xf32>
    %210 = arith.addf %207, %209 : vector<8x128xf32>
    %211 = vector.shape_cast %210 : vector<8x128xf32> to vector<8x1x128xf32>
    %c0_105 = arith.constant 0 : index
    %c2_106 = arith.constant 2 : index
    %c0_107 = arith.constant 0 : index
    %212 = vector.load %arg29[%c0_105, %c2_106, %c0_107] : memref<8x8x128xf32, #tpu.memory_space<vmem>>, vector<8x1x128xf32>
    tpu.vector_store %arg29[%c0_105, %c2_106, %c0_107], %211 {strides = array<i32>} : memref<8x8x128xf32, #tpu.memory_space<vmem>>, vector<8x1x128xf32>,
    %213 = vector.broadcast %157 : vector<1x128xf32> to vector<8x128xf32>
    %214 = arith.mulf %213, %210 : vector<8x128xf32>
    %c64_i32_108 = arith.constant 64 : i32
    %215 = tpu.dynamic_rotate %210 by %c64_i32_108 dim 1 : vector<8x128xf32>, i32 -> vector<8x128xf32>
    %216 = vector.broadcast %158 : vector<1x128xf32> to vector<8x128xf32>
    %217 = arith.mulf %216, %215 : vector<8x128xf32>
    %218 = arith.addf %214, %217 : vector<8x128xf32>
    %219 = vector.extract_strided_slice %186 {offsets = [0, 3, 0], sizes = [8, 1, 128], strides = [1, 1, 1]} : vector<8x8x128xf32> to vector<8x1x128xf32>
    %220 = vector.shape_cast %219 : vector<8x1x128xf32> to vector<8x128xf32>
    %221 = arith.addf %218, %220 : vector<8x128xf32>
    %222 = vector.shape_cast %221 : vector<8x128xf32> to vector<8x1x128xf32>
    %c0_109 = arith.constant 0 : index
    %c3_110 = arith.constant 3 : index
    %c0_111 = arith.constant 0 : index
    %223 = vector.load %arg29[%c0_109, %c3_110, %c0_111] : memref<8x8x128xf32, #tpu.memory_space<vmem>>, vector<8x1x128xf32>
    tpu.vector_store %arg29[%c0_109, %c3_110, %c0_111], %222 {strides = array<i32>} : memref<8x8x128xf32, #tpu.memory_space<vmem>>, vector<8x1x128xf32>,
    %224 = vector.broadcast %157 : vector<1x128xf32> to vector<8x128xf32>
    %225 = arith.mulf %224, %221 : vector<8x128xf32>
    %c64_i32_112 = arith.constant 64 : i32
    %226 = tpu.dynamic_rotate %221 by %c64_i32_112 dim 1 : vector<8x128xf32>, i32 -> vector<8x128xf32>
    %227 = vector.broadcast %158 : vector<1x128xf32> to vector<8x128xf32>
    %228 = arith.mulf %227, %226 : vector<8x128xf32>
    %229 = arith.addf %225, %228 : vector<8x128xf32>
    %230 = vector.extract_strided_slice %186 {offsets = [0, 4, 0], sizes = [8, 1, 128], strides = [1, 1, 1]} : vector<8x8x128xf32> to vector<8x1x128xf32>
    %231 = vector.shape_cast %230 : vector<8x1x128xf32> to vector<8x128xf32>
    %232 = arith.addf %229, %231 : vector<8x128xf32>
    %233 = vector.shape_cast %232 : vector<8x128xf32> to vector<8x1x128xf32>
    %c0_113 = arith.constant 0 : index
    %c4_114 = arith.constant 4 : index
    %c0_115 = arith.constant 0 : index
    %234 = vector.load %arg29[%c0_113, %c4_114, %c0_115] : memref<8x8x128xf32, #tpu.memory_space<vmem>>, vector<8x1x128xf32>
    tpu.vector_store %arg29[%c0_113, %c4_114, %c0_115], %233 {strides = array<i32>} : memref<8x8x128xf32, #tpu.memory_space<vmem>>, vector<8x1x128xf32>,
    %235 = vector.broadcast %157 : vector<1x128xf32> to vector<8x128xf32>
    %236 = arith.mulf %235, %232 : vector<8x128xf32>
    %c64_i32_116 = arith.constant 64 : i32
    %237 = tpu.dynamic_rotate %232 by %c64_i32_116 dim 1 : vector<8x128xf32>, i32 -> vector<8x128xf32>
    %238 = vector.broadcast %158 : vector<1x128xf32> to vector<8x128xf32>
    %239 = arith.mulf %238, %237 : vector<8x128xf32>
    %240 = arith.addf %236, %239 : vector<8x128xf32>
    %241 = vector.extract_strided_slice %186 {offsets = [0, 5, 0], sizes = [8, 1, 128], strides = [1, 1, 1]} : vector<8x8x128xf32> to vector<8x1x128xf32>
    %242 = vector.shape_cast %241 : vector<8x1x128xf32> to vector<8x128xf32>
    %243 = arith.addf %240, %242 : vector<8x128xf32>
    %244 = vector.shape_cast %243 : vector<8x128xf32> to vector<8x1x128xf32>
    %c0_117 = arith.constant 0 : index
    %c5_118 = arith.constant 5 : index
    %c0_119 = arith.constant 0 : index
    %245 = vector.load %arg29[%c0_117, %c5_118, %c0_119] : memref<8x8x128xf32, #tpu.memory_space<vmem>>, vector<8x1x128xf32>
    tpu.vector_store %arg29[%c0_117, %c5_118, %c0_119], %244 {strides = array<i32>} : memref<8x8x128xf32, #tpu.memory_space<vmem>>, vector<8x1x128xf32>,
    %246 = vector.broadcast %157 : vector<1x128xf32> to vector<8x128xf32>
    %247 = arith.mulf %246, %243 : vector<8x128xf32>
    %c64_i32_120 = arith.constant 64 : i32
    %248 = tpu.dynamic_rotate %243 by %c64_i32_120 dim 1 : vector<8x128xf32>, i32 -> vector<8x128xf32>
    %249 = vector.broadcast %158 : vector<1x128xf32> to vector<8x128xf32>
    %250 = arith.mulf %249, %248 : vector<8x128xf32>
    %251 = arith.addf %247, %250 : vector<8x128xf32>
    %252 = vector.extract_strided_slice %186 {offsets = [0, 6, 0], sizes = [8, 1, 128], strides = [1, 1, 1]} : vector<8x8x128xf32> to vector<8x1x128xf32>
    %253 = vector.shape_cast %252 : vector<8x1x128xf32> to vector<8x128xf32>
    %254 = arith.addf %251, %253 : vector<8x128xf32>
    %255 = vector.shape_cast %254 : vector<8x128xf32> to vector<8x1x128xf32>
    %c0_121 = arith.constant 0 : index
    %c6_122 = arith.constant 6 : index
    %c0_123 = arith.constant 0 : index
    %256 = vector.load %arg29[%c0_121, %c6_122, %c0_123] : memref<8x8x128xf32, #tpu.memory_space<vmem>>, vector<8x1x128xf32>
    tpu.vector_store %arg29[%c0_121, %c6_122, %c0_123], %255 {strides = array<i32>} : memref<8x8x128xf32, #tpu.memory_space<vmem>>, vector<8x1x128xf32>,
    %257 = vector.broadcast %157 : vector<1x128xf32> to vector<8x128xf32>
    %258 = arith.mulf %257, %254 : vector<8x128xf32>
    %c64_i32_124 = arith.constant 64 : i32
    %259 = tpu.dynamic_rotate %254 by %c64_i32_124 dim 1 : vector<8x128xf32>, i32 -> vector<8x128xf32>
    %260 = vector.broadcast %158 : vector<1x128xf32> to vector<8x128xf32>
    %261 = arith.mulf %260, %259 : vector<8x128xf32>
    %262 = arith.addf %258, %261 : vector<8x128xf32>
    %263 = vector.extract_strided_slice %186 {offsets = [0, 7, 0], sizes = [8, 1, 128], strides = [1, 1, 1]} : vector<8x8x128xf32> to vector<8x1x128xf32>
    %264 = vector.shape_cast %263 : vector<8x1x128xf32> to vector<8x128xf32>
    %265 = arith.addf %262, %264 : vector<8x128xf32>
    %266 = vector.shape_cast %265 : vector<8x128xf32> to vector<8x1x128xf32>
    %c0_125 = arith.constant 0 : index
    %c7_126 = arith.constant 7 : index
    %c0_127 = arith.constant 0 : index
    %267 = vector.load %arg29[%c0_125, %c7_126, %c0_127] : memref<8x8x128xf32, #tpu.memory_space<vmem>>, vector<8x1x128xf32>
    tpu.vector_store %arg29[%c0_125, %c7_126, %c0_127], %266 {strides = array<i32>} : memref<8x8x128xf32, #tpu.memory_space<vmem>>, vector<8x1x128xf32>,
    %c0_128 = arith.constant 0 : index
    %c0_129 = arith.constant 0 : index
    %c0_130 = arith.constant 0 : index
    %268 = vector.load %arg29[%c0_128, %c0_129, %c0_130] : memref<8x8x128xf32, #tpu.memory_space<vmem>>, vector<8x8x128xf32>
    %269 = vector.shape_cast %268 : vector<8x8x128xf32> to vector<64x128xf32>
    %270 = arith.truncf %269 : vector<64x128xf32> to vector<64x128xbf16>
    %cst_131 = arith.constant dense<0.000000e+00> : vector<64x32xf32>
    %271 = tpu.matmul %270, %159, %cst_131 {dimension_numbers = #tpu.dot_dimension_numbers<[1], [0], [0], [1], [0, 0, 1, 1], [], []>} : vector<64x128xbf16>, vector<128x32xbf16>, vector<64x32xf32> -> vector<64x32xf32>
    %272 = vector.broadcast %160 : vector<1x32xf32> to vector<64x32xf32>
    %273 = arith.addf %271, %272 : vector<64x32xf32>
    %cst_132 = arith.constant dense<0.000000e+00> : vector<64xf32>
    %274 = vector.multi_reduction <add>, %273, %cst_132 [1] : vector<64x32xf32> to vector<64xf32>
    %275 = vector.shape_cast %274 : vector<64xf32> to vector<64x1xf32>
    %cst_133 = arith.constant 3.200000e+01 : f32
    %276 = vector.broadcast %cst_133 : f32 to vector<64x1xf32>
    %277 = arith.divf %275, %276 : vector<64x1xf32>
    %278 = vector.broadcast %277 : vector<64x1xf32> to vector<64x32xf32>
    %279 = arith.subf %273, %278 : vector<64x32xf32>
    %280 = arith.mulf %279, %279 : vector<64x32xf32>
    %cst_134 = arith.constant dense<0.000000e+00> : vector<64xf32>
    %281 = vector.multi_reduction <add>, %280, %cst_134 [1] : vector<64x32xf32> to vector<64xf32>
    %282 = vector.shape_cast %281 : vector<64xf32> to vector<64x1xf32>
    %cst_135 = arith.constant 3.200000e+01 : f32
    %283 = vector.broadcast %cst_135 : f32 to vector<64x1xf32>
    %284 = arith.divf %282, %283 : vector<64x1xf32>
    %285 = vector.broadcast %277 : vector<64x1xf32> to vector<64x32xf32>
    %286 = arith.subf %273, %285 : vector<64x32xf32>
    %cst_136 = arith.constant 9.99999974E-6 : f32
    %287 = vector.broadcast %cst_136 : f32 to vector<64x1xf32>
    %288 = arith.addf %284, %287 : vector<64x1xf32>
    %289 = math.rsqrt %288 : vector<64x1xf32>
    %290 = vector.broadcast %289 : vector<64x1xf32> to vector<64x32xf32>
    %291 = arith.mulf %286, %290 : vector<64x32xf32>
    %292 = arith.subf %291, %175 : vector<64x32xf32>
    %293 = arith.mulf %292, %183 : vector<64x32xf32>
    %294 = arith.addf %175, %293 : vector<64x32xf32>
    %295 = vector.shape_cast %294 : vector<64x32xf32> to vector<8x8x32xf32>
    %c0_137 = arith.constant 0 : index
    %c0_138 = arith.constant 0 : index
    %c0_139 = arith.constant 0 : index
    %296 = vector.load %arg27[%c0_137, %c0_138, %c0_139] : memref<8x8x32xf32, #tpu.memory_space<vmem>>, vector<8x8x32xf32>
    tpu.vector_store %arg27[%c0_137, %c0_138, %c0_139], %295 {strides = array<i32>} : memref<8x8x32xf32, #tpu.memory_space<vmem>>, vector<8x8x32xf32>,
    return
  }
  func.func @transform_0(%arg0: i32) -> (i32, i32, i32) {
    %c0_i32 = arith.constant 0 : i32
    %c0_i32_0 = arith.constant 0 : i32
    %c0_i32_1 = arith.constant 0 : i32
    return %arg0, %c0_i32, %c0_i32_0 : i32, i32, i32
  }
  func.func @transform_1(%arg0: i32) -> (i32, i32) {
    %c0_i32 = arith.constant 0 : i32
    %c0_i32_0 = arith.constant 0 : i32
    %c0_i32_1 = arith.constant 0 : i32
    return %c0_i32, %c0_i32_0 : i32, i32
  }
  func.func @transform_2(%arg0: i32) -> (i32, i32) {
    %c0_i32 = arith.constant 0 : i32
    %c0_i32_0 = arith.constant 0 : i32
    %c0_i32_1 = arith.constant 0 : i32
    return %c0_i32, %c0_i32_0 : i32, i32
  }
  func.func @transform_3(%arg0: i32) -> (i32, i32) {
    %c0_i32 = arith.constant 0 : i32
    %c0_i32_0 = arith.constant 0 : i32
    %c0_i32_1 = arith.constant 0 : i32
    return %c0_i32, %c0_i32_0 : i32, i32
  }
  func.func @transform_4(%arg0: i32) -> (i32, i32) {
    %c0_i32 = arith.constant 0 : i32
    %c0_i32_0 = arith.constant 0 : i32
    %c0_i32_1 = arith.constant 0 : i32
    return %c0_i32, %c0_i32_0 : i32, i32
  }
  func.func @transform_5(%arg0: i32) -> (i32, i32) {
    %c0_i32 = arith.constant 0 : i32
    %c0_i32_0 = arith.constant 0 : i32
    %c0_i32_1 = arith.constant 0 : i32
    return %c0_i32, %c0_i32_0 : i32, i32
  }
  func.func @transform_6(%arg0: i32) -> (i32, i32) {
    %c0_i32 = arith.constant 0 : i32
    %c0_i32_0 = arith.constant 0 : i32
    %c0_i32_1 = arith.constant 0 : i32
    return %c0_i32, %c0_i32_0 : i32, i32
  }
  func.func @transform_7(%arg0: i32) -> (i32, i32) {
    %c0_i32 = arith.constant 0 : i32
    %c0_i32_0 = arith.constant 0 : i32
    %c0_i32_1 = arith.constant 0 : i32
    return %c0_i32, %c0_i32_0 : i32, i32
  }
  func.func @transform_8(%arg0: i32) -> (i32, i32) {
    %c0_i32 = arith.constant 0 : i32
    %c0_i32_0 = arith.constant 0 : i32
    %c0_i32_1 = arith.constant 0 : i32
    return %c0_i32, %c0_i32_0 : i32, i32
  }
  func.func @transform_9(%arg0: i32) -> (i32, i32) {
    %c0_i32 = arith.constant 0 : i32
    %c0_i32_0 = arith.constant 0 : i32
    %c0_i32_1 = arith.constant 0 : i32
    return %c0_i32, %c0_i32_0 : i32, i32
  }
  func.func @transform_10(%arg0: i32) -> (i32, i32) {
    %c0_i32 = arith.constant 0 : i32
    %c0_i32_0 = arith.constant 0 : i32
    %c0_i32_1 = arith.constant 0 : i32
    return %c0_i32, %c0_i32_0 : i32, i32
  }
  func.func @transform_11(%arg0: i32) -> (i32, i32) {
    %c0_i32 = arith.constant 0 : i32
    %c0_i32_0 = arith.constant 0 : i32
    %c0_i32_1 = arith.constant 0 : i32
    return %c0_i32, %c0_i32_0 : i32, i32
  }
  func.func @transform_12(%arg0: i32) -> (i32, i32) {
    %c0_i32 = arith.constant 0 : i32
    %c0_i32_0 = arith.constant 0 : i32
    %c0_i32_1 = arith.constant 0 : i32
    return %c0_i32, %c0_i32_0 : i32, i32
  }
  func.func @transform_13(%arg0: i32) -> (i32, i32) {
    %c0_i32 = arith.constant 0 : i32
    %c0_i32_0 = arith.constant 0 : i32
    %c0_i32_1 = arith.constant 0 : i32
    return %c0_i32, %c0_i32_0 : i32, i32
  }
  func.func @transform_14(%arg0: i32) -> (i32, i32) {
    %c0_i32 = arith.constant 0 : i32
    %c0_i32_0 = arith.constant 0 : i32
    %c0_i32_1 = arith.constant 0 : i32
    return %c0_i32, %c0_i32_0 : i32, i32
  }
  func.func @transform_15(%arg0: i32) -> (i32, i32) {
    %c0_i32 = arith.constant 0 : i32
    %c0_i32_0 = arith.constant 0 : i32
    %c0_i32_1 = arith.constant 0 : i32
    return %c0_i32, %c0_i32_0 : i32, i32
  }
  func.func @transform_16(%arg0: i32) -> (i32, i32) {
    %c0_i32 = arith.constant 0 : i32
    %c0_i32_0 = arith.constant 0 : i32
    %c0_i32_1 = arith.constant 0 : i32
    return %c0_i32, %c0_i32_0 : i32, i32
  }
  func.func @transform_17(%arg0: i32) -> (i32, i32) {
    %c0_i32 = arith.constant 0 : i32
    %c0_i32_0 = arith.constant 0 : i32
    %c0_i32_1 = arith.constant 0 : i32
    return %c0_i32, %c0_i32_0 : i32, i32
  }
  func.func @transform_18(%arg0: i32) -> (i32, i32) {
    %c0_i32 = arith.constant 0 : i32
    %c0_i32_0 = arith.constant 0 : i32
    %c0_i32_1 = arith.constant 0 : i32
    return %c0_i32, %c0_i32_0 : i32, i32
  }
  func.func @transform_19(%arg0: i32) -> (i32, i32) {
    %c0_i32 = arith.constant 0 : i32
    %c0_i32_0 = arith.constant 0 : i32
    %c0_i32_1 = arith.constant 0 : i32
    return %c0_i32, %c0_i32_0 : i32, i32
  }
  func.func @transform_20(%arg0: i32) -> (i32, i32) {
    %c0_i32 = arith.constant 0 : i32
    %c0_i32_0 = arith.constant 0 : i32
    %c0_i32_1 = arith.constant 0 : i32
    return %c0_i32, %c0_i32_0 : i32, i32
  }
  func.func @transform_21(%arg0: i32) -> (i32, i32) {
    %c0_i32 = arith.constant 0 : i32
    %c0_i32_0 = arith.constant 0 : i32
    %c0_i32_1 = arith.constant 0 : i32
    return %c0_i32, %c0_i32_0 : i32, i32
  }
  func.func @transform_22(%arg0: i32) -> (i32, i32) {
    %c0_i32 = arith.constant 0 : i32
    %c0_i32_0 = arith.constant 0 : i32
    %c0_i32_1 = arith.constant 0 : i32
    return %c0_i32, %c0_i32_0 : i32, i32
  }
  func.func @transform_23(%arg0: i32) -> (i32, i32) {
    %c0_i32 = arith.constant 0 : i32
    %c0_i32_0 = arith.constant 0 : i32
    %c0_i32_1 = arith.constant 0 : i32
    return %c0_i32, %c0_i32_0 : i32, i32
  }
  func.func @transform_24(%arg0: i32) -> (i32, i32) {
    %c0_i32 = arith.constant 0 : i32
    %c0_i32_0 = arith.constant 0 : i32
    %c0_i32_1 = arith.constant 0 : i32
    return %c0_i32, %c0_i32_0 : i32, i32
  }
  func.func @transform_25(%arg0: i32) -> (i32, i32) {
    %c0_i32 = arith.constant 0 : i32
    %c0_i32_0 = arith.constant 0 : i32
    %c0_i32_1 = arith.constant 0 : i32
    return %c0_i32, %c0_i32_0 : i32, i32
  }
  func.func @transform_26(%arg0: i32) -> (i32, i32, i32) {
    %c0_i32 = arith.constant 0 : i32
    %c0_i32_0 = arith.constant 0 : i32
    %c0_i32_1 = arith.constant 0 : i32
    return %arg0, %c0_i32, %c0_i32_0 : i32, i32, i32
  }
  func.func @transform_27(%arg0: i32) -> (i32, i32, i32) {
    %c0_i32 = arith.constant 0 : i32
    %c0_i32_0 = arith.constant 0 : i32
    %c0_i32_1 = arith.constant 0 : i32
    return %arg0, %c0_i32, %c0_i32_0 : i32, i32, i32
  }
  func.func @transform_28(%arg0: i32) -> (i32, i32, i32) {
    %c0_i32 = arith.constant 0 : i32
    %c0_i32_0 = arith.constant 0 : i32
    %c0_i32_1 = arith.constant 0 : i32
    return %arg0, %c0_i32, %c0_i32_0 : i32, i32, i32
  }
}

</mosaic_0001>

<bundles_post_ra>
// kernel: tpu_custom_call.1
= control target key start
LH: loop header
LB: loop body
LE: loop exit
PB: predicated region body
PF: predicated region fallthrough
CT: control target
= control target key end

     0   :  { %s6428_s0 = inlined_call_operand.vmem [shape: f32[16,8,32], index: 0, kind: input, shape index: {}]   ;;  %s6429_s1 = inlined_call_operand.vmem [shape: f32[8,128], index: 1, kind: input, shape index: {}]   ;;  %s6430_s2 = inlined_call_operand.vmem [shape: bf16[32,8], index: 2, kind: input, shape index: {}]   ;;  %s6431_s3 = inlined_call_operand.vmem [shape: f32[1,8], index: 3, kind: input, shape index: {}]   ;;  %s6432_s4 = inlined_call_operand.vmem [shape: bf16[32,8], index: 4, kind: input, shape index: {}]   ;;  %s6433_s5 = inlined_call_operand.vmem [shape: f32[1,8], index: 5, kind: input, shape index: {}]   ;;  %s6434_s6 = inlined_call_operand.vmem [shape: bf16[32,32], index: 6, kind: input, shape index: {}]   ;;  %s6435_s7 = inlined_call_operand.vmem [shape: f32[1,32], index: 7, kind: input, shape index: {}]   ;;  %s6436_s8 = inlined_call_operand.vmem [shape: bf16[32,32], index: 8, kind: input, shape index: {}]   ;;  %s6437_s9 = inlined_call_operand.vmem [shape: f32[1,32], index: 9, kind: input, shape index: {}]   ;;  %s6438_s10 = inlined_call_operand.vmem [shape: f32[1,128], index: 10, kind: input, shape index: {}]   ;;  %s6439_s11 = inlined_call_operand.vmem [shape: f32[1,128], index: 11, kind: input, shape index: {}]   ;;  %s6440_s12 = inlined_call_operand.vmem [shape: bf16[128,32], index: 12, kind: input, shape index: {}]   ;;  %s6441_s13 = inlined_call_operand.vmem [shape: f32[1,32], index: 13, kind: input, shape index: {}]   ;;  %s6442_s14 = inlined_call_operand.vmem [shape: bf16[32,8], index: 14, kind: input, shape index: {}]   ;;  %s6443_s15 = inlined_call_operand.vmem [shape: f32[1,8], index: 15, kind: input, shape index: {}]   ;;  %s6444_s16 = inlined_call_operand.vmem [shape: bf16[32,8], index: 16, kind: input, shape index: {}]   ;;  %s6445_s17 = inlined_call_operand.vmem [shape: f32[1,8], index: 17, kind: input, shape index: {}]   ;;  %s6446_s18 = inlined_call_operand.vmem [shape: bf16[32,32], index: 18, kind: input, shape index: {}]   ;;  %s6447_s19 = inlined_call_operand.vmem [shape: f32[1,32], index: 19, kind: input, shape index: {}]   ;;  %s6448_s20 = inlined_call_operand.vmem [shape: bf16[32,32], index: 20, kind: input, shape index: {}]   ;;  %s6449_s21 = inlined_call_operand.vmem [shape: f32[1,32], index: 21, kind: input, shape index: {}]   ;;  %s6450_s22 = inlined_call_operand.vmem [shape: f32[1,128], index: 22, kind: input, shape index: {}]   ;;  %s6451_s23 = inlined_call_operand.vmem [shape: f32[1,128], index: 23, kind: input, shape index: {}]   ;;  %s6452_s24 = inlined_call_operand.vmem [shape: bf16[128,32], index: 24, kind: input, shape index: {}]   ;;  %s6453_s25 = inlined_call_operand.vmem [shape: f32[1,32], index: 25, kind: input, shape index: {}]   ;;  %s6454_s26 = inlined_call_operand.hbm [shape: f32[16,8,32], index: 26, kind: output, shape index: {0}]   ;;  %s6455_s27 = inlined_call_operand.hbm [shape: f32[16,8,128], index: 27, kind: output, shape index: {1}]   ;;  %s6456_s28 = inlined_call_operand.hbm [shape: f32[16,8,128], index: 28, kind: output, shape index: {2}]  }
   0x1   :  { %6479 = sst [smem:[#allocation15_spill]] %s6428_s0 }
   0x2   :  { %6480 = sst [smem:[#allocation16_spill]] %s6429_s1 }
   0x3   :  { %6481 = sst [smem:[#allocation17_spill]] %s6430_s2 }
   0x4   :  { %6482 = sst [smem:[#allocation18_spill]] %s6431_s3 }
   0x5   :  { %6483 = sst [smem:[#allocation19_spill]] %s6432_s4 }
   0x6   :  { %6484 = sst [smem:[#allocation20_spill]] %s6433_s5 }
   0x7   :  { %6485 = sst [smem:[#allocation21_spill]] %s6434_s6 }
   0x8   :  { %6486 = sst [smem:[#allocation22_spill]] %s6435_s7 }
   0x9   :  { %6487 = sst [smem:[#allocation23_spill]] %s6436_s8 }
   0xa   :  { %6488 = sst [smem:[#allocation24_spill]] %s6437_s9 }
   0xb   :  { %6489 = sst [smem:[#allocation25_spill]] %s6438_s10 }
   0xc   :  { %6490 = sst [smem:[#allocation26_spill]] %s6439_s11 }
   0xd   :  { %6491 = sst [smem:[#allocation27_spill]] %s6440_s12 }
   0xe   :  { %6492 = sst [smem:[#allocation28_spill]] %s6441_s13 }
   0xf   :  { %6493 = sst [smem:[#allocation29_spill]] %s6442_s14 }
  0x10   :  { %6494 = sst [smem:[#allocation30_spill]] %s6443_s15 }
  0x11   :  { %6495 = sst [smem:[#allocation31_spill]] %s6444_s16 }
  0x12   :  { %34 = vsyncpa [#allocation3], 0 }
  0x13   :  { %36 = vsyncpa [#allocation3 + $0x1], 0 }
  0x14   :  { %37 = vsyncpa [#allocation5], 0 }
  0x15   :  { %39 = vsyncpa [#allocation5 + $0x1], 0  ;;  %s5119_s8 = smov 0   ;;  %s5121_s5 = smov 0  }
  0x16   :  { %s5123_s9 = smov 0   ;;  %s5125_s30 = smov 0  }
  0x17 LB: > { %6496 = sst [smem:[#allocation9_spill]] %s4953_s8  ;;  %s5140_s3 = sadd.s32 4294967295, %s4965_s30   ;;  %s4965_s30 = sphi %s5125_s30, %s6529_s30   ;;  %s4961_s9 = sphi %s5123_s9, %s6531_s9   ;;  %s4957_s5 = sphi %s5121_s5, %s6533_s5   ;;  %s4953_s8 = sphi %s5119_s8, %s6532_s8  }
  0x18   : > { %6497 = sst [smem:[#allocation10_spill]] %s4961_s9  ;;  %s6463_s6 = sadd.s32 4294967294, %s4965_s30  }
  0x19   : > { %6498 = sst [smem:[#allocation11_spill]] %s4965_s30  ;;  %s5144_s10 = sadd.s32 1, %s4965_s30  }
  0x1a   : > { %6499 = sst [smem:[#allocation12_spill]] %s5144_s10  ;;  %s603_s0 = sadd.s32 1, %s4961_s9 }
  0x1b   : > { %s600_s11 = ssub.s32 %s4965_s30, %s5144_s10  ;;  %p613_p0 = scmp.ne.s32.totalorder %s4961_s9, %s4957_s5 }
  0x1c   : > { %p601_p1 = scmp.eq.s32.totalorder %s600_s11, 0  ;;  %p614_p2 = scmp.eq.s32.totalorder %s5140_s3, 1 }
  0x1d   : > { %p619_p3 = scmp.ne.s32.totalorder %s4957_s5, %s4953_s8  ;;  %p620_p4 = scmp.eq.s32.totalorder %s6463_s6, 1 }
  0x1e   : > { %s5157_s29 = scalar_select %p601_p1, %s4961_s9, %s603_s0  }
  0x1f   : > { %p5159_p5 = por %p614_p2, %p613_p0  ;;  %p5163_p6 = por %p620_p4, %p619_p3 }
  0x20   : > { %6500 = sst [smem:[#allocation13_spill]] %s5157_s29  ;;  %p4139_p7 = scmp.ge.s32.totalorder %s4965_s30, 1 }
  0x21   : > { %s6502_s7 = scalar_select %p5163_p6, 1, 0 }
  0x22   : > { %p774_p8 = scmp.lt.s32.totalorder %s4965_s30, 3 }
  0x23   : > { %6503 = sst [smem:[#allocation14_spill]] %s6502_s7 }
  0x24   : > { %p775_p9 = pnand %p4139_p7, %p774_p8 }
  0x25   : > { %s6504_s4 = sld [smem:[#allocation17_spill]] (!%p775_p9)  ;;  %s4143_s11 = sshll.u32 (!%p775_p9), %s5140_s3, 3 }
  0x26   : > { %778 = sbr.rel (%p775_p9) target bundleno = 3762 (0xeb2), region = 124  ;;  %p859_p10 = scmp.lt.s32.totalorder (!%p775_p9), %s4143_s11, 15 }
  0x27   : > { %s6505_s10 = sld [smem:[#allocation19_spill]] (!%p775_p9)  ;;  %s6471_s0 = sand.u32 (!%p775_p9), 1, %s4957_s5  }
  0x28   : > { %s6506_s12 = sld [smem:[#allocation15_spill]] (!%p775_p9)  ;;  %s6472_s6 = smov (!%p775_p9), 64  }
  0x29   : > { %s6507_s29 = sld [smem:[#allocation21_spill]] (!%p775_p9) }
  0x2a   : > { %s6509_s8 = sld [smem:[#allocation20_spill]] (!%p775_p9) }
  0x2b   : > { %v4656_v0 = vld [vmem:[%s6504_s4 + $0x8] sm:$0xff]   ;;  %v4657_v1 = vld [vmem:[%s6504_s4] sm:$0xff]   ;;  %s6535_s11 = smov (!%p859_p10, %s4143_s11), 15  ;;  %vm938_vm0 = vcmask 261120   ;;  %vm1369_vm1 = vcmask 64512   ;;  %vm1522_vm2 = vcmask 1041409  }
  0x2c   : > { %4431 = vmatprep.subr.bf16.mxu1 %v4656_v0  ;;  %s4144_s7 = sshll.u32 %s6535_s11, 3  ;;  %s6510_s11 = sld [smem:[#allocation18_spill]]  ;;  %vm1525_vm3 = vcmask 1042434   ;;  %vm1528_vm4 = vcmask 1043459   ;;  %vm1531_vm5 = vcmask 1044484   ;;  %vm1534_vm6 = vcmask 1045509  }
  0x2d   : > { %4432 = vmatpush3.bf16.msra.mxu1 %v4656_v0  ;;  %v4658_v2 = vld [vmem:[%s6505_s10 + $0x8] sm:$0xff]   ;;  %v4659_v12 = vld [vmem:[%s6505_s10] sm:$0xff]   ;;  %vm1537_vm7 = vcmask 1046534   ;;  %vm1540_vm8 = vcmask 1047559   ;;  %s6514_s30 = sld [smem:[#allocation23_spill]] }
  0x2e   : > { %4433 = vmatprep.subr.bf16.mxu1 %v4657_v1  ;;  %s862_s1 = scalar_lea.vmem %s6506_s12, %s4144_s7  ;;  %s5277_s12 = sshll.u32 %s6471_s0, 6 }
  0x2f   : > { %v869_v3 = vld [vmem:[%s862_s1] sm:$0xff]  ;;  %v870_v4 = vld [vmem:[%s862_s1 + $0x8] sm:$0xff]  ;;  %v871_v5 = vld [vmem:[%s862_s1 + $0x10] sm:$0xff]  ;;  %s5284_s9 = scalar_lea.vmem [#allocation4], %s5277_s12  ;;  %s6511_s7 = sld [smem:[#allocation25_spill]] }
  0x30   : > { %v916_v6 = vpack.c.bf16 %v870_v4, %v869_v3  ;;  %v872_v7 = vld [vmem:[%s862_s1 + $0x18] sm:$0xff]  ;;  %v873_v8 = vld [vmem:[%s862_s1 + $0x20] sm:$0xff]  ;;  %v874_v9 = vld [vmem:[%s862_s1 + $0x28] sm:$0xff]  ;;  %s6513_s0 = smov 64   ;;  %s6518_s13 = sld [smem:[#allocation28_spill]] }
  0x31   : > { %4434 = vmatpush3.bf16.msra.mxu1 %v4657_v1  ;;  %v5182_v10 = vpack.c.bf16 %v872_v7, %v871_v5  ;;  %v5184_v11 = vpack.c.bf16 %v874_v9, %v873_v8  ;;  %v875_v13 = vld [vmem:[%s862_s1 + $0x30] sm:$0xff]  ;;  %v876_v14 = vld [vmem:[%s862_s1 + $0x38] sm:$0xff]  ;;  %v4660_v16 = vld [vmem:[%s6507_s29 + $0x8] sm:$0xff]   ;;  %s6508_s1 = sld [smem:[#allocation16_spill]] }
  0x32   : > { %4443 = vmatprep.subr.bf16.mxu1 %v4658_v2  ;;  %4435 = vmatprep.mubr.msk.bf16.mxu1 %vm938_vm0, %v916_v6  ;;  %v5195_v15 = vpack.c.bf16 %v876_v14, %v875_v13  ;;  %v4661_v17 = vld [vmem:[%s6507_s29] sm:$0xff]   ;;  %s6519_s14 = sld [smem:[#allocation29_spill]] }
  0x33   : > { %4459 = vmatprep.mubr.msk.bf16.mxu0 %vm938_vm0, %v916_v6  ;;  %4455 = vmatprep.subr.bf16.mxu0 %v4660_v16  ;;  %v4152_v27 = vld [vmem:[%s6509_s8] ss:$0 sm:$0xff]  ;;  %s6516_s8 = sld [smem:[#allocation27_spill]] }
  0x34   : > { %4436 = vmatmul.mubr.msk.bf16.vlgmr.msra.gmra.mxu1 %vm938_vm0, %v5182_v10  ;;  %4456 = vmatpush3.bf16.msra.mxu0 %v4660_v16  ;;  %v4145_v4 = vld [vmem:[%s6510_s11] ss:$0 sm:$0xff]  ;;  %s6520_s16 = sld [smem:[#allocation31_spill]] }
  0x35   : > { %4444 = vmatpush3.bf16.msra.mxu1 %v4658_v2  ;;  %4439 = vmatprep.mubr.msk.bf16.mxu1 %vm938_vm0, %v5184_v11  ;;  %s6521_s10 = sld [smem:[#allocation24_spill]] }
  0x36   : > { %4445 = vmatprep.subr.bf16.mxu1 %v4659_v12  ;;  %4457 = vmatprep.subr.bf16.mxu0 %v4661_v17  ;;  %s6523_s15 = sld [smem:[#allocation30_spill]] }
  0x37   : > { %v868_v18 = vld [vmem:[%s6508_s1] sm:$0xff] }
  0x38   : > { %4458 = vmatpush3.bf16.msra.mxu0 %v4661_v17 }
  0x39   : > { %4446 = vmatpush3.bf16.msra.mxu1 %v4659_v12  ;;  %4479 = vmatprep.subr.mxu0 %v868_v18  ;;  %s6517_s11 = smov %s6516_s8 }
  0x3b   : > { %4460 = vmatmul.mubr.msk.bf16.vlgmr.msra.gmra.mxu0 %vm938_vm0, %v5182_v10 }
  0x3c   : > { %4440 = vmatmul.mubr.msk.bf16.gmra.mxu1 %vm938_vm0, %v5195_v15  ;;  %4463 = vmatprep.mubr.msk.bf16.mxu0 %vm938_vm0, %v5184_v11 }
  0x3d   : > { %4447 = vmatprep.mubr.msk.bf16.mxu1 %vm938_vm0, %v916_v6  ;;  %4480 = vmatpush3.msra.mxu0 %v868_v18 }
  0x43   : > { %4464 = vmatmul.mubr.msk.bf16.gmra.mxu0 %vm938_vm0, %v5195_v15 }
  0x44   : > { %4448 = vmatmul.mubr.msk.bf16.vlgmr.msra.gmra.mxu1 %vm938_vm0, %v5182_v10 }
  0x45   : > { %4451 = vmatprep.mubr.msk.bf16.mxu1 %vm938_vm0, %v5184_v11 }
  0x4c   : > { %4452 = vmatmul.mubr.msk.bf16.gmra.mxu1 %vm938_vm0, %v5195_v15 }
  0x4d   : > { %4471 = vmatprep.mubr.msk.bf16.mxu1 %vm938_vm0, %v916_v6 }
  0xf4   : > { %v5222_v19 = vpop.f32.mrf.mxu1 }
  0xf5   : > { %v994_v13 = vadd.f32 %v5222_v19, %v4145_v4 }
  0xf6   : > { %v5224_v20 = vpop.f32.mrf.mxu1 }
  0xf7   : > { %v986_v5 = vadd.f32 %v4145_v4, %v5224_v20 }
  0xf8   : > { %v5226_v21 = vpop.f32.mrf.mxu1 }
  0xf9   : > { %v997_v18 = vadd.f32 %v5226_v21, %v4145_v4 }
  0xfa   : > { %v5228_v22 = vpop.f32.mrf.mxu1 }
  0xfb   : > { %v989_v9 = vadd.f32 %v4145_v4, %v5228_v22 }
  0xfc   : > { %v5230_v23 = vpop.f32.mrf.mxu1 }
  0xfe   : > { %v5232_v24 = vpop.f32.mrf.mxu1 }
  0xff   : > { %v1002_v20 = vadd.f32 %v4145_v4, %v5232_v24 }
 0x100   : > { %v5234_v25 = vpop.f32.mrf.mxu1 }
 0x102   : > { %v5236_v26 = vpop.f32.mrf.mxu1 }
 0x104   : > { %v4449_v28 = vpop.f32.mrf.mxu1 }
 0x105   : > { %v1077_v29 = vadd.f32 %v4449_v28, %v4152_v27 }
 0x106   : > { %v1068_v30 = vpop.f32.mrf.mxu1 }
 0x107   : > { %v4161_v31 = vmul.f32 -1.442695, %v1077_v29  ;;  %v1069_v32 = vadd.f32 %v4152_v27, %v1068_v30  ;;  %v1005_v30 = vadd.f32 %v4145_v4, %v5236_v26  ;;  %v5260_v26 = vpop.f32.mrf.mxu0 }
 0x108   : > { %v4450_v33 = vpop.f32.mrf.mxu1 }
 0x109   : > { %v4159_v34 = vmul.f32 -1.442695, %v1069_v32  ;;  %v1080_v35 = vadd.f32 %v4450_v33, %v4152_v27  ;;  %4688 = vpow2.f32 %v4161_v31  ;;  %v1010_v31 = vadd.f32 %v5230_v23, %v4145_v4 }
 0x10a   : > { %v1071_v36 = vpop.f32.mrf.mxu1  ;;  %v1013_v33 = vadd.f32 %v5234_v25, %v4145_v4 }
 0x10b   : > { %4690 = vpow2.f32 %v4159_v34  ;;  %v4162_v37 = vmul.f32 -1.442695, %v1080_v35  ;;  %v1072_v38 = vadd.f32 %v4152_v27, %v1071_v36  ;;  %v5262_v35 = vpop.f32.mrf.mxu0 }
 0x10c   : > { %v4453_v39 = vpop.f32.mrf.mxu1 }
 0x10d   : > { %4692 = vpow2.f32 %v4162_v37  ;;  %v4160_v40 = vmul.f32 -1.442695, %v1072_v38  ;;  %v1093_v41 = vadd.f32 %v4453_v39, %v4152_v27  ;;  %v5264_v23 = vpop.f32.mrf.mxu0 }
 0x10e   : > { %v1084_v42 = vpop.f32.mrf.mxu1 }
 0x10f   : > { %4694 = vpow2.f32 %v4160_v40  ;;  %v4165_v43 = vmul.f32 -1.442695, %v1093_v41  ;;  %v1085_v44 = vadd.f32 %v4152_v27, %v1084_v42  ;;  %v5266_v36 = vpop.f32.mrf.mxu0 }
 0x110   : > { %v4454_v45 = vpop.f32.mrf.mxu1 }
 0x111   : > { %v4163_v46 = vmul.f32 -1.442695, %v1085_v44  ;;  %v1096_v47 = vadd.f32 %v4454_v45, %v4152_v27  ;;  %4696 = vpow2.f32 %v4165_v43  ;;  %v5268_v37 = vpop.f32.mrf.mxu0 }
 0x112   : > { %v1087_v48 = vpop.f32.mrf.mxu1 }
 0x113   : > { %4698 = vpow2.f32 %v4163_v46  ;;  %v4166_v49 = vmul.f32 -1.442695, %v1096_v47  ;;  %v1088_v50 = vadd.f32 %v4152_v27, %v1087_v48  ;;  %v5270_v38 = vpop.f32.mrf.mxu0 }
 0x115   : > { %4700 = vpow2.f32 %v4166_v49  ;;  %v4164_v51 = vmul.f32 -1.442695, %v1088_v50  ;;  %v5273_v25 = vpop.f32.mrf.mxu0 }
 0x116   : > { %v4689_v52 = vpop.eup %4688 }
 0x117   : > { %4702 = vpow2.f32 %v4164_v51  ;;  %v1125_v56 = vadd.f32 1.0, %v4689_v52  ;;  %v5279_v39 = vpop.f32.mrf.mxu0 }
 0x118   : > { %v4691_v53 = vpop.eup %4690 }
 0x119   : > { %v1123_v54 = vadd.f32 1.0, %v4691_v53 }
 0x11a   : > { %v4693_v55 = vpop.eup %4692 }
 0x11b   : > { %4704 = vrcp.f32 %v1123_v54  ;;  %v1126_v58 = vadd.f32 1.0, %v4693_v55 }
 0x11c   : > { %v4695_v57 = vpop.eup %4694  ;;  %4706 = vrcp.f32 %v1125_v56 }
 0x11d   : > { %v1124_v59 = vadd.f32 1.0, %v4695_v57 }
 0x11e   : > { %v4697_v60 = vpop.eup %4696 }
 0x11f   : > { %4708 = vrcp.f32 %v1124_v59  ;;  %v1129_v0 = vadd.f32 1.0, %v4697_v60 }
 0x120   : > { %v4699_v61 = vpop.eup %4698  ;;  %4710 = vrcp.f32 %v1126_v58 }
 0x121   : > { %v1127_v62 = vadd.f32 1.0, %v4699_v61 }
 0x122   : > { %v4701_v63 = vpop.eup %4700 }
 0x123   : > { %4712 = vrcp.f32 %v1127_v62  ;;  %v1130_v2 = vadd.f32 1.0, %v4701_v63 }
 0x124   : > { %v4703_v1 = vpop.eup %4702  ;;  %4714 = vrcp.f32 %v1129_v0 }
 0x125   : > { %v1128_v3 = vadd.f32 1.0, %v4703_v1 }
 0x127   : > { %4716 = vrcp.f32 %v1128_v3 }
 0x128   : > { %v4705_v6 = vpop.eup %4704  ;;  %4718 = vrcp.f32 %v1130_v2 }
 0x129   : > { %v1361_v7 = vmul.f32 %v4705_v6, %v986_v5  ;;  %v4707_v8 = vpop.eup %4706 }
 0x12a   : > { %v1363_v17 = vmul.f32 %v4707_v8, %v994_v13 }
 0x12b   : > { %4481 = vmatprep.mubr.msk.f32.mxu0 %vm1369_vm1, %v1361_v7 }
 0x12c   : > { %v4709_v12 = vpop.eup %4708 }
 0x12d   : > { %v1362_v14 = vmul.f32 %v4709_v12, %v989_v9  ;;  %v4711_v16 = vpop.eup %4710 }
 0x12e   : > { %v1364_v28 = vmul.f32 %v4711_v16, %v997_v18 }
 0x12f   : > { %4482 = vmatmul.mubr.msk.f32.vlgmr.msra.gmra.mxu0 %vm1369_vm1, %v1362_v14 }
 0x130   : > { %v4713_v27 = vpop.eup %4712  ;;  %4484 = vmatprep.mubr.msk.f32.mxu0 %vm1369_vm1, %v1363_v17 }
 0x131   : > { %v1365_v29 = vmul.f32 %v4713_v27, %v1002_v20  ;;  %v4715_v22 = vpop.eup %4714 }
 0x132   : > { %v1367_v32 = vmul.f32 %v4715_v22, %v1010_v31 }
 0x133   : > { %4485 = vmatmul.mubr.msk.f32.gmra.mxu0 %vm1369_vm1, %v1364_v28 }
 0x134   : > { %v4717_v19 = vpop.eup %4716  ;;  %4487 = vmatprep.mubr.msk.f32.mxu0 %vm1369_vm1, %v1365_v29 }
 0x135   : > { %v1366_v21 = vmul.f32 %v4717_v19, %v1005_v30  ;;  %v4719_v24 = vpop.eup %4718 }
 0x136   : > { %v1368_v34 = vmul.f32 %v4719_v24, %v1013_v33 }
 0x137   : > { %4488 = vmatmul.mubr.msk.f32.gmra.mxu0 %vm1369_vm1, %v1366_v21 }
 0x138   : > { %4490 = vmatprep.mubr.msk.f32.mxu0 %vm1369_vm1, %v1367_v32 }
 0x13b   : > { %4491 = vmatmul.mubr.msk.f32.gmra.mxu0 %vm1369_vm1, %v1368_v34 }
 0x1ef   : > { %v5281_v40 = vpop.f32.mrf.mxu0 }
 0x1f0   : > { %1500 = vst [vmem:[%s5284_s9 + $0x8] sm:$0x1] %v5281_v40  ;;  %v1521_v41 = vrot.slane %v5281_v40, 7  ;;  %v1642_v43 = vrot.slane %v5281_v40, 1  ;;  %v1729_v44 = vrot.slane %v5281_v40, 2  ;;  %v1816_v45 = vrot.slane %v5281_v40, 3 }
 0x1f1   : > { %v5289_v42 = vpop.f32.mrf.mxu0  ;;  %v1903_v46 = vrot.slane %v5281_v40, 4  ;;  %v1990_v50 = vrot.slane %v5281_v40, 5 }
 0x1f2   : > { %1499 = vst [vmem:[%s5284_s9] sm:$0x1] %v5289_v42  ;;  %v1554_v47 = vrot.slane %v5289_v42, 1  ;;  %v1641_v48 = vrot.slane %v5289_v42, 2  ;;  %v1728_v49 = vrot.slane %v5289_v42, 3  ;;  %v1523_v52 = vsel %vm1522_vm2, %v1521_v41, %v5289_v42 }
 0x1f3   : > { %v5301_v51 = vpop.f32.mrf.mxu0  ;;  %v1815_v53 = vrot.slane %v5289_v42, 4  ;;  %v1902_v54 = vrot.slane %v5289_v42, 5  ;;  %v1989_v55 = vrot.slane %v5289_v42, 6 }
 0x1f4   : > { %1502 = vst [vmem:[%s5284_s9 + $0x18] sm:$0x1] %v5301_v51  ;;  %v1527_v56 = vrot.slane %v5301_v51, 5  ;;  %v1555_v57 = vsel %vm1522_vm2, %v5281_v40, %v1554_v47  ;;  %v1558_v58 = vrot.slane %v5301_v51, 6  ;;  %v1643_v59 = vsel %vm1522_vm2, %v1642_v43, %v1641_v48 }
 0x1f5   : > { %v5315_v60 = vpop.f32.mrf.mxu0  ;;  %v1645_v61 = vrot.slane %v5301_v51, 7  ;;  %v1730_v62 = vsel %vm1522_vm2, %v1729_v44, %v1728_v49  ;;  %v1817_v63 = vsel %vm1522_vm2, %v1816_v45, %v1815_v53  ;;  %v1820_v0 = vrot.slane %v5301_v51, 1 }
 0x1f6   : > { %1501 = vst [vmem:[%s5284_s9 + $0x10] sm:$0x1] %v5315_v60  ;;  %v1524_v1 = vrot.slane %v5315_v60, 6  ;;  %v1556_v2 = vrot.slane %v5315_v60, 7  ;;  %v1644_v3 = vsel %vm1525_vm3, %v5315_v60, %v1643_v59  ;;  %v1731_v4 = vrot.slane %v5315_v60, 1 }
 0x1f7   : > { %v5328_v5 = vpop.f32.mrf.mxu0  ;;  %v1646_v6 = vsel %vm1528_vm4, %v1645_v61, %v1644_v3  ;;  %v1818_v7 = vrot.slane %v5315_v60, 2  ;;  %v1904_v8 = vsel %vm1522_vm2, %v1903_v46, %v1902_v54  ;;  %v1905_v9 = vrot.slane %v5315_v60, 3 }
 0x1f8   : > { %1504 = vst [vmem:[%s5284_s9 + $0x28] sm:$0x1] %v5328_v5  ;;  %v1526_v12 = vsel %vm1525_vm3, %v1524_v1, %v1523_v52  ;;  %v1533_v13 = vrot.slane %v5328_v5, 3  ;;  %v1557_v14 = vsel %vm1525_vm3, %v1556_v2, %v1555_v57  ;;  %v1562_v16 = vrot.slane %v5328_v5, 4 }
 0x1f9   : > { %v5340_v17 = vpop.f32.mrf.mxu0  ;;  %v1529_v18 = vsel %vm1528_vm4, %v1527_v56, %v1526_v12  ;;  %v1559_v20 = vsel %vm1528_vm4, %v1558_v58, %v1557_v14  ;;  %v1649_v27 = vrot.slane %v5328_v5, 5  ;;  %v1732_v28 = vsel %vm1525_vm3, %v1731_v4, %v1730_v62 }
 0x1fa   : > { %1503 = vst [vmem:[%s5284_s9 + $0x20] sm:$0x1] %v5340_v17  ;;  %v1530_v29 = vrot.slane %v5340_v17, 4  ;;  %v1560_v22 = vrot.slane %v5340_v17, 5  ;;  %v1647_v30 = vrot.slane %v5340_v17, 6  ;;  %v1733_v19 = vsel %vm1528_vm4, %v5301_v51, %v1732_v28 }
 0x1fb   : > { %v5353_v31 = vpop.f32.mrf.mxu0  ;;  %v1734_v21 = vrot.slane %v5340_v17, 7  ;;  %v1736_v24 = vrot.slane %v5328_v5, 6  ;;  %v1819_v32 = vsel %vm1525_vm3, %v1818_v7, %v1817_v63  ;;  %v1823_v33 = vrot.slane %v5328_v5, 7 }
 0x1fc   : > { %1506 = vst [vmem:[%s5284_s9 + $0x38] sm:$0x1] %v5353_v31  ;;  %v1532_v34 = vsel %vm1531_vm5, %v1530_v29, %v1529_v18  ;;  %v1539_v41 = vrot.slane %v5353_v31, 1  ;;  %v1561_v43 = vsel %vm1531_vm5, %v1560_v22, %v1559_v20  ;;  %v1566_v44 = vrot.slane %v5353_v31, 2 }
 0x1fd   : > { %v5365_v45 = vpop.f32.mrf.mxu0  ;;  %v1535_v46 = vsel %vm1534_vm6, %v1533_v13, %v1532_v34  ;;  %v1563_v47 = vsel %vm1534_vm6, %v1562_v16, %v1561_v43  ;;  %v1648_v48 = vsel %vm1531_vm5, %v1647_v30, %v1646_v6  ;;  %v1653_v49 = vrot.slane %v5353_v31, 3 }
 0x1fe   : > { %1505 = vst [vmem:[%s5284_s9 + $0x30] sm:$0x1] %v5365_v45  ;;  %v1536_v52 = vrot.slane %v5365_v45, 2  ;;  %v1564_v53 = vrot.slane %v5365_v45, 3  ;;  %v1650_v54 = vsel %vm1534_vm6, %v1649_v27, %v1648_v48  ;;  %v1651_v56 = vrot.slane %v5365_v45, 4 }
 0x1ff   : > { %v1735_v57 = vsel %vm1531_vm5, %v1734_v21, %v1733_v19  ;;  %v1738_v58 = vrot.slane %v5365_v45, 5  ;;  %v1740_v59 = vrot.slane %v5353_v31, 4  ;;  %v1821_v61 = vsel %vm1528_vm4, %v1820_v0, %v1819_v32 }
 0x200   : > { %v1538_v62 = vsel %vm1537_vm7, %v1536_v52, %v1535_v46  ;;  %v1565_v63 = vsel %vm1537_vm7, %v1564_v53, %v1563_v47  ;;  %v1652_v1 = vsel %vm1537_vm7, %v1651_v56, %v1650_v54  ;;  %v1737_v2 = vsel %vm1534_vm6, %v1736_v24, %v1735_v57 }
 0x201   : > { %v1541_v3 = vsel %vm1540_vm8, %v1539_v41, %v1538_v62  ;;  %v1567_v4 = vsel %vm1540_vm8, %v1566_v44, %v1565_v63  ;;  %v5388_v6 = vsel %vm1540_vm8, %v1653_v49, %v1652_v1  ;;  %v1739_v7 = vsel %vm1537_vm7, %v1738_v58, %v1737_v2 }
 0x202   : > { %1544 = vrot.lane.b32.xlu0 %v1541_v3, %s6472_s6  ;;  %v5393_v0 = vsel %vm1540_vm8, %v1740_v59, %v1739_v7  ;;  %v1822_v12 = vsel %vm1531_vm5, %v5340_v17, %v1821_v61  ;;  %v1825_v13 = vrot.slane %v5365_v45, 6  ;;  %v2076_v14 = vrot.slane %v5289_v42, 7  ;;  %s6512_s6 = sld [smem:[#allocation26_spill]] }
 0x203   : > { %v1824_v16 = vsel %vm1534_vm6, %v1823_v33, %v1822_v12  ;;  %v1827_v18 = vrot.slane %v5353_v31, 5  ;;  %v1906_v20 = vsel %vm1525_vm3, %v1905_v9, %v1904_v8  ;;  %v1907_v27 = vrot.slane %v5301_v51, 2 }
 0x204   : > { %v1826_v28 = vsel %vm1537_vm7, %v1825_v13, %v1824_v16  ;;  %v1909_v29 = vrot.slane %v5340_v17, 1  ;;  %v1912_v22 = vrot.slane %v5365_v45, 7  ;;  %v2077_v30 = vrot.slane %v5281_v40, 6 }
 0x205   : > { %v5408_v19 = vsel %vm1540_vm8, %v1827_v18, %v1826_v28  ;;  %v1908_v21 = vsel %vm1528_vm4, %v1907_v27, %v1906_v20  ;;  %v1991_v8 = vsel %vm1522_vm2, %v1990_v50, %v1989_v55  ;;  %v1992_v9 = vrot.slane %v5315_v60, 4 }
 0x206   : > { %v1910_v24 = vsel %vm1531_vm5, %v1909_v29, %v1908_v21  ;;  %v1914_v32 = vrot.slane %v5353_v31, 6  ;;  %v1994_v33 = vrot.slane %v5301_v51, 3  ;;  %v1996_v34 = vrot.slane %v5340_v17, 2 }
 0x207   : > { %v1911_v41 = vsel %vm1534_vm6, %v5328_v5, %v1910_v24  ;;  %v1993_v43 = vsel %vm1525_vm3, %v1992_v9, %v1991_v8  ;;  %v1998_v42 = vrot.slane %v5328_v5, 1  ;;  %v2078_v40 = vsel %vm1522_vm2, %v2077_v30, %v2076_v14 }
 0x208   : > { %v1913_v50 = vsel %vm1537_vm7, %v1912_v22, %v1911_v41  ;;  %v1995_v55 = vsel %vm1528_vm4, %v1994_v33, %v1993_v43  ;;  %v2001_v44 = vrot.slane %v5353_v31, 7  ;;  %v2079_v46 = vrot.slane %v5315_v60, 5  ;;  %v5461_v2 = vld [vmem:[%s6512_s6] ss:$0 sm:$0xff] }
 0x209   : > { %v5431_v47 = vsel %vm1540_vm8, %v1914_v32, %v1913_v50  ;;  %v1997_v48 = vsel %vm1531_vm5, %v1996_v34, %v1995_v55  ;;  %v2081_v49 = vrot.slane %v5301_v51, 4  ;;  %v2083_v52 = vrot.slane %v5340_v17, 3 }
 0x20a   : > { %v1999_v53 = vsel %vm1534_vm6, %v1998_v42, %v1997_v48  ;;  %v2080_v54 = vsel %vm1525_vm3, %v2079_v46, %v2078_v40  ;;  %v2087_v56 = vrot.slane %v5365_v45, 1  ;;  %v2085_v58 = vrot.slane %v5328_v5, 2  ;;  %v5456_v5 = vld [vmem:[%s6511_s7] ss:$0 sm:$0xff]  ;;  %s6515_s7 = smov %s6514_s30 }
 0x20b   : > { %v2000_v57 = vsel %vm1537_vm7, %v5365_v45, %v1999_v53  ;;  %v2082_v60 = vsel %vm1528_vm4, %v2081_v49, %v2080_v54  ;;  %v4968_v63 = vmov 1966171168   ;;  %v1575_v45 = vlaneseq }
 0x20c   : > { %v5444_v59 = vsel %vm1540_vm8, %v2001_v44, %v2000_v57  ;;  %v2084_v51 = vsel %vm1531_vm5, %v2083_v52, %v2082_v60  ;;  %v1573_v1 = vunpack.c.l.s4 %v4968_v63 }
 0x20d   : > { %v2086_v17 = vsel %vm1534_vm6, %v2085_v58, %v2084_v51  ;;  %v1576_v12 = vshrl.u32 %v1575_v45, 7 }
 0x20e   : > { %v2088_v61 = vsel %vm1537_vm7, %v2087_v56, %v2086_v17  ;;  %v1574_v7 = vunpack.c.0.s8 %v1573_v1 }
 0x20f   : > { %v5451_v62 = vsel %vm1540_vm8, %v5353_v31, %v2088_v61  ;;  %v1543_v31 = vmul.f32 %v5456_v5, %v1541_v3 }
 0x210   : > { %v5465_v16 = vsub.s32 %v1574_v7, %v1576_v12 }
 0x274   : > { %v1545_v13 = vpop.permute.xlu0 %1544 }
 0x275   : > { %v1552_v14 = vmul.f32 %v5461_v2, %v1545_v13 }
 0x277   : > { %v1553_v18 = vadd.f32 %v1552_v14, %v1543_v31 }
 0x279   : > { %v1569_v20 = vadd.f32 %v1567_v4, %v1553_v18 }
 0x27b   : > { %v1571_v27 = vcombine.high %v1569_v20, %v1569_v20  ;;  %v1578_v28 = vrot.slane %v1569_v20, %v5465_v16  ;;  %1637 = vrot.lane.b32.xlu0 %v1569_v20, %s6513_s0  ;;  %v1636_v41 = vmul.f32 %v5456_v5, %v1569_v20 }
 0x27d   : > { %v1585_v29 = vrot.slane %v1571_v27, %v5465_v16  ;;  %v1586_v22 = vcombine.high %v1578_v28, %v1578_v28  ;;  %v1594_v3 = vrot.slane %v1578_v28, %v5465_v16  ;;  %4199 = vst.sshfl [vmem:[%s5284_s9 + $0x1] sm:$0x1 pattern:$0x73625140] %v1578_v28 }
 0x27f   : > { %v1587_v30 = vcombine.high %v1585_v29, %v1585_v29  ;;  %v1601_v21 = vrot.slane %v1585_v29, %v5465_v16  ;;  %v1608_v4 = vrot.slane %v1586_v22, %v5465_v16  ;;  %v1616_v8 = vcombine.high %v1594_v3, %v1594_v3  ;;  %4200 = vst.sshfl [vmem:[%s5284_s9 + $0x9] sm:$0x1 pattern:$0x73625140] %v1586_v22 }
 0x280   : > { %4201 = vst.sshfl [vmem:[%s5284_s9 + $0x21] sm:$0x1 pattern:$0x73625140] %v1585_v29 }
 0x281   : > { %v1615_v9 = vrot.slane %v1587_v30, %v5465_v16  ;;  %v1617_v24 = vcombine.high %v1601_v21, %v1601_v21  ;;  %v1618_v32 = vcombine.high %v1608_v4, %v1608_v4  ;;  %1630 = vst [vmem:[%s5284_s9 + $0x11] sm:$0x1] %v1616_v8  ;;  %4202 = vst.sshfl [vmem:[%s5284_s9 + $0x29] sm:$0x1 pattern:$0x73625140] %v1587_v30 }
 0x283   : > { %v1619_v33 = vcombine.high %v1615_v9, %v1615_v9  ;;  %1631 = vst [vmem:[%s5284_s9 + $0x19] sm:$0x1] %v1618_v32  ;;  %1634 = vst [vmem:[%s5284_s9 + $0x31] sm:$0x1] %v1617_v24 }
 0x285   : > { %1635 = vst [vmem:[%s5284_s9 + $0x39] sm:$0x1] %v1619_v33 }
 0x2ed   : > { %v1638_v34 = vpop.permute.xlu0 %1637 }
 0x2ee   : > { %v1639_v43 = vmul.f32 %v5461_v2, %v1638_v34 }
 0x2f0   : > { %v1640_v42 = vadd.f32 %v1639_v43, %v1636_v41 }
 0x2f2   : > { %v1656_v40 = vadd.f32 %v5388_v6, %v1640_v42 }
 0x2f4   : > { %v1658_v50 = vcombine.high %v1656_v40, %v1656_v40  ;;  %v1665_v55 = vrot.slane %v1656_v40, %v5465_v16  ;;  %1724 = vrot.lane.b32.xlu1 %v1656_v40, %s6513_s0  ;;  %v1723_v51 = vmul.f32 %v5456_v5, %v1656_v40 }
 0x2f6   : > { %v1672_v44 = vrot.slane %v1658_v50, %v5465_v16  ;;  %v1673_v46 = vcombine.high %v1665_v55, %v1665_v55  ;;  %v1681_v48 = vrot.slane %v1665_v55, %v5465_v16  ;;  %4203 = vst.sshfl [vmem:[%s5284_s9 + $0x2] sm:$0x1 pattern:$0x73625140] %v1665_v55 }
 0x2f8   : > { %v1674_v49 = vcombine.high %v1672_v44, %v1672_v44  ;;  %v1688_v52 = vrot.slane %v1672_v44, %v5465_v16  ;;  %v1695_v6 = vrot.slane %v1673_v46, %v5465_v16  ;;  %v1703_v53 = vcombine.high %v1681_v48, %v1681_v48  ;;  %4204 = vst.sshfl [vmem:[%s5284_s9 + $0xa] sm:$0x1 pattern:$0x73625140] %v1673_v46 }
 0x2f9   : > { %4205 = vst.sshfl [vmem:[%s5284_s9 + $0x22] sm:$0x1 pattern:$0x73625140] %v1672_v44 }
 0x2fa   : > { %v1702_v54 = vrot.slane %v1674_v49, %v5465_v16  ;;  %v1704_v56 = vcombine.high %v1688_v52, %v1688_v52  ;;  %v1705_v57 = vcombine.high %v1695_v6, %v1695_v6  ;;  %1717 = vst [vmem:[%s5284_s9 + $0x12] sm:$0x1] %v1703_v53  ;;  %4206 = vst.sshfl [vmem:[%s5284_s9 + $0x2a] sm:$0x1 pattern:$0x73625140] %v1674_v49 }
 0x2fc   : > { %v1706_v60 = vcombine.high %v1702_v54, %v1702_v54  ;;  %1718 = vst [vmem:[%s5284_s9 + $0x1a] sm:$0x1] %v1705_v57  ;;  %1721 = vst [vmem:[%s5284_s9 + $0x32] sm:$0x1] %v1704_v56 }
 0x2fe   : > { %1722 = vst [vmem:[%s5284_s9 + $0x3a] sm:$0x1] %v1706_v60  ;;  %v4662_v60 = vld [vmem:[%s6514_s30 + $0x8] sm:$0xff]  }
 0x2ff   : > { %4467 = vmatprep.subr.bf16.mxu1 %v4662_v60 }
 0x300   : > { %4468 = vmatpush3.bf16.msra.mxu1 %v4662_v60 }
 0x366   : > { %v1725_v58 = vpop.permute.xlu1 %1724 }
 0x367   : > { %v1726_v17 = vmul.f32 %v5461_v2, %v1725_v58 }
 0x369   : > { %v1727_v61 = vadd.f32 %v1726_v17, %v1723_v51 }
 0x36b   : > { %v1743_v63 = vadd.f32 %v5393_v0, %v1727_v61 }
 0x36d   : > { %v1745_v1 = vcombine.high %v1743_v63, %v1743_v63  ;;  %v1752_v45 = vrot.slane %v1743_v63, %v5465_v16  ;;  %1811 = vrot.lane.b32.xlu1 %v1743_v63, %s6513_s0  ;;  %v1810_v3 = vmul.f32 %v5456_v5, %v1743_v63 }
 0x36f   : > { %v1759_v7 = vrot.slane %v1745_v1, %v5465_v16  ;;  %v1760_v12 = vcombine.high %v1752_v45, %v1752_v45  ;;  %v1768_v13 = vrot.slane %v1752_v45, %v5465_v16  ;;  %4207 = vst.sshfl [vmem:[%s5284_s9 + $0x3] sm:$0x1 pattern:$0x73625140] %v1752_v45 }
 0x371   : > { %v1761_v31 = vcombine.high %v1759_v7, %v1759_v7  ;;  %v1775_v14 = vrot.slane %v1759_v7, %v5465_v16  ;;  %v1782_v0 = vrot.slane %v1760_v12, %v5465_v16  ;;  %v1790_v18 = vcombine.high %v1768_v13, %v1768_v13  ;;  %4208 = vst.sshfl [vmem:[%s5284_s9 + $0xb] sm:$0x1 pattern:$0x73625140] %v1760_v12  ;;  %v4665_v13 = vld [vmem:[%s6517_s11 + $0x30] sm:$0xff]  }
 0x372   : > { %4209 = vst.sshfl [vmem:[%s5284_s9 + $0x23] sm:$0x1 pattern:$0x73625140] %v1759_v7  ;;  %v4664_v7 = vld [vmem:[%s6516_s8 + $0x38] sm:$0xff]   ;;  %s6522_s8 = sld [smem:[#allocation22_spill]] }
 0x373   : > { %v1789_v20 = vrot.slane %v1761_v31, %v5465_v16  ;;  %v1791_v27 = vcombine.high %v1775_v14, %v1775_v14  ;;  %v1792_v28 = vcombine.high %v1782_v0, %v1782_v0  ;;  %1804 = vst [vmem:[%s5284_s9 + $0x13] sm:$0x1] %v1790_v18  ;;  %4210 = vst.sshfl [vmem:[%s5284_s9 + $0x2b] sm:$0x1 pattern:$0x73625140] %v1761_v31 }
 0x375   : > { %v1793_v29 = vcombine.high %v1789_v20, %v1789_v20  ;;  %1805 = vst [vmem:[%s5284_s9 + $0x1b] sm:$0x1] %v1792_v28  ;;  %1808 = vst [vmem:[%s5284_s9 + $0x33] sm:$0x1] %v1791_v27 }
 0x377   : > { %1809 = vst [vmem:[%s5284_s9 + $0x3b] sm:$0x1] %v1793_v29  ;;  %v4666_v29 = vld [vmem:[%s6517_s11 + $0x28] sm:$0xff]  }
 0x3df   : > { %v1812_v22 = vpop.permute.xlu1 %1811 }
 0x3e0   : > { %v1813_v30 = vmul.f32 %v5461_v2, %v1812_v22 }
 0x3e2   : > { %v1814_v21 = vadd.f32 %v1813_v30, %v1810_v3 }
 0x3e4   : > { %v1830_v4 = vadd.f32 %v5408_v19, %v1814_v21 }
 0x3e6   : > { %v1832_v8 = vcombine.high %v1830_v4, %v1830_v4  ;;  %v1839_v9 = vrot.slane %v1830_v4, %v5465_v16  ;;  %1898 = vrot.lane.b32.xlu0 %v1830_v4, %s6513_s0  ;;  %v1897_v46 = vmul.f32 %v5456_v5, %v1830_v4 }
 0x3e8   : > { %v1846_v24 = vrot.slane %v1832_v8, %v5465_v16  ;;  %v1847_v32 = vcombine.high %v1839_v9, %v1839_v9  ;;  %v1855_v33 = vrot.slane %v1839_v9, %v5465_v16  ;;  %4211 = vst.sshfl [vmem:[%s5284_s9 + $0x4] sm:$0x1 pattern:$0x73625140] %v1839_v9 }
 0x3ea   : > { %v1848_v34 = vcombine.high %v1846_v24, %v1846_v24  ;;  %v1862_v41 = vrot.slane %v1846_v24, %v5465_v16  ;;  %v1869_v19 = vrot.slane %v1847_v32, %v5465_v16  ;;  %v1877_v43 = vcombine.high %v1855_v33, %v1855_v33  ;;  %4212 = vst.sshfl [vmem:[%s5284_s9 + $0xc] sm:$0x1 pattern:$0x73625140] %v1847_v32  ;;  %v4669_v33 = vld [vmem:[%s6517_s11 + $0x10] sm:$0xff]  }
 0x3eb   : > { %4213 = vst.sshfl [vmem:[%s5284_s9 + $0x24] sm:$0x1 pattern:$0x73625140] %v1846_v24  ;;  %v4668_v24 = vld [vmem:[%s6517_s11 + $0x18] sm:$0xff]  }
 0x3ec   : > { %v1876_v42 = vrot.slane %v1848_v34, %v5465_v16  ;;  %v1878_v40 = vcombine.high %v1862_v41, %v1862_v41  ;;  %v1879_v50 = vcombine.high %v1869_v19, %v1869_v19  ;;  %1891 = vst [vmem:[%s5284_s9 + $0x14] sm:$0x1] %v1877_v43  ;;  %4214 = vst.sshfl [vmem:[%s5284_s9 + $0x2c] sm:$0x1 pattern:$0x73625140] %v1848_v34 }
 0x3ed   : > { %v4670_v34 = vld [vmem:[%s6517_s11 + $0x8] sm:$0xff]   ;;  %v4671_v41 = vld [vmem:[%s6517_s11] sm:$0xff]  }
 0x3ee   : > { %v1880_v55 = vcombine.high %v1876_v42, %v1876_v42  ;;  %1892 = vst [vmem:[%s5284_s9 + $0x1c] sm:$0x1] %v1879_v50  ;;  %1895 = vst [vmem:[%s5284_s9 + $0x34] sm:$0x1] %v1878_v40 }
 0x3f0   : > { %1896 = vst [vmem:[%s5284_s9 + $0x3c] sm:$0x1] %v1880_v55 }
 0x458   : > { %v1899_v44 = vpop.permute.xlu0 %1898 }
 0x459   : > { %v1900_v48 = vmul.f32 %v5461_v2, %v1899_v44 }
 0x45b   : > { %v1901_v49 = vadd.f32 %v1900_v48, %v1897_v46 }
 0x45d   : > { %v1917_v52 = vadd.f32 %v5431_v47, %v1901_v49  ;;  %v4663_v47 = vld [vmem:[%s6515_s7] sm:$0xff]   ;;  %s3962_s7 = sand.u32 1, %s5140_s3  }
 0x45e   : > { %4469 = vmatprep.subr.bf16.mxu1 %v4663_v47 }
 0x45f   : > { %v1919_v6 = vcombine.high %v1917_v52, %v1917_v52  ;;  %v1926_v53 = vrot.slane %v1917_v52, %v5465_v16  ;;  %1985 = vrot.lane.b32.xlu1 %v1917_v52, %s6513_s0  ;;  %4470 = vmatpush3.bf16.msra.mxu1 %v4663_v47  ;;  %v1984_v14 = vmul.f32 %v5456_v5, %v1917_v52 }
 0x460   : > { %4493 = vmatprep.subr.bf16.mxu1 %v4664_v7 }
 0x461   : > { %v1933_v54 = vrot.slane %v1919_v6, %v5465_v16  ;;  %v1934_v56 = vcombine.high %v1926_v53, %v1926_v53  ;;  %v1942_v57 = vrot.slane %v1926_v53, %v5465_v16  ;;  %4215 = vst.sshfl [vmem:[%s5284_s9 + $0x5] sm:$0x1 pattern:$0x73625140] %v1926_v53 }
 0x462   : > { %4472 = vmatmul.mubr.msk.bf16.vlgmr.msra.gmra.mxu1 %vm938_vm0, %v5182_v10 }
 0x463   : > { %v1935_v58 = vcombine.high %v1933_v54, %v1933_v54  ;;  %v1949_v51 = vrot.slane %v1933_v54, %v5465_v16  ;;  %v1956_v17 = vrot.slane %v1934_v56, %v5465_v16  ;;  %v1964_v61 = vcombine.high %v1942_v57, %v1942_v57  ;;  %4216 = vst.sshfl [vmem:[%s5284_s9 + $0xd] sm:$0x1 pattern:$0x73625140] %v1934_v56 }
 0x464   : > { %4217 = vst.sshfl [vmem:[%s5284_s9 + $0x25] sm:$0x1 pattern:$0x73625140] %v1933_v54  ;;  %4494 = vmatpush3.bf16.msra.mxu1 %v4664_v7  ;;  %4475 = vmatprep.mubr.msk.bf16.mxu1 %vm938_vm0, %v5184_v11 }
 0x465   : > { %v1963_v63 = vrot.slane %v1935_v58, %v5465_v16  ;;  %v1965_v1 = vcombine.high %v1949_v51, %v1949_v51  ;;  %v1966_v45 = vcombine.high %v1956_v17, %v1956_v17  ;;  %1978 = vst [vmem:[%s5284_s9 + $0x15] sm:$0x1] %v1964_v61  ;;  %4218 = vst.sshfl [vmem:[%s5284_s9 + $0x2d] sm:$0x1 pattern:$0x73625140] %v1935_v58  ;;  %4495 = vmatprep.subr.bf16.mxu1 %v4665_v13 }
 0x467   : > { %v1967_v12 = vcombine.high %v1963_v63, %v1963_v63  ;;  %1979 = vst [vmem:[%s5284_s9 + $0x1d] sm:$0x1] %v1966_v45  ;;  %1982 = vst [vmem:[%s5284_s9 + $0x35] sm:$0x1] %v1965_v1 }
 0x468   : > { %4496 = vmatpush3.bf16.msra.mxu1 %v4665_v13 }
 0x469   : > { %1983 = vst [vmem:[%s5284_s9 + $0x3d] sm:$0x1] %v1967_v12  ;;  %4497 = vmatprep.subr.bf16.mxu1 %v4666_v29 }
 0x46a   : > { %4476 = vmatmul.mubr.msk.bf16.gmra.mxu1 %vm938_vm0, %v5195_v15 }
 0x46c   : > { %4498 = vmatpush3.bf16.msra.mxu1 %v4666_v29 }
 0x4d1   : > { %v1986_v31 = vpop.permute.xlu1 %1985 }
 0x4d2   : > { %v1987_v0 = vmul.f32 %v5461_v2, %v1986_v31 }
 0x4d4   : > { %v1988_v18 = vadd.f32 %v1987_v0, %v1984_v14 }
 0x4d6   : > { %v2004_v10 = vadd.f32 %v5444_v59, %v1988_v18  ;;  %v4667_v59 = vld [vmem:[%s6517_s11 + $0x20] sm:$0xff]   ;;  %s6252_s11 = sshll.u32 %s5140_s3, 10  ;;  %s4969_s3 = smov [#allocation4]  }
 0x4d7   : > { %4499 = vmatprep.subr.bf16.mxu1 %v4667_v59  ;;  %s6258_s6 = scalar_lea.hbm %s6455_s27, %s6252_s11 }
 0x4d8   : > { %v2006_v20 = vcombine.high %v2004_v10, %v2004_v10  ;;  %v2013_v27 = vrot.slane %v2004_v10, %v5465_v16  ;;  %2072 = vrot.lane.b32.xlu0 %v2004_v10, %s6513_s0  ;;  %4500 = vmatpush3.bf16.msra.mxu1 %v4667_v59  ;;  %v2071_v43 = vmul.f32 %v5456_v5, %v2004_v10 }
 0x4d9   : > { %4501 = vmatprep.subr.bf16.mxu1 %v4668_v24 }
 0x4da   : > { %v2020_v11 = vrot.slane %v2006_v20, %v5465_v16  ;;  %v2021_v28 = vcombine.high %v2013_v27, %v2013_v27  ;;  %v2029_v15 = vrot.slane %v2013_v27, %v5465_v16  ;;  %4219 = vst.sshfl [vmem:[%s5284_s9 + $0x6] sm:$0x1 pattern:$0x73625140] %v2013_v27 }
 0x4dc   : > { %v2022_v22 = vcombine.high %v2020_v11, %v2020_v11  ;;  %v2036_v3 = vrot.slane %v2020_v11, %v5465_v16  ;;  %v2043_v30 = vrot.slane %v2021_v28, %v5465_v16  ;;  %v2051_v21 = vcombine.high %v2029_v15, %v2029_v15  ;;  %4220 = vst.sshfl [vmem:[%s5284_s9 + $0xe] sm:$0x1 pattern:$0x73625140] %v2021_v28  ;;  %v4227_v28 = vld [vmem:[%s6518_s13] ss:$0 sm:$0xff] }
 0x4dd   : > { %4221 = vst.sshfl [vmem:[%s5284_s9 + $0x26] sm:$0x1 pattern:$0x73625140] %v2020_v11  ;;  %4502 = vmatpush3.bf16.msra.mxu1 %v4668_v24  ;;  %s5848_s13 = scalar_lea.vmem [#allocation6], %s5277_s12 }
 0x4de   : > { %v2050_v4 = vrot.slane %v2022_v22, %v5465_v16  ;;  %v2052_v8 = vcombine.high %v2036_v3, %v2036_v3  ;;  %v2053_v9 = vcombine.high %v2043_v30, %v2043_v30  ;;  %2065 = vst [vmem:[%s5284_s9 + $0x16] sm:$0x1] %v2051_v21  ;;  %4222 = vst.sshfl [vmem:[%s5284_s9 + $0x2e] sm:$0x1 pattern:$0x73625140] %v2022_v22  ;;  %4503 = vmatprep.subr.bf16.mxu1 %v4669_v33 }
 0x4e0   : > { %v2054_v32 = vcombine.high %v2050_v4, %v2050_v4  ;;  %2066 = vst [vmem:[%s5284_s9 + $0x1e] sm:$0x1] %v2053_v9  ;;  %2069 = vst [vmem:[%s5284_s9 + $0x36] sm:$0x1] %v2052_v8 }
 0x4e1   : > { %4504 = vmatpush3.bf16.msra.mxu1 %v4669_v33 }
 0x4e2   : > { %2070 = vst [vmem:[%s5284_s9 + $0x3e] sm:$0x1] %v2054_v32  ;;  %4505 = vmatprep.subr.bf16.mxu1 %v4670_v34 }
 0x4e5   : > { %4506 = vmatpush3.bf16.msra.mxu1 %v4670_v34 }
 0x4e6   : > { %4507 = vmatprep.subr.bf16.mxu1 %v4671_v41 }
 0x4e9   : > { %4508 = vmatpush3.bf16.msra.mxu1 %v4671_v41 }
 0x522   : > { %v5633_v13 = vpop.f32.mrf.mxu1 }
 0x524   : > { %v5635_v31 = vpop.f32.mrf.mxu1 }
 0x526   : > { %v5637_v14 = vpop.f32.mrf.mxu1 }
 0x528   : > { %v5639_v0 = vpop.f32.mrf.mxu1 }
 0x52a   : > { %v5641_v18 = vpop.f32.mrf.mxu1 }
 0x52c   : > { %v5643_v10 = vpop.f32.mrf.mxu1 }
 0x52e   : > { %v5645_v20 = vpop.f32.mrf.mxu1 }
 0x530   : > { %v5647_v27 = vpop.f32.mrf.mxu1 }
 0x54a   : > { %v2073_v19 = vpop.permute.xlu0 %2072 }
 0x54b   : > { %v2074_v42 = vmul.f32 %v5461_v2, %v2073_v19 }
 0x54d   : > { %v2075_v40 = vadd.f32 %v2074_v42, %v2071_v43 }
 0x54f   : > { %v2091_v50 = vadd.f32 %v5451_v62, %v2075_v40 }
 0x551   : > { %v2093_v55 = vcombine.high %v2091_v50, %v2091_v50  ;;  %v2100_v44 = vrot.slane %v2091_v50, %v5465_v16 }
 0x553   : > { %v2107_v46 = vrot.slane %v2093_v55, %v5465_v16  ;;  %v2108_v48 = vcombine.high %v2100_v44, %v2100_v44  ;;  %v2116_v49 = vrot.slane %v2100_v44, %v5465_v16  ;;  %4223 = vst.sshfl [vmem:[%s5284_s9 + $0x7] sm:$0x1 pattern:$0x73625140] %v2100_v44 }
 0x555   : > { %v2109_v5 = vcombine.high %v2107_v46, %v2107_v46  ;;  %v2123_v2 = vrot.slane %v2107_v46, %v5465_v16  ;;  %v2130_v62 = vrot.slane %v2108_v48, %v5465_v16  ;;  %v2138_v52 = vcombine.high %v2116_v49, %v2116_v49  ;;  %4224 = vst.sshfl [vmem:[%s5284_s9 + $0xf] sm:$0x1 pattern:$0x73625140] %v2108_v48 }
 0x556   : > { %4225 = vst.sshfl [vmem:[%s5284_s9 + $0x27] sm:$0x1 pattern:$0x73625140] %v2107_v46 }
 0x557   : > { %v2137_v6 = vrot.slane %v2109_v5, %v5465_v16  ;;  %v2139_v53 = vcombine.high %v2123_v2, %v2123_v2  ;;  %v2140_v54 = vcombine.high %v2130_v62, %v2130_v62  ;;  %2152 = vst [vmem:[%s5284_s9 + $0x17] sm:$0x1] %v2138_v52  ;;  %4226 = vst.sshfl [vmem:[%s5284_s9 + $0x2f] sm:$0x1 pattern:$0x73625140] %v2109_v5 }
 0x559   : > { %v2141_v56 = vcombine.high %v2137_v6, %v2137_v6  ;;  %2153 = vst [vmem:[%s5284_s9 + $0x1f] sm:$0x1] %v2140_v54  ;;  %2156 = vst [vmem:[%s5284_s9 + $0x37] sm:$0x1] %v2139_v53 }
 0x55a   : > { %v2158_v57 = vld [vmem:[%s5284_s9] sm:$0xff] }
 0x55b   : > { %2157 = vst [vmem:[%s5284_s9 + $0x3f] sm:$0x1] %v2141_v56 }
 0x55c   : > { %v2159_v60 = vld [vmem:[%s5284_s9 + $0x8] sm:$0xff] }
 0x55d   : > { %v2166_v47 = vpack.c.bf16 %v2159_v60, %v2158_v57  ;;  %v2162_v63 = vld [vmem:[%s5284_s9 + $0x20] sm:$0xff] }
 0x55e   : > { %v2163_v58 = vld [vmem:[%s5284_s9 + $0x28] sm:$0xff]  ;;  %v2160_v51 = vld [vmem:[%s5284_s9 + $0x10] sm:$0xff] }
 0x55f   : > { %4509 = vmatprep.mubr.bf16.mxu1 %v2166_v47  ;;  %v2168_v1 = vpack.c.bf16 %v2163_v58, %v2162_v63 }
 0x560   : > { %v2161_v17 = vld [vmem:[%s5284_s9 + $0x18] sm:$0xff]  ;;  %v2164_v7 = vld [vmem:[%s5284_s9 + $0x30] sm:$0xff] }
 0x561   : > { %v2167_v61 = vpack.c.bf16 %v2161_v17, %v2160_v51 }
 0x562   : > { %v2165_v45 = vld [vmem:[%s5284_s9 + $0x38] sm:$0xff] }
 0x563   : > { %4510 = vmatmul.mubr.bf16.vlgmr.msra.gmra.mxu1 %v2167_v61  ;;  %v2169_v12 = vpack.c.bf16 %v2165_v45, %v2164_v7 }
 0x564   : > { %4513 = vmatprep.mubr.bf16.mxu1 %v2168_v1 }
 0x56b   : > { %4514 = vmatmul.mubr.bf16.gmra.mxu1 %v2169_v12 }
 0x623   : > { %v4511_v11 = vpop.f32.mrf.mxu1 }
 0x624   : > { %v2267_v8 = vadd.f32 %v4511_v11, %v4227_v28 }
 0x625   : > { %v2258_v15 = vpop.f32.mrf.mxu1 }
 0x626   : > { %v2259_v29 = vadd.f32 %v4227_v28, %v2258_v15  ;;  %v2295_v41 = vsel %vm938_vm0, %v2267_v8, 0.0 }
 0x627   : > { %v4512_v59 = vpop.f32.mrf.mxu1 }
 0x628   : > { %v2270_v22 = vadd.f32 %v4512_v59, %v4227_v28  ;;  %v2289_v3 = vsel %vm938_vm0, %v2259_v29, 0.0 }
 0x629   : > { %v2261_v30 = vpop.f32.mrf.mxu1  ;;  %2290 = vadd.xlane.f32.xlu1 %v2289_v3 }
 0x62a   : > { %v2262_v21 = vadd.f32 %v4227_v28, %v2261_v30  ;;  %v2298_v24 = vsel %vm938_vm0, %v2270_v22, 0.0 }
 0x62b   : > { %v4515_v4 = vpop.f32.mrf.mxu1 }
 0x62c   : > { %v2292_v9 = vsel %vm938_vm0, %v2262_v21, 0.0  ;;  %v2283_v42 = vadd.f32 %v4515_v4, %v4227_v28 }
 0x62d   : > { %v2274_v32 = vpop.f32.mrf.mxu1  ;;  %2293 = vadd.xlane.f32.xlu0 %v2292_v9  ;;  %2299 = vadd.xlane.f32.xlu1 %v2298_v24 }
 0x62e   : > { %v2275_v34 = vadd.f32 %v4227_v28, %v2274_v32  ;;  %v2307_v44 = vsel %vm938_vm0, %v2283_v42, 0.0 }
 0x62f   : > { %v4516_v33 = vpop.f32.mrf.mxu1 }
 0x630   : > { %v2286_v40 = vadd.f32 %v4516_v33, %v4227_v28  ;;  %v2301_v50 = vsel %vm938_vm0, %v2275_v34, 0.0 }
 0x631   : > { %v2277_v19 = vpop.f32.mrf.mxu1  ;;  %2296 = vadd.xlane.f32.xlu0 %v2295_v41 }
 0x632   : > { %v2278_v43 = vadd.f32 %v4227_v28, %v2277_v19  ;;  %v2310_v46 = vsel %vm938_vm0, %v2286_v40, 0.0 }
 0x634   : > { %v2304_v55 = vsel %vm938_vm0, %v2278_v43, 0.0 }
 0x635   : > { %2302 = vadd.xlane.f32.xlu0 %v2301_v50  ;;  %2305 = vadd.xlane.f32.xlu1 %v2304_v55  ;;  %v4675_v50 = vld [vmem:[%s6446_s18] sm:$0xff]   ;;  %v5715_v55 = vld [vmem:[%s6520_s16 + $0x8] sm:$0xff]  }
 0x639   : > { %2308 = vadd.xlane.f32.xlu0 %v2307_v44  ;;  %2311 = vadd.xlane.f32.xlu1 %v2310_v46  ;;  %v5721_v44 = vld [vmem:[%s6508_s1] sm:$0xff]  ;;  %s4853_s1 = sshll.u32 %s4969_s3, 4  ;;  %s4854_s1 = int_to_ptr.vmem [resolvable:$false] %s4853_s1 }
 0x63a   : > { %v4174_v46 = vld [vmem:[%s6521_s10] ss:$0 sm:$0xff] }
 0x6b2   : > { %v2291_v48 = vpop.xlane.xlu1 %2290 }
 0x6b3   : > { %v2314_v49 = vmul.f32 0.03125, %v2291_v48  ;;  %v1283_v48 = vadd.f32 %v4174_v46, %v5635_v31  ;;  %v1307_v31 = vadd.f32 %v5641_v18, %v4174_v46 }
 0x6b5   : > { %v5660_v5 = vsub.f32 %v2259_v29, %v2314_v49  ;;  %v4181_v49 = vmul.f32 -1.442695, %v1283_v48 }
 0x6b6   : > { %v2294_v2 = vpop.xlane.xlu0 %2293  ;;  %v2300_v62 = vpop.xlane.xlu1 %2299 }
 0x6b7   : > { %v2315_v52 = vmul.f32 0.03125, %v2294_v2  ;;  %v2317_v6 = vmul.f32 0.03125, %v2300_v62  ;;  %v2330_v53 = vmul.f32 %v5660_v5, %v5660_v5  ;;  %v1286_v2 = vadd.f32 %v4174_v46, %v5639_v0 }
 0x6b8   : > { %v1291_v62 = vadd.f32 %v5633_v13, %v4174_v46  ;;  %4720 = vpow2.f32 %v4181_v49  ;;  %v1310_v0 = vadd.f32 %v5645_v20, %v4174_v46  ;;  %v4187_v13 = vmul.f32 -1.442695, %v1307_v31 }
 0x6b9   : > { %v5664_v54 = vsub.f32 %v2262_v21, %v2315_v52  ;;  %v5666_v56 = vsub.f32 %v2270_v22, %v2317_v6  ;;  %v2338_v57 = vsel %vm938_vm0, %v2330_v53, 0.0  ;;  %v1294_v52 = vadd.f32 %v5637_v14, %v4174_v46 }
 0x6ba   : > { %v2297_v60 = vpop.xlane.xlu0 %2296  ;;  %2339 = vadd.xlane.f32.xlu0 %v2338_v57  ;;  %v4182_v6 = vmul.f32 -1.442695, %v1286_v2  ;;  %v4183_v53 = vmul.f32 -1.442695, %v1291_v62  ;;  %v1299_v57 = vadd.f32 %v4174_v46, %v5643_v10 }
 0x6bb   : > { %v2316_v47 = vmul.f32 0.03125, %v2297_v60  ;;  %v2331_v58 = vmul.f32 %v5664_v54, %v5664_v54  ;;  %v2333_v61 = vmul.f32 %v5666_v56, %v5666_v56  ;;  %v4184_v60 = vmul.f32 -1.442695, %v1294_v52 }
 0x6bc   : > { %4722 = vpow2.f32 %v4182_v6 }
 0x6bd   : > { %v5671_v51 = vsub.f32 %v2267_v8, %v2316_v47  ;;  %v2341_v17 = vsel %vm938_vm0, %v2331_v58, 0.0  ;;  %v2347_v29 = vsel %vm938_vm0, %v2333_v61, 0.0  ;;  %v1302_v47 = vadd.f32 %v4174_v46, %v5647_v27 }
 0x6be   : > { %v2303_v63 = vpop.xlane.xlu0 %2302  ;;  %2342 = vadd.xlane.f32.xlu1 %v2341_v17  ;;  %v2306_v1 = vpop.xlane.xlu1 %2305  ;;  %4724 = vpow2.f32 %v4183_v53  ;;  %v4185_v58 = vmul.f32 -1.442695, %v1299_v57 }
 0x6bf   : > { %v2318_v45 = vmul.f32 0.03125, %v2303_v63  ;;  %v2319_v7 = vmul.f32 0.03125, %v2306_v1  ;;  %v2332_v12 = vmul.f32 %v5671_v51, %v5671_v51  ;;  %4726 = vpow2.f32 %v4184_v60 }
 0x6c0   : > { %v4186_v17 = vmul.f32 -1.442695, %v1302_v47  ;;  %4728 = vpow2.f32 %v4185_v58  ;;  %v4188_v1 = vmul.f32 -1.442695, %v1310_v0 }
 0x6c1   : > { %v5678_v11 = vsub.f32 %v2275_v34, %v2318_v45  ;;  %v5680_v28 = vsub.f32 %v2278_v43, %v2319_v7  ;;  %v2344_v15 = vsel %vm938_vm0, %v2332_v12, 0.0  ;;  %v4672_v43 = vld [vmem:[%s6519_s14 + $0x8] sm:$0xff]  }
 0x6c2   : > { %v2309_v59 = vpop.xlane.xlu0 %2308  ;;  %2345 = vadd.xlane.f32.xlu0 %v2344_v15  ;;  %2348 = vadd.xlane.f32.xlu1 %v2347_v29  ;;  %v2312_v22 = vpop.xlane.xlu1 %2311  ;;  %4730 = vpow2.f32 %v4186_v17 }
 0x6c3   : > { %v2320_v3 = vmul.f32 0.03125, %v2309_v59  ;;  %v2321_v30 = vmul.f32 0.03125, %v2312_v22  ;;  %v2334_v21 = vmul.f32 %v5678_v11, %v5678_v11  ;;  %v2335_v4 = vmul.f32 %v5680_v28, %v5680_v28  ;;  %4517 = vmatprep.subr.bf16.mxu0 %v4672_v43 }
 0x6c4   : > { %4518 = vmatpush3.bf16.msra.mxu0 %v4672_v43  ;;  %4732 = vpow2.f32 %v4187_v13 }
 0x6c5   : > { %v5688_v8 = vsub.f32 %v2283_v42, %v2320_v3  ;;  %v5690_v9 = vsub.f32 %v2286_v40, %v2321_v30  ;;  %v2350_v24 = vsel %vm938_vm0, %v2334_v21, 0.0  ;;  %v2353_v32 = vsel %vm938_vm0, %v2335_v4, 0.0  ;;  %v4673_v42 = vld [vmem:[%s6519_s14] sm:$0xff]   ;;  %v4674_v40 = vld [vmem:[%s6446_s18 + $0x8] sm:$0xff]   ;;  %v4721_v61 = vpop.eup %4720  ;;  %s4855_s14 = scalar_lea.vmem %s4854_s1, 2048 }
 0x6c6   : > { %2351 = vadd.xlane.f32.xlu0 %v2350_v24  ;;  %2354 = vadd.xlane.f32.xlu1 %v2353_v32  ;;  %v1337_v45 = vadd.f32 1.0, %v4721_v61 }
 0x6c7   : > { %v2336_v33 = vmul.f32 %v5688_v8, %v5688_v8  ;;  %v2337_v34 = vmul.f32 %v5690_v9, %v5690_v9  ;;  %4541 = vmatprep.subr.bf16.mxu1 %v4674_v40  ;;  %4519 = vmatprep.subr.bf16.mxu0 %v4673_v42 }
 0x6c8   : > { %4542 = vmatpush3.bf16.msra.mxu1 %v4674_v40  ;;  %4520 = vmatpush3.bf16.msra.mxu0 %v4673_v42  ;;  %v5738_v40 = vld [vmem:[%s6522_s8] ss:$0 sm:$0xff]  ;;  %s3997_s8 = sshll.u32 %s5284_s9, 4  ;;  %s6261_s8 = int_to_ptr.vmem [resolvable:$true] %s3997_s8 }
 0x6c9   : > { %v2356_v41 = vsel %vm938_vm0, %v2336_v33, 0.0  ;;  %v2359_v19 = vsel %vm938_vm0, %v2337_v34, 0.0  ;;  %4543 = vmatprep.subr.bf16.mxu1 %v4675_v50  ;;  %4529 = vmatprep.subr.bf16.mxu0 %v5715_v55  ;;  %v4723_v27 = vpop.eup %4722  ;;  %v1200_v60 = vadd.f32 %v5738_v40, %v5262_v35  ;;  %s4849_s30 = scalar_lea.vmem %s6261_s8, 1024  ;;  %p4856_p0 = scmp.lt.s32.totalorder %s6261_s8, %s4854_s1 }
 0x6ca   : > { %2357 = vadd.xlane.f32.xlu0 %v2356_v41  ;;  %2360 = vadd.xlane.f32.xlu1 %v2359_v19  ;;  %v1338_v29 = vadd.f32 1.0, %v4723_v27  ;;  %p4850_p11 = scmp.ne.s32.totalorder %s6261_s8, %s4849_s30  ;;  %p4857_p1 = scmp.lt.s32.totalorder %s4855_s14, %s4849_s30 }
 0x6cb   : > { %v4725_v18 = vpop.eup %4724 }
 0x6cc   : > { %4544 = vmatpush3.bf16.msra.mxu1 %v4675_v50  ;;  %v4727_v22 = vpop.eup %4726  ;;  %v1339_v21 = vadd.f32 1.0, %v4725_v18  ;;  %p4851_p12 = pnand %p4850_p11, %p5159_p5  ;;  %p4858_p2 = por %p4857_p1, %p4856_p0 }
 0x6cd   : > { %4565 = vmatprep.subr.mxu1 %v5721_v44  ;;  %v4729_v32 = vpop.eup %4728  ;;  %v1340_v33 = vadd.f32 1.0, %v4727_v22 }
 0x6ce   : > { %v1341_v50 = vadd.f32 1.0, %v4729_v32  ;;  %p4852_p13 = pneg %p4851_p12 }
 0x6cf   : > { %v4731_v19 = vpop.eup %4730 }
 0x6d0   : > { %v1342_v49 = vadd.f32 1.0, %v4731_v19  ;;  %p4859_p3 = pnand %p4858_p2, %p4852_p13 }
 0x6d1   : > { %v4733_v52 = vpop.eup %4732 }
 0x6d2   : > { %v1343_v13 = vadd.f32 1.0, %v4733_v52  ;;  %v4677_v52 = vld [vmem:[%s6520_s16] sm:$0xff]  }
 0x743   : > { %v2340_v14 = vpop.xlane.xlu0 %2339 }
 0x744   : > { %v2362_v63 = vmul.f32 0.03125, %v2340_v14 }
 0x746   : > { %v2370_v10 = vadd.f32 1e-05, %v2362_v63 }
 0x747   : > { %v2343_v7 = vpop.xlane.xlu1 %2342 }
 0x748   : > { %4734 = vrsqrt.f32 %v2370_v10  ;;  %v2363_v12 = vmul.f32 0.03125, %v2343_v7 }
 0x749   : > { %4736 = vpow2.f32 %v4188_v1  ;;  %v1203_v1 = vadd.f32 %v5738_v40, %v5266_v36  ;;  %v1211_v36 = vadd.f32 %v5264_v23, %v5738_v40 }
 0x74a   : > { %v2371_v15 = vadd.f32 1e-05, %v2363_v12  ;;  %4738 = vrcp.f32 %v1337_v45 }
 0x74b   : > { %v2346_v20 = vpop.xlane.xlu0 %2345  ;;  %v2349_v59 = vpop.xlane.xlu1 %2348 }
 0x74c   : > { %4740 = vrsqrt.f32 %v2371_v15  ;;  %v2364_v3 = vmul.f32 0.03125, %v2346_v20  ;;  %v2365_v30 = vmul.f32 0.03125, %v2349_v59  ;;  %v1208_v15 = vadd.f32 %v5260_v26, %v5738_v40 }
 0x74d   : > { %4742 = vrcp.f32 %v1338_v29 }
 0x74e   : > { %v2372_v4 = vadd.f32 1e-05, %v2364_v3  ;;  %v2373_v24 = vadd.f32 1e-05, %v2365_v30 }
 0x74f   : > { %v2352_v34 = vpop.xlane.xlu0 %2351  ;;  %v2355_v41 = vpop.xlane.xlu1 %2354 }
 0x750   : > { %4744 = vrsqrt.f32 %v2372_v4  ;;  %v2366_v43 = vmul.f32 0.03125, %v2352_v34  ;;  %v2367_v42 = vmul.f32 0.03125, %v2355_v41  ;;  %v1219_v34 = vadd.f32 %v5738_v40, %v5279_v39 }
 0x751   : > { %4746 = vrsqrt.f32 %v2373_v24  ;;  %v1216_v24 = vadd.f32 %v5738_v40, %v5270_v38 }
 0x752   : > { %4748 = vrcp.f32 %v1339_v21  ;;  %v2374_v46 = vadd.f32 1e-05, %v2366_v43  ;;  %v2375_v48 = vadd.f32 1e-05, %v2367_v42 }
 0x753   : > { %4750 = vrcp.f32 %v1340_v33  ;;  %v2358_v2 = vpop.xlane.xlu0 %2357  ;;  %v2361_v62 = vpop.xlane.xlu1 %2360 }
 0x754   : > { %4752 = vrsqrt.f32 %v2374_v46  ;;  %v2368_v6 = vmul.f32 0.03125, %v2358_v2  ;;  %v2369_v53 = vmul.f32 0.03125, %v2361_v62 }
 0x755   : > { %v4735_v57 = vpop.eup %4734  ;;  %4754 = vrsqrt.f32 %v2375_v48 }
 0x756   : > { %v4737_v47 = vpop.eup %4736  ;;  %4756 = vrcp.f32 %v1341_v50  ;;  %v2376_v58 = vadd.f32 1e-05, %v2368_v6  ;;  %v2377_v31 = vadd.f32 1e-05, %v2369_v53  ;;  %v2386_v17 = vmul.f32 %v4735_v57, %v5660_v5 }
 0x757   : > { %4758 = vrcp.f32 %v1342_v49  ;;  %v4739_v0 = vpop.eup %4738  ;;  %v1344_v63 = vadd.f32 1.0, %v4737_v47  ;;  %v4678_v47 = vld [vmem:[%s6448_s20 + $0x8] sm:$0xff]  }
 0x758   : > { %4760 = vrsqrt.f32 %v2376_v58  ;;  %v2394_v14 = vsub.f32 %v2386_v17, %v1200_v60 }
 0x759   : > { %v4741_v61 = vpop.eup %4740  ;;  %4762 = vrsqrt.f32 %v2377_v31 }
 0x75a   : > { %v2387_v35 = vmul.f32 %v4741_v61, %v5664_v54  ;;  %v2402_v10 = vmul.f32 %v4739_v0, %v2394_v14  ;;  %v4743_v45 = vpop.eup %4742  ;;  %4764 = vrcp.f32 %v1343_v13 }
 0x75b   : > { %4766 = vrcp.f32 %v1344_v63 }
 0x75c   : > { %v2395_v7 = vsub.f32 %v2387_v35, %v1203_v1  ;;  %v2410_v27 = vadd.f32 %v2402_v10, %v1200_v60  ;;  %v4243_v10 = vld [vmem:[%s6445_s17] ss:$0 sm:$0xff] }
 0x75d   : > { %v4745_v12 = vpop.eup %4744 }
 0x75e   : > { %v4747_v5 = vpop.eup %4746  ;;  %v2388_v18 = vmul.f32 %v4745_v12, %v5671_v51  ;;  %v2403_v29 = vmul.f32 %v4743_v45, %v2395_v7 }
 0x75f   : > { %v4749_v20 = vpop.eup %4748  ;;  %v2389_v54 = vmul.f32 %v4747_v5, %v5666_v56 }
 0x760   : > { %v4751_v59 = vpop.eup %4750  ;;  %v2396_v22 = vsub.f32 %v2388_v18, %v1208_v15  ;;  %v2411_v3 = vadd.f32 %v2403_v29, %v1203_v1 }
 0x761   : > { %v4753_v30 = vpop.eup %4752  ;;  %v2397_v21 = vsub.f32 %v2389_v54, %v1211_v36 }
 0x762   : > { %v4755_v4 = vpop.eup %4754  ;;  %v2404_v32 = vmul.f32 %v4749_v20, %v2396_v22  ;;  %v2457_v26 = vpack.c.bf16 %v2411_v3, %v2410_v27  ;;  %v2390_v51 = vmul.f32 %v4753_v30, %v5678_v11  ;;  %v1224_v11 = vadd.f32 %v5268_v37, %v5738_v40 }
 0x763   : > { %v4757_v33 = vpop.eup %4756  ;;  %v2405_v23 = vmul.f32 %v4751_v59, %v2397_v21  ;;  %v2391_v56 = vmul.f32 %v4755_v4, %v5680_v28  ;;  %v1227_v28 = vadd.f32 %v5273_v25, %v5738_v40 }
 0x764   : > { %v4759_v41 = vpop.eup %4758  ;;  %4521 = vmatprep.mubr.msk.bf16.mxu0 %vm938_vm0, %v2457_v26  ;;  %4545 = vmatprep.mubr.msk.bf16.mxu1 %vm938_vm0, %v2457_v26  ;;  %v2412_v19 = vadd.f32 %v2404_v32, %v1208_v15  ;;  %v2398_v43 = vsub.f32 %v2390_v51, %v1216_v24 }
 0x765   : > { %v4761_v42 = vpop.eup %4760  ;;  %v2413_v38 = vadd.f32 %v2405_v23, %v1211_v36  ;;  %v2399_v50 = vsub.f32 %v2391_v56, %v1219_v34 }
 0x766   : > { %v4763_v46 = vpop.eup %4762  ;;  %v2406_v48 = vmul.f32 %v4757_v33, %v2398_v43  ;;  %v2392_v39 = vmul.f32 %v4761_v42, %v5688_v8 }
 0x767   : > { %v2458_v49 = vpack.c.bf16 %v2413_v38, %v2412_v19  ;;  %v2407_v2 = vmul.f32 %v4759_v41, %v2399_v50  ;;  %v2393_v62 = vmul.f32 %v4763_v46, %v5690_v9  ;;  %v4765_v57 = vpop.eup %4764 }
 0x768   : > { %v2414_v6 = vadd.f32 %v2406_v48, %v1216_v24  ;;  %v2400_v53 = vsub.f32 %v2392_v39, %v1224_v11  ;;  %v4767_v60 = vpop.eup %4766 }
 0x769   : > { %4522 = vmatmul.mubr.msk.bf16.vlgmr.msra.gmra.mxu0 %vm938_vm0, %v2458_v49  ;;  %4546 = vmatmul.mubr.msk.bf16.vlgmr.msra.gmra.mxu1 %vm938_vm0, %v2458_v49  ;;  %v2415_v37 = vadd.f32 %v2407_v2, %v1219_v34  ;;  %v2401_v8 = vsub.f32 %v2393_v62, %v1227_v28 }
 0x76a   : > { %4530 = vmatpush3.bf16.msra.mxu0 %v5715_v55  ;;  %v2408_v25 = vmul.f32 %v4765_v57, %v2400_v53  ;;  %4566 = vmatpush3.msra.mxu1 %v5721_v44  ;;  %v4679_v55 = vld [vmem:[%s6448_s20] sm:$0xff]  }
 0x76b   : > { %v2459_v9 = vpack.c.bf16 %v2415_v37, %v2414_v6  ;;  %v2409_v40 = vmul.f32 %v4767_v60, %v2401_v8  ;;  %4531 = vmatprep.subr.bf16.mxu0 %v4677_v52  ;;  %v4236_v6 = vld [vmem:[%s6523_s15] ss:$0 sm:$0xff] }
 0x76c   : > { %v2416_v58 = vadd.f32 %v2408_v25, %v1224_v11 }
 0x76d   : > { %4525 = vmatprep.mubr.msk.bf16.mxu0 %vm938_vm0, %v2459_v9  ;;  %4549 = vmatprep.mubr.msk.bf16.mxu1 %vm938_vm0, %v2459_v9  ;;  %v2417_v31 = vadd.f32 %v2409_v40, %v1227_v28 }
 0x76e   : > { %4532 = vmatpush3.bf16.msra.mxu0 %v4677_v52 }
 0x76f   : > { %v2460_v17 = vpack.c.bf16 %v2417_v31, %v2416_v58  ;;  %4553 = vmatprep.subr.bf16.mxu0 %v4678_v47 }
 0x771   : > { %4526 = vmatmul.mubr.msk.bf16.gmra.mxu0 %vm938_vm0, %v2460_v17  ;;  %4550 = vmatmul.mubr.msk.bf16.gmra.mxu1 %vm938_vm0, %v2460_v17 }
 0x772   : > { %4533 = vmatprep.mubr.msk.bf16.mxu0 %vm938_vm0, %v2457_v26 }
 0x779   : > { %4534 = vmatmul.mubr.msk.bf16.vlgmr.msra.gmra.mxu0 %vm938_vm0, %v2458_v49 }
 0x77a   : > { %4537 = vmatprep.mubr.msk.bf16.mxu0 %vm938_vm0, %v2459_v9  ;;  %4554 = vmatpush3.bf16.msra.mxu0 %v4678_v47 }
 0x77b   : > { %4555 = vmatprep.subr.bf16.mxu0 %v4679_v55 }
 0x77e   : > { %4556 = vmatpush3.bf16.msra.mxu0 %v4679_v55 }
 0x781   : > { %4538 = vmatmul.mubr.msk.bf16.gmra.mxu0 %vm938_vm0, %v2460_v17 }
 0x782   : > { %4557 = vmatprep.mubr.msk.bf16.mxu0 %vm938_vm0, %v2457_v26 }
 0x789   : > { %4558 = vmatmul.mubr.msk.bf16.vlgmr.msra.gmra.mxu0 %vm938_vm0, %v2458_v49 }
 0x78a   : > { %4561 = vmatprep.mubr.msk.bf16.mxu0 %vm938_vm0, %v2459_v9 }
 0x791   : > { %4562 = vmatmul.mubr.msk.bf16.gmra.mxu0 %vm938_vm0, %v2460_v17 }
 0x829   : > { %v5791_v44 = vpop.f32.mrf.mxu0 }
 0x82a   : > { %v2534_v9 = vadd.f32 %v5791_v44, %v4236_v6 }
 0x82b   : > { %v5793_v0 = vpop.f32.mrf.mxu0 }
 0x82c   : > { %v2526_v53 = vadd.f32 %v4236_v6, %v5793_v0 }
 0x82d   : > { %v5795_v13 = vpop.f32.mrf.mxu0 }
 0x82e   : > { %v2537_v31 = vadd.f32 %v5795_v13, %v4236_v6 }
 0x82f   : > { %v5797_v14 = vpop.f32.mrf.mxu0 }
 0x830   : > { %v2529_v60 = vadd.f32 %v4236_v6, %v5797_v14 }
 0x831   : > { %v5799_v61 = vpop.f32.mrf.mxu0 }
 0x833   : > { %v5801_v63 = vpop.f32.mrf.mxu0 }
 0x834   : > { %v2542_v17 = vadd.f32 %v4236_v6, %v5801_v63 }
 0x835   : > { %v5803_v1 = vpop.f32.mrf.mxu0 }
 0x837   : > { %v5805_v35 = vpop.f32.mrf.mxu0 }
 0x839   : > { %v4535_v45 = vpop.f32.mrf.mxu0 }
 0x83a   : > { %v2617_v7 = vadd.f32 %v4535_v45, %v4243_v10  ;;  %v2545_v45 = vadd.f32 %v4236_v6, %v5805_v35  ;;  %v5829_v35 = vpop.f32.mrf.mxu1 }
 0x83b   : > { %v2608_v27 = vpop.f32.mrf.mxu0 }
 0x83c   : > { %v4252_v12 = vmul.f32 -1.442695, %v2617_v7  ;;  %v2609_v5 = vadd.f32 %v4243_v10, %v2608_v27  ;;  %v2550_v7 = vadd.f32 %v5799_v61, %v4236_v6 }
 0x83d   : > { %v4536_v15 = vpop.f32.mrf.mxu0 }
 0x83e   : > { %v4250_v18 = vmul.f32 -1.442695, %v2609_v5  ;;  %v2620_v29 = vadd.f32 %v4536_v15, %v4243_v10  ;;  %4768 = vpow2.f32 %v4252_v12  ;;  %v2553_v12 = vadd.f32 %v5803_v1, %v4236_v6  ;;  %v5831_v15 = vpop.f32.mrf.mxu1 }
 0x83f   : > { %v2611_v20 = vpop.f32.mrf.mxu0 }
 0x840   : > { %4770 = vpow2.f32 %v4250_v18  ;;  %v4253_v36 = vmul.f32 -1.442695, %v2620_v29  ;;  %v2612_v54 = vadd.f32 %v4243_v10, %v2611_v20  ;;  %v5833_v61 = vpop.f32.mrf.mxu1 }
 0x841   : > { %v4539_v59 = vpop.f32.mrf.mxu0 }
 0x842   : > { %4772 = vpow2.f32 %v4253_v36  ;;  %v4251_v22 = vmul.f32 -1.442695, %v2612_v54  ;;  %v2633_v3 = vadd.f32 %v4539_v59, %v4243_v10  ;;  %v5835_v18 = vpop.f32.mrf.mxu1 }
 0x843   : > { %v2624_v30 = vpop.f32.mrf.mxu0 }
 0x844   : > { %4774 = vpow2.f32 %v4251_v22  ;;  %v4256_v21 = vmul.f32 -1.442695, %v2633_v3  ;;  %v2625_v4 = vadd.f32 %v4243_v10, %v2624_v30  ;;  %v5837_v29 = vpop.f32.mrf.mxu1 }
 0x845   : > { %v4540_v24 = vpop.f32.mrf.mxu0 }
 0x846   : > { %v4254_v32 = vmul.f32 -1.442695, %v2625_v4  ;;  %v2636_v26 = vadd.f32 %v4540_v24, %v4243_v10  ;;  %4776 = vpow2.f32 %v4256_v21  ;;  %v5839_v20 = vpop.f32.mrf.mxu1 }
 0x847   : > { %v2627_v51 = vpop.f32.mrf.mxu0 }
 0x848   : > { %4778 = vpow2.f32 %v4254_v32  ;;  %v4257_v33 = vmul.f32 -1.442695, %v2636_v26  ;;  %v2628_v34 = vadd.f32 %v4243_v10, %v2627_v51  ;;  %v5841_v1 = vpop.f32.mrf.mxu1 }
 0x84a   : > { %4780 = vpow2.f32 %v4257_v33  ;;  %v4255_v23 = vmul.f32 -1.442695, %v2628_v34  ;;  %v5843_v36 = vpop.f32.mrf.mxu1 }
 0x84b   : > { %v4769_v56 = vpop.eup %4768 }
 0x84c   : > { %4782 = vpow2.f32 %v4255_v23  ;;  %v2665_v42 = vadd.f32 1.0, %v4769_v56 }
 0x84d   : > { %v4771_v41 = vpop.eup %4770 }
 0x84e   : > { %v2663_v19 = vadd.f32 1.0, %v4771_v41 }
 0x84f   : > { %v4773_v43 = vpop.eup %4772 }
 0x850   : > { %4784 = vrcp.f32 %v2663_v19  ;;  %v2666_v50 = vadd.f32 1.0, %v4773_v43 }
 0x851   : > { %v4775_v38 = vpop.eup %4774  ;;  %4786 = vrcp.f32 %v2665_v42 }
 0x852   : > { %v2664_v46 = vadd.f32 1.0, %v4775_v38 }
 0x853   : > { %v4777_v11 = vpop.eup %4776 }
 0x854   : > { %4788 = vrcp.f32 %v2664_v46  ;;  %v2669_v49 = vadd.f32 1.0, %v4777_v11 }
 0x855   : > { %v4779_v48 = vpop.eup %4778  ;;  %4790 = vrcp.f32 %v2666_v50 }
 0x856   : > { %v2667_v39 = vadd.f32 1.0, %v4779_v48 }
 0x857   : > { %v4781_v28 = vpop.eup %4780 }
 0x858   : > { %4792 = vrcp.f32 %v2667_v39  ;;  %v2670_v62 = vadd.f32 1.0, %v4781_v28 }
 0x859   : > { %v4783_v2 = vpop.eup %4782  ;;  %4794 = vrcp.f32 %v2669_v49 }
 0x85a   : > { %v2668_v52 = vadd.f32 1.0, %v4783_v2 }
 0x85c   : > { %4796 = vrcp.f32 %v2668_v52 }
 0x85d   : > { %v4785_v57 = vpop.eup %4784  ;;  %4798 = vrcp.f32 %v2670_v62 }
 0x85e   : > { %v2901_v37 = vmul.f32 %v4785_v57, %v2526_v53  ;;  %v4787_v8 = vpop.eup %4786 }
 0x85f   : > { %v2903_v58 = vmul.f32 %v4787_v8, %v2534_v9 }
 0x860   : > { %4567 = vmatprep.mubr.msk.f32.mxu1 %vm1369_vm1, %v2901_v37 }
 0x861   : > { %v4789_v25 = vpop.eup %4788 }
 0x862   : > { %v2902_v40 = vmul.f32 %v4789_v25, %v2529_v60  ;;  %v4791_v47 = vpop.eup %4790 }
 0x863   : > { %v2904_v0 = vmul.f32 %v4791_v47, %v2537_v31 }
 0x864   : > { %4568 = vmatmul.mubr.msk.f32.vlgmr.msra.gmra.mxu1 %vm1369_vm1, %v2902_v40 }
 0x865   : > { %v4793_v55 = vpop.eup %4792  ;;  %4570 = vmatprep.mubr.msk.f32.mxu1 %vm1369_vm1, %v2903_v58 }
 0x866   : > { %v2905_v10 = vmul.f32 %v4793_v55, %v2542_v17  ;;  %v4795_v14 = vpop.eup %4794 }
 0x867   : > { %v2907_v63 = vmul.f32 %v4795_v14, %v2550_v7 }
 0x868   : > { %4571 = vmatmul.mubr.msk.f32.gmra.mxu1 %vm1369_vm1, %v2904_v0 }
 0x869   : > { %v4797_v44 = vpop.eup %4796  ;;  %4573 = vmatprep.mubr.msk.f32.mxu1 %vm1369_vm1, %v2905_v10 }
 0x86a   : > { %v2906_v13 = vmul.f32 %v4797_v44, %v2545_v45  ;;  %v4799_v27 = vpop.eup %4798 }
 0x86b   : > { %v2908_v5 = vmul.f32 %v4799_v27, %v2553_v12 }
 0x86c   : > { %4574 = vmatmul.mubr.msk.f32.gmra.mxu1 %vm1369_vm1, %v2906_v13 }
 0x86d   : > { %4576 = vmatprep.mubr.msk.f32.mxu1 %vm1369_vm1, %v2907_v63 }
 0x870   : > { %4577 = vmatmul.mubr.msk.f32.gmra.mxu1 %vm1369_vm1, %v2908_v5 }
 0x924   : > { %v5845_v54 = vpop.f32.mrf.mxu1 }
 0x925   : > { %3039 = vst [vmem:[%s5848_s13 + $0x8] sm:$0x1] %v5845_v54  ;;  %v3060_v59 = vrot.slane %v5845_v54, 7  ;;  %v3174_v3 = vrot.slane %v5845_v54, 1  ;;  %v3261_v30 = vrot.slane %v5845_v54, 2  ;;  %v3348_v21 = vrot.slane %v5845_v54, 3 }
 0x926   : > { %v5853_v22 = vpop.f32.mrf.mxu1  ;;  %v3435_v4 = vrot.slane %v5845_v54, 4  ;;  %v3522_v51 = vrot.slane %v5845_v54, 5 }
 0x927   : > { %3038 = vst [vmem:[%s5848_s13] sm:$0x1] %v5853_v22  ;;  %v3086_v24 = vrot.slane %v5853_v22, 1  ;;  %v3173_v32 = vrot.slane %v5853_v22, 2  ;;  %v3260_v26 = vrot.slane %v5853_v22, 3  ;;  %v3061_v34 = vsel %vm1522_vm2, %v3060_v59, %v5853_v22 }
 0x928   : > { %v5865_v33 = vpop.f32.mrf.mxu1  ;;  %v3347_v23 = vrot.slane %v5853_v22, 4  ;;  %v3434_v56 = vrot.slane %v5853_v22, 5  ;;  %v3521_v41 = vrot.slane %v5853_v22, 6 }
 0x929   : > { %3041 = vst [vmem:[%s5848_s13 + $0x18] sm:$0x1] %v5865_v33  ;;  %v3064_v19 = vrot.slane %v5865_v33, 5  ;;  %v3087_v43 = vsel %vm1522_vm2, %v5845_v54, %v3086_v24  ;;  %v3090_v42 = vrot.slane %v5865_v33, 6  ;;  %v3175_v38 = vsel %vm1522_vm2, %v3174_v3, %v3173_v32 }
 0x92a   : > { %v5879_v50 = vpop.f32.mrf.mxu1  ;;  %v3177_v46 = vrot.slane %v5865_v33, 7  ;;  %v3262_v11 = vsel %vm1522_vm2, %v3261_v30, %v3260_v26  ;;  %v3349_v48 = vsel %vm1522_vm2, %v3348_v21, %v3347_v23  ;;  %v3352_v39 = vrot.slane %v5865_v33, 1 }
 0x92b   : > { %3040 = vst [vmem:[%s5848_s13 + $0x10] sm:$0x1] %v5879_v50  ;;  %v3062_v28 = vrot.slane %v5879_v50, 6  ;;  %v3088_v49 = vrot.slane %v5879_v50, 7  ;;  %v3176_v2 = vsel %vm1525_vm3, %v5879_v50, %v3175_v38  ;;  %v3263_v62 = vrot.slane %v5879_v50, 1 }
 0x92c   : > { %v5892_v52 = vpop.f32.mrf.mxu1  ;;  %v3178_v6 = vsel %vm1528_vm4, %v3177_v46, %v3176_v2  ;;  %v3350_v53 = vrot.slane %v5879_v50, 2  ;;  %v3436_v57 = vsel %vm1522_vm2, %v3435_v4, %v3434_v56  ;;  %v3437_v37 = vrot.slane %v5879_v50, 3 }
 0x92d   : > { %3043 = vst [vmem:[%s5848_s13 + $0x28] sm:$0x1] %v5892_v52  ;;  %v3063_v8 = vsel %vm1525_vm3, %v3062_v28, %v3061_v34  ;;  %v3068_v60 = vrot.slane %v5892_v52, 3  ;;  %v3089_v25 = vsel %vm1525_vm3, %v3088_v49, %v3087_v43  ;;  %v3094_v9 = vrot.slane %v5892_v52, 4 }
 0x92e   : > { %v5904_v40 = vpop.f32.mrf.mxu1  ;;  %v3065_v47 = vsel %vm1528_vm4, %v3064_v19, %v3063_v8  ;;  %v3091_v58 = vsel %vm1528_vm4, %v3090_v42, %v3089_v25  ;;  %v3181_v31 = vrot.slane %v5892_v52, 5  ;;  %v3264_v17 = vsel %vm1525_vm3, %v3263_v62, %v3262_v11 }
 0x92f   : > { %3042 = vst [vmem:[%s5848_s13 + $0x20] sm:$0x1] %v5904_v40  ;;  %v3066_v55 = vrot.slane %v5904_v40, 4  ;;  %v3092_v0 = vrot.slane %v5904_v40, 5  ;;  %v3179_v10 = vrot.slane %v5904_v40, 6  ;;  %v3265_v14 = vsel %vm1528_vm4, %v5865_v33, %v3264_v17 }
 0x930   : > { %v5917_v45 = vpop.f32.mrf.mxu1  ;;  %v3266_v44 = vrot.slane %v5904_v40, 7  ;;  %v3268_v7 = vrot.slane %v5892_v52, 6  ;;  %v3351_v13 = vsel %vm1525_vm3, %v3350_v53, %v3349_v48  ;;  %v3355_v27 = vrot.slane %v5892_v52, 7 }
 0x931   : > { %3045 = vst [vmem:[%s5848_s13 + $0x38] sm:$0x1] %v5917_v45  ;;  %v3067_v63 = vsel %vm1531_vm5, %v3066_v55, %v3065_v47  ;;  %v3072_v12 = vrot.slane %v5917_v45, 1  ;;  %v3093_v5 = vsel %vm1531_vm5, %v3092_v0, %v3091_v58  ;;  %v3098_v59 = vrot.slane %v5917_v45, 2 }
 0x932   : > { %v5929_v3 = vpop.f32.mrf.mxu1  ;;  %v3069_v30 = vsel %vm1534_vm6, %v3068_v60, %v3067_v63  ;;  %v3095_v21 = vsel %vm1534_vm6, %v3094_v9, %v3093_v5  ;;  %v3180_v4 = vsel %vm1531_vm5, %v3179_v10, %v3178_v6  ;;  %v3185_v24 = vrot.slane %v5917_v45, 3 }
 0x933   : > { %3044 = vst [vmem:[%s5848_s13 + $0x30] sm:$0x1] %v5929_v3  ;;  %v3070_v32 = vrot.slane %v5929_v3, 2  ;;  %v3096_v26 = vrot.slane %v5929_v3, 3  ;;  %v3182_v34 = vsel %vm1534_vm6, %v3181_v31, %v3180_v4  ;;  %v3183_v23 = vrot.slane %v5929_v3, 4 }
 0x934   : > { %v3267_v56 = vsel %vm1531_vm5, %v3266_v44, %v3265_v14  ;;  %v3270_v19 = vrot.slane %v5929_v3, 5  ;;  %v3272_v43 = vrot.slane %v5917_v45, 4  ;;  %v3353_v42 = vsel %vm1528_vm4, %v3352_v39, %v3351_v13 }
 0x935   : > { %v3071_v38 = vsel %vm1537_vm7, %v3070_v32, %v3069_v30  ;;  %v3097_v46 = vsel %vm1537_vm7, %v3096_v26, %v3095_v21  ;;  %v3184_v11 = vsel %vm1537_vm7, %v3183_v23, %v3182_v34  ;;  %v3269_v48 = vsel %vm1534_vm6, %v3268_v7, %v3267_v56 }
 0x936   : > { %v3073_v28 = vsel %vm1540_vm8, %v3072_v12, %v3071_v38  ;;  %v3099_v49 = vsel %vm1540_vm8, %v3098_v59, %v3097_v46  ;;  %v5952_v2 = vsel %vm1540_vm8, %v3185_v24, %v3184_v11  ;;  %v3271_v62 = vsel %vm1537_vm7, %v3270_v19, %v3269_v48 }
 0x937   : > { %3076 = vrot.lane.b32.xlu0 %v3073_v28, %s6513_s0  ;;  %v5957_v39 = vsel %vm1540_vm8, %v3272_v43, %v3271_v62  ;;  %v3354_v6 = vsel %vm1531_vm5, %v5904_v40, %v3353_v42  ;;  %v3357_v53 = vrot.slane %v5929_v3, 6  ;;  %v3608_v8 = vrot.slane %v5853_v22, 7 }
 0x938   : > { %v3356_v60 = vsel %vm1534_vm6, %v3355_v27, %v3354_v6  ;;  %v3359_v25 = vrot.slane %v5917_v45, 5  ;;  %v3438_v9 = vsel %vm1525_vm3, %v3437_v37, %v3436_v57  ;;  %v3439_v47 = vrot.slane %v5865_v33, 2 }
 0x939   : > { %v3358_v58 = vsel %vm1537_vm7, %v3357_v53, %v3356_v60  ;;  %v3441_v31 = vrot.slane %v5904_v40, 1  ;;  %v3444_v17 = vrot.slane %v5929_v3, 7  ;;  %v3609_v55 = vrot.slane %v5845_v54, 6 }
 0x93a   : > { %v5972_v0 = vsel %vm1540_vm8, %v3359_v25, %v3358_v58  ;;  %v3440_v10 = vsel %vm1528_vm4, %v3439_v47, %v3438_v9  ;;  %v3523_v57 = vsel %vm1522_vm2, %v3522_v51, %v3521_v41  ;;  %v3524_v37 = vrot.slane %v5879_v50, 4 }
 0x93b   : > { %v3442_v14 = vsel %vm1531_vm5, %v3441_v31, %v3440_v10  ;;  %v3446_v44 = vrot.slane %v5917_v45, 6  ;;  %v3526_v7 = vrot.slane %v5865_v33, 3  ;;  %v3528_v13 = vrot.slane %v5904_v40, 2 }
 0x93c   : > { %v3443_v27 = vsel %vm1534_vm6, %v5892_v52, %v3442_v14  ;;  %v3525_v63 = vsel %vm1525_vm3, %v3524_v37, %v3523_v57  ;;  %v3530_v22 = vrot.slane %v5892_v52, 1  ;;  %v3610_v54 = vsel %vm1522_vm2, %v3609_v55, %v3608_v8 }
 0x93d   : > { %v3445_v51 = vsel %vm1537_vm7, %v3444_v17, %v3443_v27  ;;  %v3527_v41 = vsel %vm1528_vm4, %v3526_v7, %v3525_v63  ;;  %v3533_v12 = vrot.slane %v5917_v45, 7  ;;  %v3611_v5 = vrot.slane %v5879_v50, 5 }
 0x93e   : > { %v5995_v59 = vsel %vm1540_vm8, %v3446_v44, %v3445_v51  ;;  %v3529_v30 = vsel %vm1531_vm5, %v3528_v13, %v3527_v41  ;;  %v3613_v21 = vrot.slane %v5865_v33, 4  ;;  %v3615_v4 = vrot.slane %v5904_v40, 3 }
 0x93f   : > { %v3531_v24 = vsel %vm1534_vm6, %v3530_v22, %v3529_v30  ;;  %v3612_v32 = vsel %vm1525_vm3, %v3611_v5, %v3610_v54  ;;  %v3619_v26 = vrot.slane %v5929_v3, 1  ;;  %v3617_v23 = vrot.slane %v5892_v52, 2  ;;  %v6025_v52 = vld [vmem:[%s6451_s23] ss:$0 sm:$0xff] }
 0x940   : > { %v3532_v34 = vsel %vm1537_vm7, %v5929_v3, %v3531_v24  ;;  %v3614_v50 = vsel %vm1528_vm4, %v3613_v21, %v3612_v32  ;;  %v6020_v3 = vld [vmem:[%s6450_s22] ss:$0 sm:$0xff] }
 0x941   : > { %v6008_v56 = vsel %vm1540_vm8, %v3533_v12, %v3532_v34  ;;  %v3616_v33 = vsel %vm1531_vm5, %v3615_v4, %v3614_v50  ;;  %v3075_v38 = vmul.f32 %v6020_v3, %v3073_v28 }
 0x942   : > { %v3618_v40 = vsel %vm1534_vm6, %v3617_v23, %v3616_v33 }
 0x943   : > { %v3620_v19 = vsel %vm1537_vm7, %v3619_v26, %v3618_v40 }
 0x944   : > { %v6015_v43 = vsel %vm1540_vm8, %v5917_v45, %v3620_v19 }
 0x9a9   : > { %v3077_v42 = vpop.permute.xlu0 %3076 }
 0x9aa   : > { %v3084_v46 = vmul.f32 %v6025_v52, %v3077_v42 }
 0x9ac   : > { %v3085_v11 = vadd.f32 %v3084_v46, %v3075_v38 }
 0x9ae   : > { %v3101_v45 = vadd.f32 %v3099_v49, %v3085_v11 }
 0x9b0   : > { %v3103_v48 = vcombine.high %v3101_v45, %v3101_v45  ;;  %v3110_v62 = vrot.slane %v3101_v45, %v5465_v16  ;;  %3169 = vrot.lane.b32.xlu1 %v3101_v45, %s6513_s0  ;;  %v3168_v55 = vmul.f32 %v6020_v3, %v3101_v45 }
 0x9b2   : > { %v3117_v6 = vrot.slane %v3103_v48, %v5465_v16  ;;  %v3118_v53 = vcombine.high %v3110_v62, %v3110_v62  ;;  %v3126_v8 = vrot.slane %v3110_v62, %v5465_v16  ;;  %4290 = vst.sshfl [vmem:[%s5848_s13 + $0x1] sm:$0x1 pattern:$0x73625140] %v3110_v62 }
 0x9b4   : > { %v3119_v28 = vcombine.high %v3117_v6, %v3117_v6  ;;  %v3133_v60 = vrot.slane %v3117_v6, %v5465_v16  ;;  %v3140_v49 = vrot.slane %v3118_v53, %v5465_v16  ;;  %v3148_v25 = vcombine.high %v3126_v8, %v3126_v8  ;;  %4291 = vst.sshfl [vmem:[%s5848_s13 + $0x9] sm:$0x1 pattern:$0x73625140] %v3118_v53 }
 0x9b5   : > { %4292 = vst.sshfl [vmem:[%s5848_s13 + $0x21] sm:$0x1 pattern:$0x73625140] %v3117_v6 }
 0x9b6   : > { %v3147_v9 = vrot.slane %v3119_v28, %v5465_v16  ;;  %v3149_v47 = vcombine.high %v3133_v60, %v3133_v60  ;;  %v3150_v58 = vcombine.high %v3140_v49, %v3140_v49  ;;  %3162 = vst [vmem:[%s5848_s13 + $0x11] sm:$0x1] %v3148_v25  ;;  %4293 = vst.sshfl [vmem:[%s5848_s13 + $0x29] sm:$0x1 pattern:$0x73625140] %v3119_v28 }
 0x9b8   : > { %v3151_v31 = vcombine.high %v3147_v9, %v3147_v9  ;;  %3163 = vst [vmem:[%s5848_s13 + $0x19] sm:$0x1] %v3150_v58  ;;  %3166 = vst [vmem:[%s5848_s13 + $0x31] sm:$0x1] %v3149_v47 }
 0x9ba   : > { %3167 = vst [vmem:[%s5848_s13 + $0x39] sm:$0x1] %v3151_v31 }
 0xa22   : > { %v3170_v17 = vpop.permute.xlu1 %3169 }
 0xa23   : > { %v3171_v10 = vmul.f32 %v6025_v52, %v3170_v17 }
 0xa25   : > { %v3172_v57 = vadd.f32 %v3171_v10, %v3168_v55 }
 0xa27   : > { %v3188_v37 = vadd.f32 %v5952_v2, %v3172_v57 }
 0xa29   : > { %v3190_v14 = vcombine.high %v3188_v37, %v3188_v37  ;;  %v3197_v44 = vrot.slane %v3188_v37, %v5465_v16  ;;  %3256 = vrot.lane.b32.xlu1 %v3188_v37, %s6513_s0  ;;  %v3255_v21 = vmul.f32 %v6020_v3, %v3188_v37 }
 0xa2b   : > { %v3204_v7 = vrot.slane %v3190_v14, %v5465_v16  ;;  %v3205_v13 = vcombine.high %v3197_v44, %v3197_v44  ;;  %v3213_v27 = vrot.slane %v3197_v44, %v5465_v16  ;;  %4294 = vst.sshfl [vmem:[%s5848_s13 + $0x2] sm:$0x1 pattern:$0x73625140] %v3197_v44 }
 0xa2d   : > { %v3206_v63 = vcombine.high %v3204_v7, %v3204_v7  ;;  %v3220_v22 = vrot.slane %v3204_v7, %v5465_v16  ;;  %v3227_v2 = vrot.slane %v3205_v13, %v5465_v16  ;;  %v3235_v54 = vcombine.high %v3213_v27, %v3213_v27  ;;  %4295 = vst.sshfl [vmem:[%s5848_s13 + $0xa] sm:$0x1 pattern:$0x73625140] %v3205_v13 }
 0xa2e   : > { %4296 = vst.sshfl [vmem:[%s5848_s13 + $0x22] sm:$0x1 pattern:$0x73625140] %v3204_v7 }
 0xa2f   : > { %v3234_v51 = vrot.slane %v3206_v63, %v5465_v16  ;;  %v3236_v41 = vcombine.high %v3220_v22, %v3220_v22  ;;  %v3237_v12 = vcombine.high %v3227_v2, %v3227_v2  ;;  %3249 = vst [vmem:[%s5848_s13 + $0x12] sm:$0x1] %v3235_v54  ;;  %4297 = vst.sshfl [vmem:[%s5848_s13 + $0x2a] sm:$0x1 pattern:$0x73625140] %v3206_v63 }
 0xa31   : > { %v3238_v5 = vcombine.high %v3234_v51, %v3234_v51  ;;  %3250 = vst [vmem:[%s5848_s13 + $0x1a] sm:$0x1] %v3237_v12  ;;  %3253 = vst [vmem:[%s5848_s13 + $0x32] sm:$0x1] %v3236_v41  ;;  %v4680_v51 = vld [vmem:[%s6452_s24 + $0x38] sm:$0xff]  }
 0xa32   : > { %4579 = vmatprep.subr.bf16.mxu0 %v4680_v51 }
 0xa33   : > { %3254 = vst [vmem:[%s5848_s13 + $0x3a] sm:$0x1] %v3238_v5  ;;  %4580 = vmatpush3.bf16.msra.mxu0 %v4680_v51 }
 0xa9b   : > { %v3257_v30 = vpop.permute.xlu1 %3256 }
 0xa9c   : > { %v3258_v4 = vmul.f32 %v6025_v52, %v3257_v30 }
 0xa9e   : > { %v3259_v24 = vadd.f32 %v3258_v4, %v3255_v21 }
 0xaa0   : > { %v3275_v32 = vadd.f32 %v5957_v39, %v3259_v24 }
 0xaa2   : > { %v3277_v26 = vcombine.high %v3275_v32, %v3275_v32  ;;  %v3284_v34 = vrot.slane %v3275_v32, %v5465_v16  ;;  %3343 = vrot.lane.b32.xlu0 %v3275_v32, %s6513_s0  ;;  %v3342_v62 = vmul.f32 %v6020_v3, %v3275_v32 }
 0xaa4   : > { %v3291_v50 = vrot.slane %v3277_v26, %v5465_v16  ;;  %v3292_v23 = vcombine.high %v3284_v34, %v3284_v34  ;;  %v3300_v33 = vrot.slane %v3284_v34, %v5465_v16  ;;  %4298 = vst.sshfl [vmem:[%s5848_s13 + $0x3] sm:$0x1 pattern:$0x73625140] %v3284_v34 }
 0xaa6   : > { %v3293_v40 = vcombine.high %v3291_v50, %v3291_v50  ;;  %v3307_v19 = vrot.slane %v3291_v50, %v5465_v16  ;;  %v3314_v39 = vrot.slane %v3292_v23, %v5465_v16  ;;  %v3322_v42 = vcombine.high %v3300_v33, %v3300_v33  ;;  %4299 = vst.sshfl [vmem:[%s5848_s13 + $0xb] sm:$0x1 pattern:$0x73625140] %v3292_v23 }
 0xaa7   : > { %4300 = vst.sshfl [vmem:[%s5848_s13 + $0x23] sm:$0x1 pattern:$0x73625140] %v3291_v50 }
 0xaa8   : > { %v3321_v38 = vrot.slane %v3293_v40, %v5465_v16  ;;  %v3323_v46 = vcombine.high %v3307_v19, %v3307_v19  ;;  %v3324_v11 = vcombine.high %v3314_v39, %v3314_v39  ;;  %3336 = vst [vmem:[%s5848_s13 + $0x13] sm:$0x1] %v3322_v42  ;;  %4301 = vst.sshfl [vmem:[%s5848_s13 + $0x2b] sm:$0x1 pattern:$0x73625140] %v3293_v40 }
 0xaaa   : > { %v3325_v45 = vcombine.high %v3321_v38, %v3321_v38  ;;  %3337 = vst [vmem:[%s5848_s13 + $0x1b] sm:$0x1] %v3324_v11  ;;  %3340 = vst [vmem:[%s5848_s13 + $0x33] sm:$0x1] %v3323_v46  ;;  %v4682_v46 = vld [vmem:[%s6452_s24 + $0x28] sm:$0xff]  }
 0xaac   : > { %3341 = vst [vmem:[%s5848_s13 + $0x3b] sm:$0x1] %v3325_v45 }
 0xb14   : > { %v3344_v48 = vpop.permute.xlu0 %3343 }
 0xb15   : > { %v3345_v6 = vmul.f32 %v6025_v52, %v3344_v48 }
 0xb17   : > { %v3346_v53 = vadd.f32 %v3345_v6, %v3342_v62 }
 0xb19   : > { %v3362_v8 = vadd.f32 %v5972_v0, %v3346_v53 }
 0xb1b   : > { %v3364_v28 = vcombine.high %v3362_v8, %v3362_v8  ;;  %v3371_v60 = vrot.slane %v3362_v8, %v5465_v16  ;;  %3430 = vrot.lane.b32.xlu1 %v3362_v8, %s6513_s0  ;;  %v3429_v14 = vmul.f32 %v6020_v3, %v3362_v8 }
 0xb1d   : > { %v3378_v49 = vrot.slane %v3364_v28, %v5465_v16  ;;  %v3379_v25 = vcombine.high %v3371_v60, %v3371_v60  ;;  %v3387_v9 = vrot.slane %v3371_v60, %v5465_v16  ;;  %4302 = vst.sshfl [vmem:[%s5848_s13 + $0x4] sm:$0x1 pattern:$0x73625140] %v3371_v60  ;;  %v4684_v28 = vld [vmem:[%s6452_s24 + $0x18] sm:$0xff]  }
 0xb1f   : > { %v3380_v47 = vcombine.high %v3378_v49, %v3378_v49  ;;  %v3394_v58 = vrot.slane %v3378_v49, %v5465_v16  ;;  %v3401_v0 = vrot.slane %v3379_v25, %v5465_v16  ;;  %v3409_v31 = vcombine.high %v3387_v9, %v3387_v9  ;;  %4303 = vst.sshfl [vmem:[%s5848_s13 + $0xc] sm:$0x1 pattern:$0x73625140] %v3379_v25  ;;  %v4686_v25 = vld [vmem:[%s6452_s24 + $0x8] sm:$0xff]   ;;  %v4687_v9 = vld [vmem:[%s6452_s24] sm:$0xff]  }
 0xb20   : > { %4304 = vst.sshfl [vmem:[%s5848_s13 + $0x24] sm:$0x1 pattern:$0x73625140] %v3378_v49  ;;  %v4685_v49 = vld [vmem:[%s6452_s24 + $0x10] sm:$0xff]  }
 0xb21   : > { %v3408_v17 = vrot.slane %v3380_v47, %v5465_v16  ;;  %v3410_v55 = vcombine.high %v3394_v58, %v3394_v58  ;;  %v3411_v10 = vcombine.high %v3401_v0, %v3401_v0  ;;  %3423 = vst [vmem:[%s5848_s13 + $0x14] sm:$0x1] %v3409_v31  ;;  %4305 = vst.sshfl [vmem:[%s5848_s13 + $0x2c] sm:$0x1 pattern:$0x73625140] %v3380_v47 }
 0xb23   : > { %v3412_v57 = vcombine.high %v3408_v17, %v3408_v17  ;;  %3424 = vst [vmem:[%s5848_s13 + $0x1c] sm:$0x1] %v3411_v10  ;;  %3427 = vst [vmem:[%s5848_s13 + $0x34] sm:$0x1] %v3410_v55 }
 0xb25   : > { %3428 = vst [vmem:[%s5848_s13 + $0x3c] sm:$0x1] %v3412_v57 }
 0xb8d   : > { %v3431_v37 = vpop.permute.xlu1 %3430 }
 0xb8e   : > { %v3432_v44 = vmul.f32 %v6025_v52, %v3431_v37 }
 0xb90   : > { %v3433_v7 = vadd.f32 %v3432_v44, %v3429_v14 }
 0xb92   : > { %v3449_v13 = vadd.f32 %v5995_v59, %v3433_v7  ;;  %v4681_v59 = vld [vmem:[%s6452_s24 + $0x30] sm:$0xff]  }
 0xb93   : > { %4581 = vmatprep.subr.bf16.mxu0 %v4681_v59 }
 0xb94   : > { %v3451_v27 = vcombine.high %v3449_v13, %v3449_v13  ;;  %v3458_v63 = vrot.slane %v3449_v13, %v5465_v16  ;;  %3517 = vrot.lane.b32.xlu0 %v3449_v13, %s6513_s0  ;;  %4582 = vmatpush3.bf16.msra.mxu0 %v4681_v59  ;;  %v3516_v34 = vmul.f32 %v6020_v3, %v3449_v13 }
 0xb95   : > { %4583 = vmatprep.subr.bf16.mxu0 %v4682_v46 }
 0xb96   : > { %v3465_v22 = vrot.slane %v3451_v27, %v5465_v16  ;;  %v3466_v2 = vcombine.high %v3458_v63, %v3458_v63  ;;  %v3474_v54 = vrot.slane %v3458_v63, %v5465_v16  ;;  %4306 = vst.sshfl [vmem:[%s5848_s13 + $0x5] sm:$0x1 pattern:$0x73625140] %v3458_v63 }
 0xb98   : > { %v3467_v41 = vcombine.high %v3465_v22, %v3465_v22  ;;  %v3481_v12 = vrot.slane %v3465_v22, %v5465_v16  ;;  %v3488_v5 = vrot.slane %v3466_v2, %v5465_v16  ;;  %v3496_v30 = vcombine.high %v3474_v54, %v3474_v54  ;;  %4307 = vst.sshfl [vmem:[%s5848_s13 + $0xd] sm:$0x1 pattern:$0x73625140] %v3466_v2 }
 0xb99   : > { %4308 = vst.sshfl [vmem:[%s5848_s13 + $0x25] sm:$0x1 pattern:$0x73625140] %v3465_v22  ;;  %4584 = vmatpush3.bf16.msra.mxu0 %v4682_v46 }
 0xb9a   : > { %v3495_v21 = vrot.slane %v3467_v41, %v5465_v16  ;;  %v3497_v4 = vcombine.high %v3481_v12, %v3481_v12  ;;  %v3498_v24 = vcombine.high %v3488_v5, %v3488_v5  ;;  %3510 = vst [vmem:[%s5848_s13 + $0x15] sm:$0x1] %v3496_v30  ;;  %4309 = vst.sshfl [vmem:[%s5848_s13 + $0x2d] sm:$0x1 pattern:$0x73625140] %v3467_v41 }
 0xb9c   : > { %v3499_v32 = vcombine.high %v3495_v21, %v3495_v21  ;;  %3511 = vst [vmem:[%s5848_s13 + $0x1d] sm:$0x1] %v3498_v24  ;;  %3514 = vst [vmem:[%s5848_s13 + $0x35] sm:$0x1] %v3497_v4  ;;  %v6183_v24 = vpop.f32.mrf.mxu0 }
 0xb9e   : > { %3515 = vst [vmem:[%s5848_s13 + $0x3d] sm:$0x1] %v3499_v32  ;;  %v6185_v32 = vpop.f32.mrf.mxu0 }
 0xc06   : > { %v3518_v26 = vpop.permute.xlu0 %3517 }
 0xc07   : > { %v3519_v50 = vmul.f32 %v6025_v52, %v3518_v26  ;;  %v6187_v26 = vpop.f32.mrf.mxu0 }
 0xc09   : > { %v3520_v23 = vadd.f32 %v3519_v50, %v3516_v34  ;;  %v6189_v34 = vpop.f32.mrf.mxu0 }
 0xc0b   : > { %v3536_v33 = vadd.f32 %v6008_v56, %v3520_v23  ;;  %v4683_v56 = vld [vmem:[%s6452_s24 + $0x20] sm:$0xff]   ;;  %v6191_v50 = vpop.f32.mrf.mxu0 }
 0xc0c   : > { %4585 = vmatprep.subr.bf16.mxu0 %v4683_v56 }
 0xc0d   : > { %v3538_v40 = vcombine.high %v3536_v33, %v3536_v33  ;;  %v3545_v19 = vrot.slane %v3536_v33, %v5465_v16  ;;  %3604 = vrot.lane.b32.xlu1 %v3536_v33, %s6513_s0  ;;  %4586 = vmatpush3.bf16.msra.mxu0 %v4683_v56  ;;  %v3603_v58 = vmul.f32 %v6020_v3, %v3536_v33  ;;  %v6193_v23 = vpop.f32.mrf.mxu0  ;;  %s6263_s0 = scalar_lea.sflag [#allocation5], %s3962_s7 }
 0xc0e   : > { %4587 = vmatprep.subr.bf16.mxu0 %v4684_v28 }
 0xc0f   : > { %v3552_v39 = vrot.slane %v3538_v40, %v5465_v16  ;;  %v3553_v42 = vcombine.high %v3545_v19, %v3545_v19  ;;  %v3561_v38 = vrot.slane %v3545_v19, %v5465_v16  ;;  %4310 = vst.sshfl [vmem:[%s5848_s13 + $0x6] sm:$0x1 pattern:$0x73625140] %v3545_v19  ;;  %v6195_v33 = vpop.f32.mrf.mxu0  ;;  %v4318_v19 = vld [vmem:[%s6453_s25] ss:$0 sm:$0xff] }
 0xc11   : > { %v3554_v11 = vcombine.high %v3552_v39, %v3552_v39  ;;  %v3568_v45 = vrot.slane %v3552_v39, %v5465_v16  ;;  %v3575_v48 = vrot.slane %v3553_v42, %v5465_v16  ;;  %v3583_v62 = vcombine.high %v3561_v38, %v3561_v38  ;;  %4311 = vst.sshfl [vmem:[%s5848_s13 + $0xe] sm:$0x1 pattern:$0x73625140] %v3553_v42  ;;  %v6197_v40 = vpop.f32.mrf.mxu0 }
 0xc12   : > { %4312 = vst.sshfl [vmem:[%s5848_s13 + $0x26] sm:$0x1 pattern:$0x73625140] %v3552_v39  ;;  %4588 = vmatpush3.bf16.msra.mxu0 %v4684_v28 }
 0xc13   : > { %v3582_v6 = vrot.slane %v3554_v11, %v5465_v16  ;;  %v3584_v53 = vcombine.high %v3568_v45, %v3568_v45  ;;  %v3585_v8 = vcombine.high %v3575_v48, %v3575_v48  ;;  %3597 = vst [vmem:[%s5848_s13 + $0x16] sm:$0x1] %v3583_v62  ;;  %4313 = vst.sshfl [vmem:[%s5848_s13 + $0x2e] sm:$0x1 pattern:$0x73625140] %v3554_v11  ;;  %4589 = vmatprep.subr.bf16.mxu0 %v4685_v49 }
 0xc15   : > { %v3586_v60 = vcombine.high %v3582_v6, %v3582_v6  ;;  %3598 = vst [vmem:[%s5848_s13 + $0x1e] sm:$0x1] %v3585_v8  ;;  %3601 = vst [vmem:[%s5848_s13 + $0x36] sm:$0x1] %v3584_v53 }
 0xc16   : > { %4590 = vmatpush3.bf16.msra.mxu0 %v4685_v49 }
 0xc17   : > { %3602 = vst [vmem:[%s5848_s13 + $0x3e] sm:$0x1] %v3586_v60  ;;  %4591 = vmatprep.subr.bf16.mxu0 %v4686_v25 }
 0xc1a   : > { %4592 = vmatpush3.bf16.msra.mxu0 %v4686_v25 }
 0xc1b   : > { %4593 = vmatprep.subr.bf16.mxu0 %v4687_v9 }
 0xc1e   : > { %4594 = vmatpush3.bf16.msra.mxu0 %v4687_v9 }
 0xc7f   : > { %v3605_v47 = vpop.permute.xlu1 %3604 }
 0xc80   : > { %v3606_v0 = vmul.f32 %v6025_v52, %v3605_v47 }
 0xc82   : > { %v3607_v31 = vadd.f32 %v3606_v0, %v3603_v58 }
 0xc84   : > { %v3623_v17 = vadd.f32 %v6015_v43, %v3607_v31 }
 0xc86   : > { %v3625_v55 = vcombine.high %v3623_v17, %v3623_v17  ;;  %v3632_v10 = vrot.slane %v3623_v17, %v5465_v16 }
 0xc88   : > { %v3639_v57 = vrot.slane %v3625_v55, %v5465_v16  ;;  %v3640_v37 = vcombine.high %v3632_v10, %v3632_v10  ;;  %v3648_v14 = vrot.slane %v3632_v10, %v5465_v16  ;;  %4314 = vst.sshfl [vmem:[%s5848_s13 + $0x7] sm:$0x1 pattern:$0x73625140] %v3632_v10 }
 0xc8a   : > { %v3641_v3 = vcombine.high %v3639_v57, %v3639_v57  ;;  %v3655_v52 = vrot.slane %v3639_v57, %v5465_v16  ;;  %v3662_v43 = vrot.slane %v3640_v37, %v5465_v16  ;;  %v3670_v44 = vcombine.high %v3648_v14, %v3648_v14  ;;  %4315 = vst.sshfl [vmem:[%s5848_s13 + $0xf] sm:$0x1 pattern:$0x73625140] %v3640_v37 }
 0xc8b   : > { %4316 = vst.sshfl [vmem:[%s5848_s13 + $0x27] sm:$0x1 pattern:$0x73625140] %v3639_v57 }
 0xc8c   : > { %v3669_v7 = vrot.slane %v3641_v3, %v5465_v16  ;;  %v3671_v13 = vcombine.high %v3655_v52, %v3655_v52  ;;  %v3672_v27 = vcombine.high %v3662_v43, %v3662_v43  ;;  %3684 = vst [vmem:[%s5848_s13 + $0x17] sm:$0x1] %v3670_v44  ;;  %4317 = vst.sshfl [vmem:[%s5848_s13 + $0x2f] sm:$0x1 pattern:$0x73625140] %v3641_v3 }
 0xc8e   : > { %v3673_v63 = vcombine.high %v3669_v7, %v3669_v7  ;;  %3685 = vst [vmem:[%s5848_s13 + $0x1f] sm:$0x1] %v3672_v27  ;;  %3688 = vst [vmem:[%s5848_s13 + $0x37] sm:$0x1] %v3671_v13 }
 0xc8f   : > { %v3690_v22 = vld [vmem:[%s5848_s13] sm:$0xff] }
 0xc90   : > { %3689 = vst [vmem:[%s5848_s13 + $0x3f] sm:$0x1] %v3673_v63 }
 0xc91   : > { %v3691_v2 = vld [vmem:[%s5848_s13 + $0x8] sm:$0xff] }
 0xc92   : > { %v3698_v54 = vpack.c.bf16 %v3691_v2, %v3690_v22  ;;  %v3694_v16 = vld [vmem:[%s5848_s13 + $0x20] sm:$0xff] }
 0xc93   : > { %v3695_v51 = vld [vmem:[%s5848_s13 + $0x28] sm:$0xff]  ;;  %v3692_v59 = vld [vmem:[%s5848_s13 + $0x10] sm:$0xff] }
 0xc94   : > { %4595 = vmatprep.mubr.bf16.mxu0 %v3698_v54  ;;  %v3700_v5 = vpack.c.bf16 %v3695_v51, %v3694_v16 }
 0xc95   : > { %v3693_v41 = vld [vmem:[%s5848_s13 + $0x18] sm:$0xff]  ;;  %v3696_v21 = vld [vmem:[%s5848_s13 + $0x30] sm:$0xff] }
 0xc96   : > { %v3699_v12 = vpack.c.bf16 %v3693_v41, %v3692_v59 }
 0xc97   : > { %v3697_v30 = vld [vmem:[%s5848_s13 + $0x38] sm:$0xff] }
 0xc98   : > { %4596 = vmatmul.mubr.bf16.vlgmr.msra.gmra.mxu0 %v3699_v12  ;;  %v3701_v4 = vpack.c.bf16 %v3697_v30, %v3696_v21 }
 0xc99   : > { %4599 = vmatprep.mubr.bf16.mxu0 %v3700_v5 }
 0xca0   : > { %4600 = vmatmul.mubr.bf16.gmra.mxu0 %v3701_v4 }
 0xd58   : > { %v4597_v39 = vpop.f32.mrf.mxu0 }
 0xd59   : > { %v3799_v42 = vadd.f32 %v4597_v39, %v4318_v19 }
 0xd5a   : > { %v3790_v38 = vpop.f32.mrf.mxu0 }
 0xd5b   : > { %v3791_v46 = vadd.f32 %v4318_v19, %v3790_v38  ;;  %v3827_v56 = vsel %vm938_vm0, %v3799_v42, 0.0 }
 0xd5c   : > { %3828 = vadd.xlane.f32.xlu0 %v3827_v56  ;;  %v4598_v11 = vpop.f32.mrf.mxu0 }
 0xd5d   : > { %v3802_v48 = vadd.f32 %v4598_v11, %v4318_v19  ;;  %v3821_v6 = vsel %vm938_vm0, %v3791_v46, 0.0 }
 0xd5e   : > { %v3793_v45 = vpop.f32.mrf.mxu0 }
 0xd5f   : > { %v3794_v62 = vadd.f32 %v4318_v19, %v3793_v45  ;;  %v3830_v49 = vsel %vm938_vm0, %v3802_v48, 0.0 }
 0xd60   : > { %3822 = vadd.xlane.f32.xlu0 %v3821_v6  ;;  %v4601_v53 = vpop.f32.mrf.mxu0 }
 0xd61   : > { %v3824_v8 = vsel %vm938_vm0, %v3794_v62, 0.0  ;;  %v3815_v9 = vadd.f32 %v4601_v53, %v4318_v19 }
 0xd62   : > { %3825 = vadd.xlane.f32.xlu1 %v3824_v8  ;;  %v3806_v28 = vpop.f32.mrf.mxu0 }
 0xd63   : > { %v3807_v60 = vadd.f32 %v4318_v19, %v3806_v28  ;;  %v3839_v55 = vsel %vm938_vm0, %v3815_v9, 0.0 }
 0xd64   : > { %3831 = vadd.xlane.f32.xlu0 %v3830_v49  ;;  %v4602_v25 = vpop.f32.mrf.mxu0 }
 0xd65   : > { %v3833_v47 = vsel %vm938_vm0, %v3807_v60, 0.0  ;;  %v3818_v31 = vadd.f32 %v4602_v25, %v4318_v19 }
 0xd66   : > { %v3809_v58 = vpop.f32.mrf.mxu0  ;;  %3834 = vadd.xlane.f32.xlu1 %v3833_v47 }
 0xd67   : > { %v3810_v0 = vadd.f32 %v4318_v19, %v3809_v58  ;;  %v3842_v10 = vsel %vm938_vm0, %v3818_v31, 0.0 }
 0xd69   : > { %v3836_v17 = vsel %vm938_vm0, %v3810_v0, 0.0 }
 0xd6a   : > { %3837 = vadd.xlane.f32.xlu0 %v3836_v17  ;;  %3840 = vadd.xlane.f32.xlu1 %v3839_v55 }
 0xd6e   : > { %3843 = vadd.xlane.f32.xlu0 %v3842_v10 }
 0xde5   : > { %v3829_v57 = vpop.xlane.xlu0 %3828 }
 0xde6   : > { %v3847_v37 = vmul.f32 0.03125, %v3829_v57 }
 0xde8   : > { %v6210_v14 = vsub.f32 %v3799_v42, %v3847_v37 }
 0xde9   : > { %v3823_v3 = vpop.xlane.xlu0 %3822 }
 0xdea   : > { %v3845_v52 = vmul.f32 0.03125, %v3823_v3  ;;  %v3863_v43 = vmul.f32 %v6210_v14, %v6210_v14 }
 0xdeb   : > { %v3826_v44 = vpop.xlane.xlu1 %3825 }
 0xdec   : > { %v6214_v7 = vsub.f32 %v3791_v46, %v3845_v52  ;;  %v3846_v13 = vmul.f32 0.03125, %v3826_v44  ;;  %v3875_v27 = vsel %vm938_vm0, %v3863_v43, 0.0 }
 0xded   : > { %v3832_v63 = vpop.xlane.xlu0 %3831  ;;  %3876 = vadd.xlane.f32.xlu1 %v3875_v27 }
 0xdee   : > { %v3848_v22 = vmul.f32 0.03125, %v3832_v63  ;;  %v3861_v2 = vmul.f32 %v6214_v7, %v6214_v7  ;;  %v6219_v54 = vsub.f32 %v3794_v62, %v3846_v13 }
 0xdef   : > { %v3835_v51 = vpop.xlane.xlu1 %3834 }
 0xdf0   : > { %v6221_v59 = vsub.f32 %v3802_v48, %v3848_v22  ;;  %v3849_v41 = vmul.f32 0.03125, %v3835_v51  ;;  %v3869_v12 = vsel %vm938_vm0, %v3861_v2, 0.0  ;;  %v3862_v4 = vmul.f32 %v6219_v54, %v6219_v54 }
 0xdf1   : > { %3870 = vadd.xlane.f32.xlu1 %v3869_v12 }
 0xdf2   : > { %v6224_v16 = vsub.f32 %v3807_v60, %v3849_v41  ;;  %v3864_v5 = vmul.f32 %v6221_v59, %v6221_v59  ;;  %v3872_v62 = vsel %vm938_vm0, %v3862_v4, 0.0 }
 0xdf3   : > { %v3838_v30 = vpop.xlane.xlu0 %3837  ;;  %v3841_v21 = vpop.xlane.xlu1 %3840 }
 0xdf4   : > { %v3850_v19 = vmul.f32 0.03125, %v3838_v30  ;;  %v3851_v39 = vmul.f32 0.03125, %v3841_v21  ;;  %v3878_v42 = vsel %vm938_vm0, %v3864_v5, 0.0  ;;  %v3865_v38 = vmul.f32 %v6224_v16, %v6224_v16 }
 0xdf5   : > { %3879 = vadd.xlane.f32.xlu0 %v3878_v42 }
 0xdf6   : > { %v6233_v46 = vsub.f32 %v3810_v0, %v3850_v19  ;;  %v6235_v56 = vsub.f32 %v3815_v9, %v3851_v39  ;;  %v3881_v11 = vsel %vm938_vm0, %v3865_v38, 0.0 }
 0xdf7   : > { %v3844_v45 = vpop.xlane.xlu0 %3843  ;;  %3882 = vadd.xlane.f32.xlu1 %v3881_v11 }
 0xdf8   : > { %v3852_v48 = vmul.f32 0.03125, %v3844_v45  ;;  %v3867_v6 = vmul.f32 %v6235_v56, %v6235_v56  ;;  %v3866_v53 = vmul.f32 %v6233_v46, %v6233_v46 }
 0xdf9   : > { %3873 = vadd.xlane.f32.xlu0 %v3872_v62 }
 0xdfa   : > { %v6243_v8 = vsub.f32 %v3818_v31, %v3852_v48  ;;  %v3887_v28 = vsel %vm938_vm0, %v3867_v6, 0.0  ;;  %v3884_v60 = vsel %vm938_vm0, %v3866_v53, 0.0 }
 0xdfb   : > { %3888 = vadd.xlane.f32.xlu1 %v3887_v28 }
 0xdfc   : > { %v3868_v49 = vmul.f32 %v6243_v8, %v6243_v8 }
 0xdfd   : > { %3885 = vadd.xlane.f32.xlu0 %v3884_v60 }
 0xdfe   : > { %v3890_v25 = vsel %vm938_vm0, %v3868_v49, 0.0 }
 0xe01   : > { %3891 = vadd.xlane.f32.xlu0 %v3890_v25 }
 0xe02   : > { %4862 = shalt.err (!%p4859_p3)
}
 0xe03   : > { %s4863_s9 = scalar_lea.hbm %s6258_s6, 1024  ;;  %s4867_s4 = scalar_lea.hbm %s6455_s27, 2048 }
 0xe04   : > { %p4864_p4 = scmp.ne.s32.totalorder %s6258_s6, %s4863_s9  ;;  %p4868_p9 = scmp.lt.s32.totalorder %s6258_s6, %s6455_s27 }
 0xe05   : > { %p4869_p10 = scmp.lt.s32.totalorder %s4867_s4, %s4863_s9 }
 0xe06   : > { %p4865_p7 = pnand %p4864_p4, %p5159_p5 }
 0xe07   : > { %p4870_p11 = por %p4869_p10, %p4868_p9 }
 0xe08   : > { %p4866_p8 = pneg %p4865_p7 }
 0xe0a   : > { %p4871_p12 = pnand %p4870_p11, %p4866_p8 }
 0xe0c   : > { %4874 = shalt.err (!%p4871_p12)
}
 0xe0d   : > { %s4970_s14 = smov 128   ;;  %s4971_s1 = smov 8  }
 0xe0e   : > { %4604 = dma.vmem_to_hbm [thread:$0]  (%p5159_p5), %s6261_s8, 1024, %s6258_s6, %s6263_s0, %s4970_s14, %s4970_s14, %s4971_s1  }
 0xe0f   : > { %s6293_s9 = scalar_lea.hbm %s6456_s28, %s6252_s11  ;;  %s4013_s7 = sshll.u32 %s5848_s13, 4  ;;  %s4014_s7 = int_to_ptr.vmem [resolvable:$true] %s4013_s7 }
 0xe10   : > { %s4875_s10 = scalar_lea.vmem %s4014_s7, 1024  ;;  %s4972_s4 = smov [#allocation6]  }
 0xe11   : > { %p4876_p13 = scmp.ne.s32.totalorder %s4014_s7, %s4875_s10  ;;  %s4879_s3 = sshll.u32 %s4972_s4, 4  ;;  %s4880_s3 = int_to_ptr.vmem [resolvable:$false] %s4879_s3 }
 0xe12   : > { %s4881_s16 = scalar_lea.vmem %s4880_s3, 2048  ;;  %p4882_p2 = scmp.lt.s32.totalorder %s4014_s7, %s4880_s3 }
 0xe13   : > { %p4877_p0 = pnand %p4876_p13, %p5159_p5  ;;  %p4883_p3 = scmp.lt.s32.totalorder %s4881_s16, %s4875_s10 }
 0xe15   : > { %p4878_p1 = pneg %p4877_p0  ;;  %p4884_p4 = por %p4883_p3, %p4882_p2 }
 0xe17   : > { %p4885_p7 = pnand %p4884_p4, %p4878_p1 }
 0xe19   : > { %4888 = shalt.err (!%p4885_p7)
}
 0xe1a   : > { %s4889_s13 = scalar_lea.hbm %s6293_s9, 1024  ;;  %s4893_s15 = scalar_lea.hbm %s6456_s28, 2048 }
 0xe1b   : > { %p4890_p8 = scmp.ne.s32.totalorder %s6293_s9, %s4889_s13  ;;  %p4894_p11 = scmp.lt.s32.totalorder %s6293_s9, %s6456_s28 }
 0xe1c   : > { %p4895_p12 = scmp.lt.s32.totalorder %s4893_s15, %s4889_s13 }
 0xe1d   : > { %p4891_p9 = pnand %p4890_p8, %p5159_p5 }
 0xe1e   : > { %p4896_p13 = por %p4895_p12, %p4894_p11 }
 0xe1f   : > { %p4892_p10 = pneg %p4891_p9 }
 0xe21   : > { %p4897_p0 = pnand %p4896_p13, %p4892_p10 }
 0xe23   : > { %4900 = shalt.err (!%p4897_p0)
}
 0xe24   : > { %4605 = dma.vmem_to_hbm [thread:$0]  (%p5159_p5), %s4014_s7, 1024, %s6293_s9, %s6263_s0, %s4970_s14, %s4970_s14, %s4971_s1  }
 0xe25   : > { %v4265_v9 = vld [vmem:[%s6449_s21] ss:$0 sm:$0xff]  ;;  %s6341_s7 = scalar_lea.vmem [#allocation2], %s5277_s12  ;;  %s6378_s6 = scalar_lea.hbm %s6454_s26, %s6252_s11 }
 0xe26   : > { %v2831_v47 = vadd.f32 %v6183_v24, %v4265_v9  ;;  %v2823_v0 = vadd.f32 %v4265_v9, %v6185_v32  ;;  %v2834_v17 = vadd.f32 %v6187_v26, %v4265_v9  ;;  %v2839_v55 = vadd.f32 %v4265_v9, %v6193_v23  ;;  %v6330_v62 = vld [vmem:[%s6447_s19] ss:$0 sm:$0xff]  ;;  %s3981_s12 = sshll.u32 %s6341_s7, 4  ;;  %s6524_s8 = sand.u32 1, %s4957_s5   ;;  %s6380_s12 = int_to_ptr.vmem [resolvable:$true] %s3981_s12 }
 0xe27   : > { %v2826_v57 = vadd.f32 %v4265_v9, %v6189_v34  ;;  %v2847_v3 = vadd.f32 %v6191_v50, %v4265_v9  ;;  %v2842_v24 = vadd.f32 %v4265_v9, %v6197_v40  ;;  %v2850_v32 = vadd.f32 %v6195_v33, %v4265_v9  ;;  %s3958_s15 = scalar_lea.sflag [#allocation3], %s6524_s8  ;;  %s4901_s30 = scalar_lea.vmem %s6380_s12, 1024 }
 0xe28   : > { %v4274_v58 = vmul.f32 -1.442695, %v2831_v47  ;;  %v4272_v31 = vmul.f32 -1.442695, %v2823_v0  ;;  %v4275_v10 = vmul.f32 -1.442695, %v2834_v17  ;;  %v2748_v0 = vadd.f32 %v5829_v35, %v6330_v62  ;;  %p4902_p1 = scmp.ne.s32.totalorder %s6380_s12, %s4901_s30 }
 0xe29   : > { %v4276_v37 = vmul.f32 -1.442695, %v2839_v55  ;;  %v4273_v52 = vmul.f32 -1.442695, %v2826_v57  ;;  %v4278_v43 = vmul.f32 -1.442695, %v2847_v3 }
 0xe2a   : > { %4800 = vpow2.f32 %v4274_v58  ;;  %v4277_v44 = vmul.f32 -1.442695, %v2842_v24  ;;  %v4279_v27 = vmul.f32 -1.442695, %v2850_v32  ;;  %v2740_v32 = vadd.f32 %v6330_v62, %v5831_v15  ;;  %p4903_p2 = pnand %p4902_p1, %p5159_p5  ;;  %s4973_s4 = smov [#allocation2]  }
 0xe2b   : > { %4802 = vpow2.f32 %v4272_v31  ;;  %s4905_s16 = sshll.u32 %s4973_s4, 4  ;;  %s4906_s16 = int_to_ptr.vmem [resolvable:$false] %s4905_s16 }
 0xe2c   : > { %4804 = vpow2.f32 %v4275_v10  ;;  %p4904_p3 = pneg %p4903_p2  ;;  %s4907_s10 = scalar_lea.vmem %s4906_s16, 2048 }
 0xe2d   : > { %4806 = vpow2.f32 %v4276_v37  ;;  %p4908_p4 = scmp.lt.s32.totalorder %s6380_s12, %s4906_s16  ;;  %p4909_p7 = scmp.lt.s32.totalorder %s4907_s10, %s4901_s30 }
 0xe2e   : > { %4808 = vpow2.f32 %v4273_v52 }
 0xe2f   : > { %4810 = vpow2.f32 %v4278_v43  ;;  %p4910_p8 = por %p4909_p7, %p4908_p4 }
 0xe30   : > { %4812 = vpow2.f32 %v4277_v44 }
 0xe31   : > { %p4911_p9 = pnand %p4910_p8, %p4904_p3 }
 0xe37   : > { %v4801_v13 = vpop.eup %4800 }
 0xe38   : > { %v2879_v34 = vadd.f32 1.0, %v4801_v13  ;;  %v4803_v50 = vpop.eup %4802 }
 0xe39   : > { %v2877_v51 = vadd.f32 1.0, %v4803_v50  ;;  %v4805_v33 = vpop.eup %4804  ;;  %v2756_v50 = vadd.f32 %v6330_v62, %v5839_v20  ;;  %v2764_v20 = vadd.f32 %v5837_v29, %v6330_v62 }
 0xe3a   : > { %v4807_v30 = vpop.eup %4806  ;;  %v2880_v19 = vadd.f32 1.0, %v4805_v33 }
 0xe3b   : > { %v4809_v42 = vpop.eup %4808  ;;  %v2881_v45 = vadd.f32 1.0, %v4807_v30 }
 0xe3c   : > { %v4811_v28 = vpop.eup %4810  ;;  %v2878_v60 = vadd.f32 1.0, %v4809_v42 }
 0xe3d   : > { %v4813_v25 = vpop.eup %4812  ;;  %v2883_v31 = vadd.f32 1.0, %v4811_v28 }
 0xe3e   : > { %v2882_v57 = vadd.f32 1.0, %v4813_v25 }
 0xe76   : > { %v3877_v26 = vpop.xlane.xlu1 %3876 }
 0xe77   : > { %v3895_v23 = vmul.f32 0.03125, %v3877_v26 }
 0xe79   : > { %v3903_v63 = vadd.f32 1e-05, %v3895_v23 }
 0xe7a   : > { %v3871_v22 = vpop.xlane.xlu1 %3870 }
 0xe7b   : > { %4814 = vrsqrt.f32 %v3903_v63  ;;  %v3893_v2 = vmul.f32 0.03125, %v3871_v22 }
 0xe7c   : > { %4816 = vpow2.f32 %v4279_v27 }
 0xe7d   : > { %v3901_v40 = vadd.f32 1e-05, %v3893_v2  ;;  %4818 = vrcp.f32 %v2879_v34  ;;  %v2751_v34 = vadd.f32 %v5833_v61, %v6330_v62 }
 0xe7e   : > { %v3880_v41 = vpop.xlane.xlu0 %3879 }
 0xe7f   : > { %4820 = vrsqrt.f32 %v3901_v40  ;;  %v3896_v12 = vmul.f32 0.03125, %v3880_v41 }
 0xe80   : > { %v3883_v5 = vpop.xlane.xlu1 %3882  ;;  %4822 = vrcp.f32 %v2877_v51 }
 0xe81   : > { %v3904_v21 = vadd.f32 1e-05, %v3896_v12  ;;  %v3897_v4 = vmul.f32 0.03125, %v3883_v5  ;;  %v2743_v12 = vadd.f32 %v6330_v62, %v5835_v18  ;;  %v2759_v18 = vadd.f32 %v6330_v62, %v5843_v36 }
 0xe82   : > { %v3874_v39 = vpop.xlane.xlu0 %3873  ;;  %v2767_v36 = vadd.f32 %v5841_v1, %v6330_v62 }
 0xe83   : > { %4824 = vrsqrt.f32 %v3904_v21  ;;  %v3905_v38 = vadd.f32 1e-05, %v3897_v4  ;;  %v3894_v11 = vmul.f32 0.03125, %v3874_v39 }
 0xe84   : > { %v3889_v48 = vpop.xlane.xlu1 %3888 }
 0xe85   : > { %4826 = vrsqrt.f32 %v3905_v38  ;;  %v3902_v6 = vadd.f32 1e-05, %v3894_v11  ;;  %v3899_v53 = vmul.f32 0.03125, %v3889_v48 }
 0xe86   : > { %4828 = vrcp.f32 %v2880_v19  ;;  %v3886_v49 = vpop.xlane.xlu0 %3885 }
 0xe87   : > { %4830 = vrsqrt.f32 %v3902_v6  ;;  %v3907_v9 = vadd.f32 1e-05, %v3899_v53  ;;  %v3898_v47 = vmul.f32 0.03125, %v3886_v49 }
 0xe88   : > { %v4815_v58 = vpop.eup %4814  ;;  %4832 = vrcp.f32 %v2881_v45 }
 0xe89   : > { %v3919_v17 = vmul.f32 %v4815_v58, %v6210_v14  ;;  %4834 = vrsqrt.f32 %v3907_v9  ;;  %v3906_v55 = vadd.f32 1e-05, %v3898_v47  ;;  %v4817_v10 = vpop.eup %4816 }
 0xe8a   : > { %4836 = vrcp.f32 %v2878_v60  ;;  %v3892_v37 = vpop.xlane.xlu0 %3891  ;;  %v4819_v3 = vpop.eup %4818  ;;  %v2884_v13 = vadd.f32 1.0, %v4817_v10 }
 0xe8b   : > { %v3927_v52 = vsub.f32 %v3919_v17, %v2748_v0  ;;  %4838 = vrsqrt.f32 %v3906_v55  ;;  %v3900_v24 = vmul.f32 0.03125, %v3892_v37 }
 0xe8c   : > { %v4821_v43 = vpop.eup %4820  ;;  %4840 = vrcp.f32 %v2883_v31 }
 0xe8d   : > { %v3935_v35 = vmul.f32 %v4819_v3, %v3927_v52  ;;  %v3917_v44 = vmul.f32 %v4821_v43, %v6214_v7  ;;  %v3908_v14 = vadd.f32 1e-05, %v3900_v24  ;;  %4842 = vrcp.f32 %v2882_v57  ;;  %v4823_v26 = vpop.eup %4822 }
 0xe8f   : > { %v3943_v23 = vadd.f32 %v3935_v35, %v2748_v0  ;;  %v3925_v27 = vsub.f32 %v3917_v44, %v2740_v32  ;;  %4844 = vrsqrt.f32 %v3908_v14 }
 0xe90   : > { %v4825_v63 = vpop.eup %4824  ;;  %4846 = vrcp.f32 %v2884_v13 }
 0xe91   : > { %3951 = vst.msk [vmem:[%s6341_s7 + $0x10] sm:$0xff] %vm938_vm0, %v3943_v23  ;;  %v3933_v15 = vmul.f32 %v4823_v26, %v3925_v27  ;;  %v3920_v7 = vmul.f32 %v4825_v63, %v6221_v59 }
 0xe92   : > { %v4827_v22 = vpop.eup %4826 }
 0xe93   : > { %v4829_v2 = vpop.eup %4828  ;;  %v3941_v40 = vadd.f32 %v3933_v15, %v2740_v32  ;;  %v3928_v51 = vsub.f32 %v3920_v7, %v2751_v34  ;;  %v3921_v41 = vmul.f32 %v4827_v22, %v6224_v16 }
 0xe94   : > { %v4831_v61 = vpop.eup %4830 }
 0xe95   : > { %v4833_v33 = vpop.eup %4832  ;;  %3949 = vst.msk [vmem:[%s6341_s7] sm:$0xff] %vm938_vm0, %v3941_v40  ;;  %v3936_v5 = vmul.f32 %v4829_v2, %v3928_v51  ;;  %v3929_v59 = vsub.f32 %v3921_v41, %v2756_v50  ;;  %v3918_v30 = vmul.f32 %v4831_v61, %v6219_v54 }
 0xe96   : > { %v4835_v21 = vpop.eup %4834 }
 0xe97   : > { %v4837_v4 = vpop.eup %4836  ;;  %v3944_v19 = vadd.f32 %v3936_v5, %v2751_v34  ;;  %v3937_v16 = vmul.f32 %v4833_v33, %v3929_v59  ;;  %v3926_v39 = vsub.f32 %v3918_v30, %v2743_v12  ;;  %v3923_v42 = vmul.f32 %v4835_v21, %v6235_v56 }
 0xe98   : > { %v4839_v38 = vpop.eup %4838 }
 0xe99   : > { %3952 = vst.msk [vmem:[%s6341_s7 + $0x18] sm:$0xff] %vm938_vm0, %v3944_v19  ;;  %v3945_v11 = vadd.f32 %v3937_v16, %v2756_v50  ;;  %v3934_v54 = vmul.f32 %v4837_v4, %v3926_v39  ;;  %v3931_v45 = vsub.f32 %v3923_v42, %v2764_v20  ;;  %v3922_v48 = vmul.f32 %v4839_v38, %v6233_v46  ;;  %v4841_v29 = vpop.eup %4840 }
 0xe9a   : > { %v4843_v6 = vpop.eup %4842 }
 0xe9b   : > { %3953 = vst.msk [vmem:[%s6341_s7 + $0x20] sm:$0xff] %vm938_vm0, %v3945_v11  ;;  %v3942_v56 = vadd.f32 %v3934_v54, %v2743_v12  ;;  %v3939_v53 = vmul.f32 %v4841_v29, %v3931_v45  ;;  %v3930_v28 = vsub.f32 %v3922_v48, %v2759_v18 }
 0xe9c   : > { %v4845_v60 = vpop.eup %4844 }
 0xe9d   : > { %3950 = vst.msk [vmem:[%s6341_s7 + $0x8] sm:$0xff] %vm938_vm0, %v3942_v56  ;;  %v3947_v49 = vadd.f32 %v3939_v53, %v2764_v20  ;;  %v3938_v46 = vmul.f32 %v4843_v6, %v3930_v28  ;;  %v3924_v25 = vmul.f32 %v4845_v60, %v6243_v8  ;;  %v4847_v58 = vpop.eup %4846 }
 0xe9f   : > { %3955 = vst.msk [vmem:[%s6341_s7 + $0x30] sm:$0xff] %vm938_vm0, %v3947_v49  ;;  %v3946_v9 = vadd.f32 %v3938_v46, %v2759_v18  ;;  %v3932_v47 = vsub.f32 %v3924_v25, %v2767_v36 }
 0xea1   : > { %3954 = vst.msk [vmem:[%s6341_s7 + $0x28] sm:$0xff] %vm938_vm0, %v3946_v9  ;;  %v3940_v0 = vmul.f32 %v4847_v58, %v3932_v47 }
 0xea3   : > { %v3948_v31 = vadd.f32 %v3940_v0, %v2767_v36 }
 0xea5   : > { %3956 = vst.msk [vmem:[%s6341_s7 + $0x38] sm:$0xff] %vm938_vm0, %v3948_v31 }
 0xea6   : > { %4914 = shalt.err (!%p4911_p9)
}
 0xea7   : > { %s4915_s11 = scalar_lea.hbm %s6378_s6, 1024  ;;  %s4919_s7 = scalar_lea.hbm %s6454_s26, 2048 }
 0xea8   : > { %p4916_p10 = scmp.ne.s32.totalorder %s6378_s6, %s4915_s11  ;;  %p4920_p13 = scmp.lt.s32.totalorder %s6378_s6, %s6454_s26 }
 0xea9   : > { %p4921_p0 = scmp.lt.s32.totalorder %s4919_s7, %s4915_s11 }
 0xeaa   : > { %p4917_p11 = pnand %p4916_p10, %p5159_p5 }
 0xeab   : > { %p4922_p1 = por %p4921_p0, %p4920_p13 }
 0xeac   : > { %p4918_p12 = pneg %p4917_p11 }
 0xeae   : > { %p4923_p2 = pnand %p4922_p1, %p4918_p12 }
 0xeb0   : > { %4926 = shalt.err (!%p4923_p2)
}
 0xeb1   : > { %4603 = dma.vmem_to_hbm [thread:$0]  (%p5159_p5), %s6380_s12, 1024, %s6378_s6, %s3958_s15, %s4970_s14, %s4970_s14, %s4971_s1  }
 0xeb2 PF: > { %s6525_s8 = sld [smem:[#allocation11_spill]] }
 0xeb3   : > { %s6526_s30 = sld [smem:[#allocation9_spill]] }
 0xeb8   : > { %p4619_p3 = scmp.ge.s32.totalorder %s6525_s8, 2 }
 0xeb9   : > { %s4028_s16 = sand.u32 1, %s6526_s30  }
 0xeba   : > { %p4610_p4 = pnand %p4619_p3, %p5163_p6  ;;  %s4029_s10 = scalar_lea.sflag [#allocation3], %s4028_s16 }
 0xebc   : > { %p4611_p7 = pneg %p4610_p4 }
 0xebe   : > { %4944 = dma.done.wait (%p4611_p7), %s4029_s10, 1024  }
 0xebf   : > { %4946 = vsyncadd (%p4611_p7), %s4029_s10, 4294966272  ;;  %s6528_s2 = sadd.s32 4294967294, %s6525_s8  }
 0xec0   : > { %s4037_s11 = sand.u32 1, %s6528_s2  }
 0xec1   : > { %s4038_s0 = scalar_lea.sflag [#allocation5], %s4037_s11 }
 0xec2   : > { %4948 = dma.done.wait (%p4611_p7), %s4038_s0, 2048  }
 0xec3   : > { %4950 = vsyncadd (%p4611_p7), %s4038_s0, 4294965248  ;;  %s6529_s30 = sld [smem:[#allocation12_spill]]  ;;  %s6532_s8 = smov %s4957_s5 }
 0xec4   : > { %s6530_s14 = sld [smem:[#allocation10_spill]] }
 0xec5   : > { %s6531_s9 = sld [smem:[#allocation13_spill]] }
 0xec9   : > { %p42_p5 = scmp.ge.s32.totalorder %s6529_s30, 4  }
 0xeca   : > { %s6533_s5 = smov %s6530_s14 }
 0xecb   :  { %44 = sbr.rel (!%p42_p5) target bundleno = 23 (0x17), region = 191 }
 0xed0   :  { %4052 = vsyncpa [#allocation3], 1 }
 0xed1   :  { %4054 = vsyncpa [#allocation3 + $0x1], 1 }
 0xed2   :  { %4055 = vsyncpa [#allocation5], 1 }
 0xed3   :  { %4057 = vsyncpa [#allocation5 + $0x1], 1 }

</bundles_post_ra>
